<compile_context>
chip_gen: v5e
topology: v5e:2x2
jax: 0.10.0
libtpu: 0.0.40
codegen_flags: <defaults>
</compile_context>

<pallas_src>
import jax
import jax.numpy as jnp
from jax.experimental import pallas as pl
from jax.experimental.pallas import tpu as pltpu

EPS = 1e-5
LANE = 128


def _round_up(x, m):
    return (x + m - 1) // m * m


def _largest_divisor_leq(n, cap):
    cap = max(1, min(n, cap))
    for d in range(cap, 0, -1):
        if n % d == 0:
            return d
    return 1


def _pick_conv_row_tile(H, W, Cp, budget=36 * 1024 * 1024):
    # Target M = TH*W >= ~512 matmul rows (fills the MXU), TH <= 32,
    # TH a divisor of H, and an approximate per-step VMEM budget.
    target = max(8, min(32, (512 + W - 1) // W))
    th = _largest_divisor_leq(H, target)
    while th > 1 and 24 * th * W * Cp + 40 * Cp * Cp > budget:
        th = _largest_divisor_leq(H, th - 1)
    return th


def _pick_epi_row_tile(H, W, Cp, budget=36 * 1024 * 1024):
    # Memory-bound epilogue: as many rows per block as the VMEM budget allows
    # (full image when it fits), always a divisor of H.
    th = H
    while th > 1 and 20 * th * W * Cp > budget:
        th = _largest_divisor_leq(H, th - 1)
    return th


def _vmem_limit_bytes():
    try:
        cap = getattr(pltpu.get_tpu_info(), "vmem_capacity_bytes", None)
        if cap:
            return int(min(cap * 3 // 4, 96 * 1024 * 1024))
    except Exception:
        pass
    return 48 * 1024 * 1024   # safe on v5e/v6e (128 MiB) and v7x (64 MiB)


# ---------------------------------------------------------------------------
# Conv body: 3x3 conv (stride 1, pad 1) over one TH-row chunk of one image,
# with an elementwise `pre` hook applied while filling the padded slab
# (identity for conv1, BN1-affine + ReLU for conv2), plus per-chunk one-pass
# BatchNorm partials [sum, sum^2] of the conv output.
# ---------------------------------------------------------------------------
def _conv3x3_body(top_ref, mid_ref, bot_ref, w_ref, y_ref, s_ref, slab, pre):
    # top_ref/bot_ref: (1, 1, W, Cp) halo rows (border-clamped; zeroed here at
    #                  the first/last chunk)
    # mid_ref        : (1, TH, W, Cp) row chunk of the conv input
    # w_ref          : (9*Cp, Cp) im2col weight, bf16, tap-major row blocks
    # y_ref          : (1, TH, W, Cp) conv output chunk, bf16
    # s_ref          : (1, 1, 2, Cp) per-chunk BN partials [sum, sum^2], f32
    # slab           : VMEM (TH+2, W+2, Cp) f32 padded / pre-activated input
    j = pl.program_id(1)
    nj = pl.num_programs(1)
    _, TH, W, Cp = y_ref.shape

    # ---- build the slab; only the 1-wide halo is zeroed --------------------
    zcol = jnp.zeros((TH + 2, 1, Cp), jnp.float32)
    slab[:, 0:1, :] = zcol
    slab[:, W + 1:W + 2, :] = zcol
    slab[1:TH + 1, 1:W + 1, :] = pre(mid_ref[0])

    zrow = jnp.zeros((1, W, Cp), jnp.float32)

    @pl.when(j == 0)
    def _():
        slab[0:1, 1:W + 1, :] = zrow

    @pl.when(j > 0)
    def _():
        slab[0:1, 1:W + 1, :] = pre(top_ref[0])

    @pl.when(j == nj - 1)
    def _():
        slab[TH + 1:TH + 2, 1:W + 1, :] = zrow

    @pl.when(j < nj - 1)
    def _():
        slab[TH + 1:TH + 2, 1:W + 1, :] = pre(bot_ref[0])

    # ---- 9 accumulating MXU dots (no materialized (TH*W, 9*Cp) patch) ------
    acc = None
    t = 0
    for dy in range(3):
        for dx in range(3):
            tap = slab[dy:dy + TH, dx:dx + W, :].reshape(TH * W, Cp)
            part = jnp.dot(tap.astype(jnp.bfloat16),
                           w_ref[t * Cp:(t + 1) * Cp, :],
                           preferred_element_type=jnp.float32)
            acc = part if acc is None else acc + part
            t += 1

    y_ref[...] = acc.reshape(1, TH, W, Cp).astype(y_ref.dtype)

    # one-pass BN partials from the f32 accumulator, single store per chunk
    ssum = jnp.sum(acc, axis=0, keepdims=True)
    ssq = jnp.sum(acc * acc, axis=0, keepdims=True)
    s_ref[...] = jnp.concatenate([ssum, ssq], axis=0).reshape(1, 1, 2, Cp)


def _conv1_kernel(top_ref, mid_ref, bot_ref, w_ref, y_ref, s_ref, slab):
    _conv3x3_body(top_ref, mid_ref, bot_ref, w_ref, y_ref, s_ref, slab,
                  pre=lambda v: v)


def _conv2_kernel(top_ref, mid_ref, bot_ref, pp_ref, w_ref, y_ref, s_ref, slab):
    Cp = y_ref.shape[3]
    scale = pp_ref[0:1, :].reshape(1, 1, Cp)
    shift = pp_ref[1:2, :].reshape(1, 1, Cp)

    def pre(v):  # BN1 affine + ReLU fused into the slab fill (f32 math)
        return jnp.maximum(v.astype(jnp.float32) * scale + shift, 0.0)

    _conv3x3_body(top_ref, mid_ref, bot_ref, w_ref, y_ref, s_ref, slab, pre)


# ---------------------------------------------------------------------------
# Elementwise epilogue: BN2 affine + residual add + ReLU (memory-bound).
# ---------------------------------------------------------------------------
def _bn_add_relu_kernel(y_ref, x_ref, pp_ref, o_ref):
    Cp = o_ref.shape[3]
    scale = pp_ref[0:1, :].reshape(1, 1, 1, Cp)
    shift = pp_ref[1:2, :].reshape(1, 1, 1, Cp)
    o_ref[...] = jnp.maximum(
        y_ref[...].astype(jnp.float32) * scale + shift + x_ref[...], 0.0)


def _stats_to_affine(s, gamma, beta, count):
    mean = s[0] / count
    var = jnp.maximum(s[1] / count - mean * mean, 0.0)     # biased variance
    scale = gamma * jax.lax.rsqrt(var + EPS)
    shift = beta - mean * scale
    return scale, shift


def resblock_forward(x_nchw, params):
    """ResBlock forward. x_nchw: (N, C, H, W) f32; requires stride==1, Cin==Cout."""
    x = jnp.transpose(x_nchw, (0, 2, 3, 1)).astype(jnp.float32)   # -> NHWC
    N, H, W, C = x.shape
    Cp = _round_up(C, LANE)                      # lane-dense channel padding
    count = N * H * W
    vmem_limit = _vmem_limit_bytes()

    x_p = jnp.pad(x, ((0, 0), (0, 0), (0, 0), (0, Cp - C)))

    def prep_w(w):    # (O, I, 3, 3) -> im2col (9*Cp, Cp), bf16 MXU operand
        w = jnp.transpose(jnp.asarray(w, jnp.float32), (2, 3, 1, 0))   # (3,3,I,O)
        w = jnp.pad(w, ((0, 0), (0, 0), (0, Cp - C), (0, Cp - C)))
        return w.reshape(9 * Cp, Cp).astype(jnp.bfloat16)

    def pad_c(v):
        return jnp.pad(jnp.asarray(v, jnp.float32), (0, Cp - C))

    def pack(*rows):  # pack per-channel vectors into one (8, Cp) param array
        p = jnp.zeros((8, Cp), jnp.float32)
        for k, r in enumerate(rows):
            p = p.at[k].set(r)
        return p

    # Conv biases (b1, b2) are intentionally NOT applied: train-mode BN's batch
    # mean absorbs them, so the output is mathematically identical without them.
    w1, w2 = prep_w(params["w1"]), prep_w(params["w2"])
    g1, be1 = pad_c(params["gamma1"]), pad_c(params["beta1"])
    g2, be2 = pad_c(params["gamma2"]), pad_c(params["beta2"])

    # ---------------- conv passes: grid = (N, H // TH) ----------------------
    TH = _pick_conv_row_tile(H, W, Cp)
    nj = H // TH
    grid = (N, nj)

    mid_spec = pl.BlockSpec((1, TH, W, Cp), lambda i, j: (i, j, 0, 0))
    top_spec = pl.BlockSpec(
        (1, 1, W, Cp), lambda i, j: (i, jnp.maximum(j * TH - 1, 0), 0, 0))
    bot_spec = pl.BlockSpec(
        (1, 1, W, Cp), lambda i, j: (i, jnp.minimum((j + 1) * TH, H - 1), 0, 0))
    w_spec = pl.BlockSpec((9 * Cp, Cp), lambda i, j: (0, 0))
    par_spec = pl.BlockSpec((8, Cp), lambda i, j: (0, 0))
    y_spec = pl.BlockSpec((1, TH, W, Cp), lambda i, j: (i, j, 0, 0))
    stat_spec = pl.BlockSpec((1, 1, 2, Cp), lambda i, j: (i, j, 0, 0))

    conv_out = (jax.ShapeDtypeStruct((N, H, W, Cp), jnp.bfloat16),
                jax.ShapeDtypeStruct((N, nj, 2, Cp), jnp.float32))
    conv_cparams = pltpu.CompilerParams(
        dimension_semantics=("parallel", "parallel"),
        vmem_limit_bytes=vmem_limit)
    conv_scratch = [pltpu.VMEM((TH + 2, W + 2, Cp), jnp.float32)]

    conv1 = pl.pallas_call(
        _conv1_kernel, grid=grid,
        in_specs=[top_spec, mid_spec, bot_spec, w_spec],
        out_specs=(y_spec, stat_spec), out_shape=conv_out,
        scratch_shapes=conv_scratch, compiler_params=conv_cparams)

    conv2 = pl.pallas_call(
        _conv2_kernel, grid=grid,
        in_specs=[top_spec, mid_spec, bot_spec, par_spec, w_spec],
        out_specs=(y_spec, stat_spec), out_shape=conv_out,
        scratch_shapes=conv_scratch, compiler_params=conv_cparams)

    # ---------------- memory-bound epilogue: large blocks -------------------
    THe = _pick_epi_row_tile(H, W, Cp)
    grid_e = (N, H // THe)
    epi_spec = pl.BlockSpec((1, THe, W, Cp), lambda i, j: (i, j, 0, 0))

    bn_add_relu = pl.pallas_call(
        _bn_add_relu_kernel, grid=grid_e,
        in_specs=[epi_spec, epi_spec, par_spec],
        out_specs=epi_spec,
        out_shape=jax.ShapeDtypeStruct((N, H, W, Cp), jnp.float32),
        compiler_params=pltpu.CompilerParams(
            dimension_semantics=("parallel", "parallel"),
            vmem_limit_bytes=vmem_limit))

    # pass 1: conv1 and per-chunk BN1 partials (reduced in plain JAX)
    y1, s1 = conv1(x_p, x_p, x_p, w1)
    scale1, shift1 = _stats_to_affine(jnp.sum(s1, axis=(0, 1)), g1, be1, count)

    # pass 2: BN1 + ReLU fused into conv2's slab fill, plus BN2 partials
    y2, s2 = conv2(y1, y1, y1, pack(scale1, shift1), w2)
    scale2, shift2 = _stats_to_affine(jnp.sum(s2, axis=(0, 1)), g2, be2, count)

    # pass 3: BN2 affine + residual add + ReLU
    out = bn_add_relu(y2, x_p, pack(scale2, shift2))

    return jnp.transpose(out[..., :C], (0, 3, 1, 2))   # NCHW, drop channel pad


# ---------------------------------------------------------------------------
# Pure-JAX f32 reference (train-mode BN, with conv biases) for a sanity check.
# ---------------------------------------------------------------------------
def _reference_forward(x_nchw, params):
    dn = ("NCHW", "OIHW", "NCHW")

    def conv(x, w, b):
        y = jax.lax.conv_general_dilated(
            x, w, window_strides=(1, 1), padding=((1, 1), (1, 1)),
            dimension_numbers=dn, precision=jax.lax.Precision.HIGHEST)
        return y + b.reshape(1, -1, 1, 1)

    def bn(x, g, b):
        mean = jnp.mean(x, axis=(0, 2, 3), keepdims=True)
        var = jnp.mean((x - mean) ** 2, axis=(0, 2, 3), keepdims=True)
        return ((x - mean) * jax.lax.rsqrt(var + EPS) * g.reshape(1, -1, 1, 1)
                + b.reshape(1, -1, 1, 1))

    h = conv(x_nchw, params["w1"], params["b1"])
    h = jnp.maximum(bn(h, params["gamma1"], params["beta1"]), 0.0)
    h = conv(h, params["w2"], params["b2"])
    h = bn(h, params["gamma2"], params["beta2"])
    return jnp.maximum(h + x_nchw, 0.0)


def make_params(key, channels):
    k1, k2, k3, k4 = jax.random.split(key, 4)
    c = channels
    return {
        "w1": jax.random.normal(k1, (c, c, 3, 3), jnp.float32) * 0.1,
        "b1": jax.random.normal(k2, (c,), jnp.float32) * 0.1,
        "w2": jax.random.normal(k3, (c, c, 3, 3), jnp.float32) * 0.1,
        "b2": jax.random.normal(k4, (c,), jnp.float32) * 0.1,
        "gamma1": jnp.ones((c,), jnp.float32),
        "beta1": jnp.zeros((c,), jnp.float32),
        "gamma2": jnp.ones((c,), jnp.float32),
        "beta2": jnp.zeros((c,), jnp.float32),
    }


if __name__ == "__main__":
    key = jax.random.PRNGKey(0)
    kx, kp = jax.random.split(key)

    N, C, H, W = 2, 4, 16, 16          # in_channels == out_channels, stride == 1
    x = jax.random.normal(kx, (N, C, H, W), jnp.float32)
    params = make_params(kp, C)

    out = jax.jit(resblock_forward)(x, params)
    jax.block_until_ready(out)
    assert out.shape == (N, C, H, W)

    # loose tolerance: conv operands and the y1/y2 intermediates are bf16
    ref = _reference_forward(x, params)
    err = float(jnp.max(jnp.abs(out - ref)))
    assert err < 1e-1, f"kernel vs reference max abs error too large: {err}"
    print("KERNEL_OK")
</pallas_src>

<mosaic_0001>
module attributes {stable_mosaic.version = 11 : i64} {
  func.func @_conv1_kernel(%arg0: i32, %arg1: i32, %arg2: memref<1x1x16x128xf32, #tpu.memory_space<vmem>>, %arg3: memref<1x16x16x128xf32, #tpu.memory_space<vmem>>, %arg4: memref<1x1x16x128xf32, #tpu.memory_space<vmem>>, %arg5: memref<1152x128xbf16, #tpu.memory_space<vmem>>, %arg6: memref<1x16x16x128xbf16, #tpu.memory_space<vmem>>, %arg7: memref<1x1x2x128xf32, #tpu.memory_space<vmem>>, %arg8: memref<18x18x128xf32, #tpu.memory_space<vmem>>) attributes {dimension_semantics = [#tpu.dimension_semantics<parallel>, #tpu.dimension_semantics<parallel>], iteration_bounds = array<i64: 2, 1>, scalar_prefetch = 0 : i64, scratch_operands = 1 : i64, tpu.core_type = #tpu.core_type<tc>, window_params = [{transform_indices = @transform_0, window_bounds = array<i64: 1, 1, 16, 128>}, {transform_indices = @transform_1, window_bounds = array<i64: 1, 16, 16, 128>}, {transform_indices = @transform_2, window_bounds = array<i64: 1, 1, 16, 128>}, {pipeline_mode = #tpu.pipeline_mode<synchronous>, transform_indices = @transform_3, window_bounds = array<i64: 1152, 128>}, {transform_indices = @transform_4, window_bounds = array<i64: 1, 16, 16, 128>}, {transform_indices = @transform_5, window_bounds = array<i64: 1, 1, 2, 128>}]} {
    %cst = arith.constant 0.000000e+00 : f32
    %0 = vector.broadcast %cst : f32 to vector<18x1x128xf32>
    %c0 = arith.constant 0 : index
    %c0_0 = arith.constant 0 : index
    %c0_1 = arith.constant 0 : index
    %1 = vector.load %arg8[%c0, %c0_0, %c0_1] : memref<18x18x128xf32, #tpu.memory_space<vmem>>, vector<18x1x128xf32>
    tpu.vector_store %arg8[%c0, %c0_0, %c0_1], %0 {strides = array<i32>} : memref<18x18x128xf32, #tpu.memory_space<vmem>>, vector<18x1x128xf32>,
    %c0_2 = arith.constant 0 : index
    %c17 = arith.constant 17 : index
    %c0_3 = arith.constant 0 : index
    %2 = vector.load %arg8[%c0_2, %c17, %c0_3] : memref<18x18x128xf32, #tpu.memory_space<vmem>>, vector<18x1x128xf32>
    tpu.vector_store %arg8[%c0_2, %c17, %c0_3], %0 {strides = array<i32>} : memref<18x18x128xf32, #tpu.memory_space<vmem>>, vector<18x1x128xf32>,
    %c0_4 = arith.constant 0 : index
    %c0_5 = arith.constant 0 : index
    %c0_6 = arith.constant 0 : index
    %c0_7 = arith.constant 0 : index
    %3 = vector.load %arg3[%c0_4, %c0_5, %c0_6, %c0_7] : memref<1x16x16x128xf32, #tpu.memory_space<vmem>>, vector<1x16x16x128xf32>
    %4 = vector.shape_cast %3 : vector<1x16x16x128xf32> to vector<16x16x128xf32>
    %c1 = arith.constant 1 : index
    %c1_8 = arith.constant 1 : index
    %c0_9 = arith.constant 0 : index
    %5 = vector.load %arg8[%c1, %c1_8, %c0_9] : memref<18x18x128xf32, #tpu.memory_space<vmem>>, vector<16x16x128xf32>
    tpu.vector_store %arg8[%c1, %c1_8, %c0_9], %4 {strides = array<i32>} : memref<18x18x128xf32, #tpu.memory_space<vmem>>, vector<16x16x128xf32>,
    %cst_10 = arith.constant 0.000000e+00 : f32
    %6 = vector.broadcast %cst_10 : f32 to vector<1x16x128xf32>
    %c0_i32 = arith.constant 0 : i32
    %7 = arith.cmpi eq, %arg1, %c0_i32 : i32
    %8 = arith.extui %7 : i1 to i32
    %c0_i32_11 = arith.constant 0 : i32
    %9 = arith.cmpi ne, %8, %c0_i32_11 : i32
    scf.if %9 {
      %c0_73 = arith.constant 0 : index
      %c1_74 = arith.constant 1 : index
      %c0_75 = arith.constant 0 : index
      %83 = vector.load %arg8[%c0_73, %c1_74, %c0_75] : memref<18x18x128xf32, #tpu.memory_space<vmem>>, vector<1x16x128xf32>
      tpu.vector_store %arg8[%c0_73, %c1_74, %c0_75], %6 {strides = array<i32>} : memref<18x18x128xf32, #tpu.memory_space<vmem>>, vector<1x16x128xf32>,
    } else {
    }
    %c0_i32_12 = arith.constant 0 : i32
    %10 = arith.cmpi sgt, %arg1, %c0_i32_12 : i32
    %11 = arith.extui %10 : i1 to i32
    %c0_i32_13 = arith.constant 0 : i32
    %12 = arith.cmpi ne, %11, %c0_i32_13 : i32
    scf.if %12 {
      %c0_73 = arith.constant 0 : index
      %c0_74 = arith.constant 0 : index
      %c0_75 = arith.constant 0 : index
      %c0_76 = arith.constant 0 : index
      %83 = vector.load %arg2[%c0_73, %c0_74, %c0_75, %c0_76] : memref<1x1x16x128xf32, #tpu.memory_space<vmem>>, vector<1x1x16x128xf32>
      %84 = vector.shape_cast %83 : vector<1x1x16x128xf32> to vector<1x16x128xf32>
      %c0_77 = arith.constant 0 : index
      %c1_78 = arith.constant 1 : index
      %c0_79 = arith.constant 0 : index
      %85 = vector.load %arg8[%c0_77, %c1_78, %c0_79] : memref<18x18x128xf32, #tpu.memory_space<vmem>>, vector<1x16x128xf32>
      tpu.vector_store %arg8[%c0_77, %c1_78, %c0_79], %84 {strides = array<i32>} : memref<18x18x128xf32, #tpu.memory_space<vmem>>, vector<1x16x128xf32>,
    } else {
    }
    %c0_i32_14 = arith.constant 0 : i32
    %13 = arith.cmpi eq, %arg1, %c0_i32_14 : i32
    %14 = arith.extui %13 : i1 to i32
    %c0_i32_15 = arith.constant 0 : i32
    %15 = arith.cmpi ne, %14, %c0_i32_15 : i32
    scf.if %15 {
      %c17_73 = arith.constant 17 : index
      %c1_74 = arith.constant 1 : index
      %c0_75 = arith.constant 0 : index
      %83 = vector.load %arg8[%c17_73, %c1_74, %c0_75] : memref<18x18x128xf32, #tpu.memory_space<vmem>>, vector<1x16x128xf32>
      tpu.vector_store %arg8[%c17_73, %c1_74, %c0_75], %6 {strides = array<i32>} : memref<18x18x128xf32, #tpu.memory_space<vmem>>, vector<1x16x128xf32>,
    } else {
    }
    %c0_i32_16 = arith.constant 0 : i32
    %16 = arith.cmpi slt, %arg1, %c0_i32_16 : i32
    %17 = arith.extui %16 : i1 to i32
    %c0_i32_17 = arith.constant 0 : i32
    %18 = arith.cmpi ne, %17, %c0_i32_17 : i32
    scf.if %18 {
      %c0_73 = arith.constant 0 : index
      %c0_74 = arith.constant 0 : index
      %c0_75 = arith.constant 0 : index
      %c0_76 = arith.constant 0 : index
      %83 = vector.load %arg4[%c0_73, %c0_74, %c0_75, %c0_76] : memref<1x1x16x128xf32, #tpu.memory_space<vmem>>, vector<1x1x16x128xf32>
      %84 = vector.shape_cast %83 : vector<1x1x16x128xf32> to vector<1x16x128xf32>
      %c17_77 = arith.constant 17 : index
      %c1_78 = arith.constant 1 : index
      %c0_79 = arith.constant 0 : index
      %85 = vector.load %arg8[%c17_77, %c1_78, %c0_79] : memref<18x18x128xf32, #tpu.memory_space<vmem>>, vector<1x16x128xf32>
      tpu.vector_store %arg8[%c17_77, %c1_78, %c0_79], %84 {strides = array<i32>} : memref<18x18x128xf32, #tpu.memory_space<vmem>>, vector<1x16x128xf32>,
    } else {
    }
    %c0_18 = arith.constant 0 : index
    %c0_19 = arith.constant 0 : index
    %c0_20 = arith.constant 0 : index
    %19 = vector.load %arg8[%c0_18, %c0_19, %c0_20] : memref<18x18x128xf32, #tpu.memory_space<vmem>>, vector<16x16x128xf32>
    %20 = vector.shape_cast %19 : vector<16x16x128xf32> to vector<256x128xf32>
    %21 = arith.truncf %20 : vector<256x128xf32> to vector<256x128xbf16>
    %c0_21 = arith.constant 0 : index
    %c0_22 = arith.constant 0 : index
    %22 = vector.load %arg5[%c0_21, %c0_22] : memref<1152x128xbf16, #tpu.memory_space<vmem>>, vector<128x128xbf16>
    %cst_23 = arith.constant dense<0.000000e+00> : vector<256x128xf32>
    %23 = tpu.matmul %21, %22, %cst_23 {dimension_numbers = #tpu.dot_dimension_numbers<[1], [0], [0], [1], [0, 0, 1, 1], [], []>} : vector<256x128xbf16>, vector<128x128xbf16>, vector<256x128xf32> -> vector<256x128xf32>
    %c0_24 = arith.constant 0 : index
    %c1_25 = arith.constant 1 : index
    %c0_26 = arith.constant 0 : index
    %24 = vector.load %arg8[%c0_24, %c1_25, %c0_26] : memref<18x18x128xf32, #tpu.memory_space<vmem>>, vector<16x16x128xf32>
    %25 = vector.shape_cast %24 : vector<16x16x128xf32> to vector<256x128xf32>
    %26 = arith.truncf %25 : vector<256x128xf32> to vector<256x128xbf16>
    %c128 = arith.constant 128 : index
    %c0_27 = arith.constant 0 : index
    %27 = vector.load %arg5[%c128, %c0_27] : memref<1152x128xbf16, #tpu.memory_space<vmem>>, vector<128x128xbf16>
    %cst_28 = arith.constant dense<0.000000e+00> : vector<256x128xf32>
    %28 = tpu.matmul %26, %27, %cst_28 {dimension_numbers = #tpu.dot_dimension_numbers<[1], [0], [0], [1], [0, 0, 1, 1], [], []>} : vector<256x128xbf16>, vector<128x128xbf16>, vector<256x128xf32> -> vector<256x128xf32>
    %29 = arith.addf %23, %28 : vector<256x128xf32>
    %c0_29 = arith.constant 0 : index
    %c2 = arith.constant 2 : index
    %c0_30 = arith.constant 0 : index
    %30 = vector.load %arg8[%c0_29, %c2, %c0_30] : memref<18x18x128xf32, #tpu.memory_space<vmem>>, vector<16x16x128xf32>
    %31 = vector.shape_cast %30 : vector<16x16x128xf32> to vector<256x128xf32>
    %32 = arith.truncf %31 : vector<256x128xf32> to vector<256x128xbf16>
    %c256 = arith.constant 256 : index
    %c0_31 = arith.constant 0 : index
    %33 = vector.load %arg5[%c256, %c0_31] : memref<1152x128xbf16, #tpu.memory_space<vmem>>, vector<128x128xbf16>
    %cst_32 = arith.constant dense<0.000000e+00> : vector<256x128xf32>
    %34 = tpu.matmul %32, %33, %cst_32 {dimension_numbers = #tpu.dot_dimension_numbers<[1], [0], [0], [1], [0, 0, 1, 1], [], []>} : vector<256x128xbf16>, vector<128x128xbf16>, vector<256x128xf32> -> vector<256x128xf32>
    %35 = arith.addf %29, %34 : vector<256x128xf32>
    %c1_33 = arith.constant 1 : index
    %c0_34 = arith.constant 0 : index
    %c0_35 = arith.constant 0 : index
    %36 = vector.load %arg8[%c1_33, %c0_34, %c0_35] : memref<18x18x128xf32, #tpu.memory_space<vmem>>, vector<16x16x128xf32>
    %37 = vector.shape_cast %36 : vector<16x16x128xf32> to vector<256x128xf32>
    %38 = arith.truncf %37 : vector<256x128xf32> to vector<256x128xbf16>
    %c384 = arith.constant 384 : index
    %c0_36 = arith.constant 0 : index
    %39 = vector.load %arg5[%c384, %c0_36] : memref<1152x128xbf16, #tpu.memory_space<vmem>>, vector<128x128xbf16>
    %cst_37 = arith.constant dense<0.000000e+00> : vector<256x128xf32>
    %40 = tpu.matmul %38, %39, %cst_37 {dimension_numbers = #tpu.dot_dimension_numbers<[1], [0], [0], [1], [0, 0, 1, 1], [], []>} : vector<256x128xbf16>, vector<128x128xbf16>, vector<256x128xf32> -> vector<256x128xf32>
    %41 = arith.addf %35, %40 : vector<256x128xf32>
    %c1_38 = arith.constant 1 : index
    %c1_39 = arith.constant 1 : index
    %c0_40 = arith.constant 0 : index
    %42 = vector.load %arg8[%c1_38, %c1_39, %c0_40] : memref<18x18x128xf32, #tpu.memory_space<vmem>>, vector<16x16x128xf32>
    %43 = vector.shape_cast %42 : vector<16x16x128xf32> to vector<256x128xf32>
    %44 = arith.truncf %43 : vector<256x128xf32> to vector<256x128xbf16>
    %c512 = arith.constant 512 : index
    %c0_41 = arith.constant 0 : index
    %45 = vector.load %arg5[%c512, %c0_41] : memref<1152x128xbf16, #tpu.memory_space<vmem>>, vector<128x128xbf16>
    %cst_42 = arith.constant dense<0.000000e+00> : vector<256x128xf32>
    %46 = tpu.matmul %44, %45, %cst_42 {dimension_numbers = #tpu.dot_dimension_numbers<[1], [0], [0], [1], [0, 0, 1, 1], [], []>} : vector<256x128xbf16>, vector<128x128xbf16>, vector<256x128xf32> -> vector<256x128xf32>
    %47 = arith.addf %41, %46 : vector<256x128xf32>
    %c1_43 = arith.constant 1 : index
    %c2_44 = arith.constant 2 : index
    %c0_45 = arith.constant 0 : index
    %48 = vector.load %arg8[%c1_43, %c2_44, %c0_45] : memref<18x18x128xf32, #tpu.memory_space<vmem>>, vector<16x16x128xf32>
    %49 = vector.shape_cast %48 : vector<16x16x128xf32> to vector<256x128xf32>
    %50 = arith.truncf %49 : vector<256x128xf32> to vector<256x128xbf16>
    %c640 = arith.constant 640 : index
    %c0_46 = arith.constant 0 : index
    %51 = vector.load %arg5[%c640, %c0_46] : memref<1152x128xbf16, #tpu.memory_space<vmem>>, vector<128x128xbf16>
    %cst_47 = arith.constant dense<0.000000e+00> : vector<256x128xf32>
    %52 = tpu.matmul %50, %51, %cst_47 {dimension_numbers = #tpu.dot_dimension_numbers<[1], [0], [0], [1], [0, 0, 1, 1], [], []>} : vector<256x128xbf16>, vector<128x128xbf16>, vector<256x128xf32> -> vector<256x128xf32>
    %53 = arith.addf %47, %52 : vector<256x128xf32>
    %c2_48 = arith.constant 2 : index
    %c0_49 = arith.constant 0 : index
    %c0_50 = arith.constant 0 : index
    %54 = vector.load %arg8[%c2_48, %c0_49, %c0_50] : memref<18x18x128xf32, #tpu.memory_space<vmem>>, vector<16x16x128xf32>
    %55 = vector.shape_cast %54 : vector<16x16x128xf32> to vector<256x128xf32>
    %56 = arith.truncf %55 : vector<256x128xf32> to vector<256x128xbf16>
    %c768 = arith.constant 768 : index
    %c0_51 = arith.constant 0 : index
    %57 = vector.load %arg5[%c768, %c0_51] : memref<1152x128xbf16, #tpu.memory_space<vmem>>, vector<128x128xbf16>
    %cst_52 = arith.constant dense<0.000000e+00> : vector<256x128xf32>
    %58 = tpu.matmul %56, %57, %cst_52 {dimension_numbers = #tpu.dot_dimension_numbers<[1], [0], [0], [1], [0, 0, 1, 1], [], []>} : vector<256x128xbf16>, vector<128x128xbf16>, vector<256x128xf32> -> vector<256x128xf32>
    %59 = arith.addf %53, %58 : vector<256x128xf32>
    %c2_53 = arith.constant 2 : index
    %c1_54 = arith.constant 1 : index
    %c0_55 = arith.constant 0 : index
    %60 = vector.load %arg8[%c2_53, %c1_54, %c0_55] : memref<18x18x128xf32, #tpu.memory_space<vmem>>, vector<16x16x128xf32>
    %61 = vector.shape_cast %60 : vector<16x16x128xf32> to vector<256x128xf32>
    %62 = arith.truncf %61 : vector<256x128xf32> to vector<256x128xbf16>
    %c896 = arith.constant 896 : index
    %c0_56 = arith.constant 0 : index
    %63 = vector.load %arg5[%c896, %c0_56] : memref<1152x128xbf16, #tpu.memory_space<vmem>>, vector<128x128xbf16>
    %cst_57 = arith.constant dense<0.000000e+00> : vector<256x128xf32>
    %64 = tpu.matmul %62, %63, %cst_57 {dimension_numbers = #tpu.dot_dimension_numbers<[1], [0], [0], [1], [0, 0, 1, 1], [], []>} : vector<256x128xbf16>, vector<128x128xbf16>, vector<256x128xf32> -> vector<256x128xf32>
    %65 = arith.addf %59, %64 : vector<256x128xf32>
    %c2_58 = arith.constant 2 : index
    %c2_59 = arith.constant 2 : index
    %c0_60 = arith.constant 0 : index
    %66 = vector.load %arg8[%c2_58, %c2_59, %c0_60] : memref<18x18x128xf32, #tpu.memory_space<vmem>>, vector<16x16x128xf32>
    %67 = vector.shape_cast %66 : vector<16x16x128xf32> to vector<256x128xf32>
    %68 = arith.truncf %67 : vector<256x128xf32> to vector<256x128xbf16>
    %c1024 = arith.constant 1024 : index
    %c0_61 = arith.constant 0 : index
    %69 = vector.load %arg5[%c1024, %c0_61] : memref<1152x128xbf16, #tpu.memory_space<vmem>>, vector<128x128xbf16>
    %cst_62 = arith.constant dense<0.000000e+00> : vector<256x128xf32>
    %70 = tpu.matmul %68, %69, %cst_62 {dimension_numbers = #tpu.dot_dimension_numbers<[1], [0], [0], [1], [0, 0, 1, 1], [], []>} : vector<256x128xbf16>, vector<128x128xbf16>, vector<256x128xf32> -> vector<256x128xf32>
    %71 = arith.addf %65, %70 : vector<256x128xf32>
    %72 = vector.shape_cast %71 : vector<256x128xf32> to vector<1x16x16x128xf32>
    %73 = arith.truncf %72 : vector<1x16x16x128xf32> to vector<1x16x16x128xbf16>
    %c0_63 = arith.constant 0 : index
    %c0_64 = arith.constant 0 : index
    %c0_65 = arith.constant 0 : index
    %c0_66 = arith.constant 0 : index
    %74 = vector.load %arg6[%c0_63, %c0_64, %c0_65, %c0_66] : memref<1x16x16x128xbf16, #tpu.memory_space<vmem>>, vector<1x16x16x128xbf16>
    tpu.vector_store %arg6[%c0_63, %c0_64, %c0_65, %c0_66], %73 {strides = array<i32>} : memref<1x16x16x128xbf16, #tpu.memory_space<vmem>>, vector<1x16x16x128xbf16>,
    %cst_67 = arith.constant dense<0.000000e+00> : vector<128xf32>
    %75 = vector.multi_reduction <add>, %71, %cst_67 [0] : vector<256x128xf32> to vector<128xf32>
    %76 = vector.shape_cast %75 : vector<128xf32> to vector<1x128xf32>
    %77 = arith.mulf %71, %71 : vector<256x128xf32>
    %cst_68 = arith.constant dense<0.000000e+00> : vector<128xf32>
    %78 = vector.multi_reduction <add>, %77, %cst_68 [0] : vector<256x128xf32> to vector<128xf32>
    %79 = vector.shape_cast %78 : vector<128xf32> to vector<1x128xf32>
    %80 = tpu.concatenate %76, %79 in 0 : vector<1x128xf32>, vector<1x128xf32> -> vector<2x128xf32>
    %81 = vector.shape_cast %80 : vector<2x128xf32> to vector<1x1x2x128xf32>
    %c0_69 = arith.constant 0 : index
    %c0_70 = arith.constant 0 : index
    %c0_71 = arith.constant 0 : index
    %c0_72 = arith.constant 0 : index
    %82 = vector.load %arg7[%c0_69, %c0_70, %c0_71, %c0_72] : memref<1x1x2x128xf32, #tpu.memory_space<vmem>>, vector<1x1x2x128xf32>
    tpu.vector_store %arg7[%c0_69, %c0_70, %c0_71, %c0_72], %81 {strides = array<i32>} : memref<1x1x2x128xf32, #tpu.memory_space<vmem>>, vector<1x1x2x128xf32>,
    return
  }
  func.func @transform_0(%arg0: i32, %arg1: i32) -> (i32, i32, i32, i32) {
    %c16_i32 = arith.constant 16 : i32
    %0 = arith.muli %arg1, %c16_i32 : i32
    %c1_i32 = arith.constant 1 : i32
    %1 = arith.subi %0, %c1_i32 : i32
    %c0_i32 = arith.constant 0 : i32
    %2 = arith.maxsi %1, %c0_i32 : i32
    %c0_i32_0 = arith.constant 0 : i32
    %c0_i32_1 = arith.constant 0 : i32
    %c0_i32_2 = arith.constant 0 : i32
    return %arg0, %2, %c0_i32_0, %c0_i32_1 : i32, i32, i32, i32
  }
  func.func @transform_1(%arg0: i32, %arg1: i32) -> (i32, i32, i32, i32) {
    %c0_i32 = arith.constant 0 : i32
    %c0_i32_0 = arith.constant 0 : i32
    %c0_i32_1 = arith.constant 0 : i32
    return %arg0, %arg1, %c0_i32, %c0_i32_0 : i32, i32, i32, i32
  }
  func.func @transform_2(%arg0: i32, %arg1: i32) -> (i32, i32, i32, i32) {
    %c1_i32 = arith.constant 1 : i32
    %0 = arith.addi %arg1, %c1_i32 : i32
    %c16_i32 = arith.constant 16 : i32
    %1 = arith.muli %0, %c16_i32 : i32
    %c15_i32 = arith.constant 15 : i32
    %2 = arith.minsi %1, %c15_i32 : i32
    %c0_i32 = arith.constant 0 : i32
    %c0_i32_0 = arith.constant 0 : i32
    %c0_i32_1 = arith.constant 0 : i32
    return %arg0, %2, %c0_i32, %c0_i32_0 : i32, i32, i32, i32
  }
  func.func @transform_3(%arg0: i32, %arg1: i32) -> (i32, i32) {
    %c0_i32 = arith.constant 0 : i32
    %c0_i32_0 = arith.constant 0 : i32
    %c0_i32_1 = arith.constant 0 : i32
    return %c0_i32, %c0_i32_0 : i32, i32
  }
  func.func @transform_4(%arg0: i32, %arg1: i32) -> (i32, i32, i32, i32) {
    %c0_i32 = arith.constant 0 : i32
    %c0_i32_0 = arith.constant 0 : i32
    %c0_i32_1 = arith.constant 0 : i32
    return %arg0, %arg1, %c0_i32, %c0_i32_0 : i32, i32, i32, i32
  }
  func.func @transform_5(%arg0: i32, %arg1: i32) -> (i32, i32, i32, i32) {
    %c0_i32 = arith.constant 0 : i32
    %c0_i32_0 = arith.constant 0 : i32
    %c0_i32_1 = arith.constant 0 : i32
    return %arg0, %arg1, %c0_i32, %c0_i32_0 : i32, i32, i32, i32
  }
}

module attributes {stable_mosaic.version = 11 : i64} {
  func.func @_bn_add_relu_kernel(%arg0: i32, %arg1: i32, %arg2: memref<1x16x16x128xbf16, #tpu.memory_space<vmem>>, %arg3: memref<1x16x16x128xf32, #tpu.memory_space<vmem>>, %arg4: memref<8x128xf32, #tpu.memory_space<vmem>>, %arg5: memref<1x16x16x128xf32, #tpu.memory_space<vmem>>) attributes {dimension_semantics = [#tpu.dimension_semantics<parallel>, #tpu.dimension_semantics<parallel>], iteration_bounds = array<i64: 2, 1>, scalar_prefetch = 0 : i64, scratch_operands = 0 : i64, tpu.core_type = #tpu.core_type<tc>, window_params = [{transform_indices = @transform_0, window_bounds = array<i64: 1, 16, 16, 128>}, {transform_indices = @transform_1, window_bounds = array<i64: 1, 16, 16, 128>}, {pipeline_mode = #tpu.pipeline_mode<synchronous>, transform_indices = @transform_2, window_bounds = array<i64: 8, 128>}, {transform_indices = @transform_3, window_bounds = array<i64: 1, 16, 16, 128>}]} {
    %c0 = arith.constant 0 : index
    %c0_0 = arith.constant 0 : index
    %0 = vector.load %arg4[%c0, %c0_0] : memref<8x128xf32, #tpu.memory_space<vmem>>, vector<1x128xf32>
    %1 = vector.shape_cast %0 : vector<1x128xf32> to vector<1x1x1x128xf32>
    %c1 = arith.constant 1 : index
    %c0_1 = arith.constant 0 : index
    %2 = vector.load %arg4[%c1, %c0_1] : memref<8x128xf32, #tpu.memory_space<vmem>>, vector<1x128xf32>
    %3 = vector.shape_cast %2 : vector<1x128xf32> to vector<1x1x1x128xf32>
    %c0_2 = arith.constant 0 : index
    %c0_3 = arith.constant 0 : index
    %c0_4 = arith.constant 0 : index
    %c0_5 = arith.constant 0 : index
    %4 = vector.load %arg2[%c0_2, %c0_3, %c0_4, %c0_5] : memref<1x16x16x128xbf16, #tpu.memory_space<vmem>>, vector<1x16x16x128xbf16>
    %5 = arith.extf %4 : vector<1x16x16x128xbf16> to vector<1x16x16x128xf32>
    %6 = vector.broadcast %1 : vector<1x1x1x128xf32> to vector<1x16x16x128xf32>
    %7 = arith.mulf %5, %6 : vector<1x16x16x128xf32>
    %8 = vector.broadcast %3 : vector<1x1x1x128xf32> to vector<1x16x16x128xf32>
    %9 = arith.addf %7, %8 : vector<1x16x16x128xf32>
    %c0_6 = arith.constant 0 : index
    %c0_7 = arith.constant 0 : index
    %c0_8 = arith.constant 0 : index
    %c0_9 = arith.constant 0 : index
    %10 = vector.load %arg3[%c0_6, %c0_7, %c0_8, %c0_9] : memref<1x16x16x128xf32, #tpu.memory_space<vmem>>, vector<1x16x16x128xf32>
    %11 = arith.addf %9, %10 : vector<1x16x16x128xf32>
    %cst = arith.constant 0.000000e+00 : f32
    %12 = vector.broadcast %cst : f32 to vector<1x16x16x128xf32>
    %13 = arith.maximumf %11, %12 : vector<1x16x16x128xf32>
    %c0_10 = arith.constant 0 : index
    %c0_11 = arith.constant 0 : index
    %c0_12 = arith.constant 0 : index
    %c0_13 = arith.constant 0 : index
    %14 = vector.load %arg5[%c0_10, %c0_11, %c0_12, %c0_13] : memref<1x16x16x128xf32, #tpu.memory_space<vmem>>, vector<1x16x16x128xf32>
    tpu.vector_store %arg5[%c0_10, %c0_11, %c0_12, %c0_13], %13 {strides = array<i32>} : memref<1x16x16x128xf32, #tpu.memory_space<vmem>>, vector<1x16x16x128xf32>,
    return
  }
  func.func @transform_0(%arg0: i32, %arg1: i32) -> (i32, i32, i32, i32) {
    %c0_i32 = arith.constant 0 : i32
    %c0_i32_0 = arith.constant 0 : i32
    %c0_i32_1 = arith.constant 0 : i32
    return %arg0, %arg1, %c0_i32, %c0_i32_0 : i32, i32, i32, i32
  }
  func.func @transform_1(%arg0: i32, %arg1: i32) -> (i32, i32, i32, i32) {
    %c0_i32 = arith.constant 0 : i32
    %c0_i32_0 = arith.constant 0 : i32
    %c0_i32_1 = arith.constant 0 : i32
    return %arg0, %arg1, %c0_i32, %c0_i32_0 : i32, i32, i32, i32
  }
  func.func @transform_2(%arg0: i32, %arg1: i32) -> (i32, i32) {
    %c0_i32 = arith.constant 0 : i32
    %c0_i32_0 = arith.constant 0 : i32
    %c0_i32_1 = arith.constant 0 : i32
    return %c0_i32, %c0_i32_0 : i32, i32
  }
  func.func @transform_3(%arg0: i32, %arg1: i32) -> (i32, i32, i32, i32) {
    %c0_i32 = arith.constant 0 : i32
    %c0_i32_0 = arith.constant 0 : i32
    %c0_i32_1 = arith.constant 0 : i32
    return %arg0, %arg1, %c0_i32, %c0_i32_0 : i32, i32, i32, i32
  }
}

module attributes {stable_mosaic.version = 11 : i64} {
  func.func @_conv2_kernel(%arg0: i32, %arg1: i32, %arg2: memref<1x1x16x128xbf16, #tpu.memory_space<vmem>>, %arg3: memref<1x16x16x128xbf16, #tpu.memory_space<vmem>>, %arg4: memref<1x1x16x128xbf16, #tpu.memory_space<vmem>>, %arg5: memref<8x128xf32, #tpu.memory_space<vmem>>, %arg6: memref<1152x128xbf16, #tpu.memory_space<vmem>>, %arg7: memref<1x16x16x128xbf16, #tpu.memory_space<vmem>>, %arg8: memref<1x1x2x128xf32, #tpu.memory_space<vmem>>, %arg9: memref<18x18x128xf32, #tpu.memory_space<vmem>>) attributes {dimension_semantics = [#tpu.dimension_semantics<parallel>, #tpu.dimension_semantics<parallel>], iteration_bounds = array<i64: 2, 1>, scalar_prefetch = 0 : i64, scratch_operands = 1 : i64, tpu.core_type = #tpu.core_type<tc>, window_params = [{transform_indices = @transform_0, window_bounds = array<i64: 1, 1, 16, 128>}, {transform_indices = @transform_1, window_bounds = array<i64: 1, 16, 16, 128>}, {transform_indices = @transform_2, window_bounds = array<i64: 1, 1, 16, 128>}, {pipeline_mode = #tpu.pipeline_mode<synchronous>, transform_indices = @transform_3, window_bounds = array<i64: 8, 128>}, {pipeline_mode = #tpu.pipeline_mode<synchronous>, transform_indices = @transform_4, window_bounds = array<i64: 1152, 128>}, {transform_indices = @transform_5, window_bounds = array<i64: 1, 16, 16, 128>}, {transform_indices = @transform_6, window_bounds = array<i64: 1, 1, 2, 128>}]} {
    %c0 = arith.constant 0 : index
    %c0_0 = arith.constant 0 : index
    %0 = vector.load %arg5[%c0, %c0_0] : memref<8x128xf32, #tpu.memory_space<vmem>>, vector<1x128xf32>
    %1 = vector.shape_cast %0 : vector<1x128xf32> to vector<1x1x128xf32>
    %c1 = arith.constant 1 : index
    %c0_1 = arith.constant 0 : index
    %2 = vector.load %arg5[%c1, %c0_1] : memref<8x128xf32, #tpu.memory_space<vmem>>, vector<1x128xf32>
    %3 = vector.shape_cast %2 : vector<1x128xf32> to vector<1x1x128xf32>
    %cst = arith.constant 0.000000e+00 : f32
    %4 = vector.broadcast %cst : f32 to vector<18x1x128xf32>
    %c0_2 = arith.constant 0 : index
    %c0_3 = arith.constant 0 : index
    %c0_4 = arith.constant 0 : index
    %5 = vector.load %arg9[%c0_2, %c0_3, %c0_4] : memref<18x18x128xf32, #tpu.memory_space<vmem>>, vector<18x1x128xf32>
    tpu.vector_store %arg9[%c0_2, %c0_3, %c0_4], %4 {strides = array<i32>} : memref<18x18x128xf32, #tpu.memory_space<vmem>>, vector<18x1x128xf32>,
    %c0_5 = arith.constant 0 : index
    %c17 = arith.constant 17 : index
    %c0_6 = arith.constant 0 : index
    %6 = vector.load %arg9[%c0_5, %c17, %c0_6] : memref<18x18x128xf32, #tpu.memory_space<vmem>>, vector<18x1x128xf32>
    tpu.vector_store %arg9[%c0_5, %c17, %c0_6], %4 {strides = array<i32>} : memref<18x18x128xf32, #tpu.memory_space<vmem>>, vector<18x1x128xf32>,
    %c0_7 = arith.constant 0 : index
    %c0_8 = arith.constant 0 : index
    %c0_9 = arith.constant 0 : index
    %c0_10 = arith.constant 0 : index
    %7 = vector.load %arg3[%c0_7, %c0_8, %c0_9, %c0_10] : memref<1x16x16x128xbf16, #tpu.memory_space<vmem>>, vector<1x16x16x128xbf16>
    %8 = vector.shape_cast %7 : vector<1x16x16x128xbf16> to vector<16x16x128xbf16>
    %9 = arith.extf %8 : vector<16x16x128xbf16> to vector<16x16x128xf32>
    %10 = vector.broadcast %1 : vector<1x1x128xf32> to vector<16x16x128xf32>
    %11 = arith.mulf %9, %10 : vector<16x16x128xf32>
    %12 = vector.broadcast %3 : vector<1x1x128xf32> to vector<16x16x128xf32>
    %13 = arith.addf %11, %12 : vector<16x16x128xf32>
    %cst_11 = arith.constant 0.000000e+00 : f32
    %14 = vector.broadcast %cst_11 : f32 to vector<16x16x128xf32>
    %15 = arith.maximumf %13, %14 : vector<16x16x128xf32>
    %c1_12 = arith.constant 1 : index
    %c1_13 = arith.constant 1 : index
    %c0_14 = arith.constant 0 : index
    %16 = vector.load %arg9[%c1_12, %c1_13, %c0_14] : memref<18x18x128xf32, #tpu.memory_space<vmem>>, vector<16x16x128xf32>
    tpu.vector_store %arg9[%c1_12, %c1_13, %c0_14], %15 {strides = array<i32>} : memref<18x18x128xf32, #tpu.memory_space<vmem>>, vector<16x16x128xf32>,
    %cst_15 = arith.constant 0.000000e+00 : f32
    %17 = vector.broadcast %cst_15 : f32 to vector<1x16x128xf32>
    %c0_i32 = arith.constant 0 : i32
    %18 = arith.cmpi eq, %arg1, %c0_i32 : i32
    %19 = arith.extui %18 : i1 to i32
    %c0_i32_16 = arith.constant 0 : i32
    %20 = arith.cmpi ne, %19, %c0_i32_16 : i32
    scf.if %20 {
      %c0_78 = arith.constant 0 : index
      %c1_79 = arith.constant 1 : index
      %c0_80 = arith.constant 0 : index
      %94 = vector.load %arg9[%c0_78, %c1_79, %c0_80] : memref<18x18x128xf32, #tpu.memory_space<vmem>>, vector<1x16x128xf32>
      tpu.vector_store %arg9[%c0_78, %c1_79, %c0_80], %17 {strides = array<i32>} : memref<18x18x128xf32, #tpu.memory_space<vmem>>, vector<1x16x128xf32>,
    } else {
    }
    %c0_i32_17 = arith.constant 0 : i32
    %21 = arith.cmpi sgt, %arg1, %c0_i32_17 : i32
    %22 = arith.extui %21 : i1 to i32
    %c0_i32_18 = arith.constant 0 : i32
    %23 = arith.cmpi ne, %22, %c0_i32_18 : i32
    scf.if %23 {
      %c0_78 = arith.constant 0 : index
      %c0_79 = arith.constant 0 : index
      %c0_80 = arith.constant 0 : index
      %c0_81 = arith.constant 0 : index
      %94 = vector.load %arg2[%c0_78, %c0_79, %c0_80, %c0_81] : memref<1x1x16x128xbf16, #tpu.memory_space<vmem>>, vector<1x1x16x128xbf16>
      %95 = vector.shape_cast %94 : vector<1x1x16x128xbf16> to vector<1x16x128xbf16>
      %96 = arith.extf %95 : vector<1x16x128xbf16> to vector<1x16x128xf32>
      %97 = vector.broadcast %1 : vector<1x1x128xf32> to vector<1x16x128xf32>
      %98 = arith.mulf %96, %97 : vector<1x16x128xf32>
      %99 = vector.broadcast %3 : vector<1x1x128xf32> to vector<1x16x128xf32>
      %100 = arith.addf %98, %99 : vector<1x16x128xf32>
      %cst_82 = arith.constant 0.000000e+00 : f32
      %101 = vector.broadcast %cst_82 : f32 to vector<1x16x128xf32>
      %102 = arith.maximumf %100, %101 : vector<1x16x128xf32>
      %c0_83 = arith.constant 0 : index
      %c1_84 = arith.constant 1 : index
      %c0_85 = arith.constant 0 : index
      %103 = vector.load %arg9[%c0_83, %c1_84, %c0_85] : memref<18x18x128xf32, #tpu.memory_space<vmem>>, vector<1x16x128xf32>
      tpu.vector_store %arg9[%c0_83, %c1_84, %c0_85], %102 {strides = array<i32>} : memref<18x18x128xf32, #tpu.memory_space<vmem>>, vector<1x16x128xf32>,
    } else {
    }
    %c0_i32_19 = arith.constant 0 : i32
    %24 = arith.cmpi eq, %arg1, %c0_i32_19 : i32
    %25 = arith.extui %24 : i1 to i32
    %c0_i32_20 = arith.constant 0 : i32
    %26 = arith.cmpi ne, %25, %c0_i32_20 : i32
    scf.if %26 {
      %c17_78 = arith.constant 17 : index
      %c1_79 = arith.constant 1 : index
      %c0_80 = arith.constant 0 : index
      %94 = vector.load %arg9[%c17_78, %c1_79, %c0_80] : memref<18x18x128xf32, #tpu.memory_space<vmem>>, vector<1x16x128xf32>
      tpu.vector_store %arg9[%c17_78, %c1_79, %c0_80], %17 {strides = array<i32>} : memref<18x18x128xf32, #tpu.memory_space<vmem>>, vector<1x16x128xf32>,
    } else {
    }
    %c0_i32_21 = arith.constant 0 : i32
    %27 = arith.cmpi slt, %arg1, %c0_i32_21 : i32
    %28 = arith.extui %27 : i1 to i32
    %c0_i32_22 = arith.constant 0 : i32
    %29 = arith.cmpi ne, %28, %c0_i32_22 : i32
    scf.if %29 {
      %c0_78 = arith.constant 0 : index
      %c0_79 = arith.constant 0 : index
      %c0_80 = arith.constant 0 : index
      %c0_81 = arith.constant 0 : index
      %94 = vector.load %arg4[%c0_78, %c0_79, %c0_80, %c0_81] : memref<1x1x16x128xbf16, #tpu.memory_space<vmem>>, vector<1x1x16x128xbf16>
      %95 = vector.shape_cast %94 : vector<1x1x16x128xbf16> to vector<1x16x128xbf16>
      %96 = arith.extf %95 : vector<1x16x128xbf16> to vector<1x16x128xf32>
      %97 = vector.broadcast %1 : vector<1x1x128xf32> to vector<1x16x128xf32>
      %98 = arith.mulf %96, %97 : vector<1x16x128xf32>
      %99 = vector.broadcast %3 : vector<1x1x128xf32> to vector<1x16x128xf32>
      %100 = arith.addf %98, %99 : vector<1x16x128xf32>
      %cst_82 = arith.constant 0.000000e+00 : f32
      %101 = vector.broadcast %cst_82 : f32 to vector<1x16x128xf32>
      %102 = arith.maximumf %100, %101 : vector<1x16x128xf32>
      %c17_83 = arith.constant 17 : index
      %c1_84 = arith.constant 1 : index
      %c0_85 = arith.constant 0 : index
      %103 = vector.load %arg9[%c17_83, %c1_84, %c0_85] : memref<18x18x128xf32, #tpu.memory_space<vmem>>, vector<1x16x128xf32>
      tpu.vector_store %arg9[%c17_83, %c1_84, %c0_85], %102 {strides = array<i32>} : memref<18x18x128xf32, #tpu.memory_space<vmem>>, vector<1x16x128xf32>,
    } else {
    }
    %c0_23 = arith.constant 0 : index
    %c0_24 = arith.constant 0 : index
    %c0_25 = arith.constant 0 : index
    %30 = vector.load %arg9[%c0_23, %c0_24, %c0_25] : memref<18x18x128xf32, #tpu.memory_space<vmem>>, vector<16x16x128xf32>
    %31 = vector.shape_cast %30 : vector<16x16x128xf32> to vector<256x128xf32>
    %32 = arith.truncf %31 : vector<256x128xf32> to vector<256x128xbf16>
    %c0_26 = arith.constant 0 : index
    %c0_27 = arith.constant 0 : index
    %33 = vector.load %arg6[%c0_26, %c0_27] : memref<1152x128xbf16, #tpu.memory_space<vmem>>, vector<128x128xbf16>
    %cst_28 = arith.constant dense<0.000000e+00> : vector<256x128xf32>
    %34 = tpu.matmul %32, %33, %cst_28 {dimension_numbers = #tpu.dot_dimension_numbers<[1], [0], [0], [1], [0, 0, 1, 1], [], []>} : vector<256x128xbf16>, vector<128x128xbf16>, vector<256x128xf32> -> vector<256x128xf32>
    %c0_29 = arith.constant 0 : index
    %c1_30 = arith.constant 1 : index
    %c0_31 = arith.constant 0 : index
    %35 = vector.load %arg9[%c0_29, %c1_30, %c0_31] : memref<18x18x128xf32, #tpu.memory_space<vmem>>, vector<16x16x128xf32>
    %36 = vector.shape_cast %35 : vector<16x16x128xf32> to vector<256x128xf32>
    %37 = arith.truncf %36 : vector<256x128xf32> to vector<256x128xbf16>
    %c128 = arith.constant 128 : index
    %c0_32 = arith.constant 0 : index
    %38 = vector.load %arg6[%c128, %c0_32] : memref<1152x128xbf16, #tpu.memory_space<vmem>>, vector<128x128xbf16>
    %cst_33 = arith.constant dense<0.000000e+00> : vector<256x128xf32>
    %39 = tpu.matmul %37, %38, %cst_33 {dimension_numbers = #tpu.dot_dimension_numbers<[1], [0], [0], [1], [0, 0, 1, 1], [], []>} : vector<256x128xbf16>, vector<128x128xbf16>, vector<256x128xf32> -> vector<256x128xf32>
    %40 = arith.addf %34, %39 : vector<256x128xf32>
    %c0_34 = arith.constant 0 : index
    %c2 = arith.constant 2 : index
    %c0_35 = arith.constant 0 : index
    %41 = vector.load %arg9[%c0_34, %c2, %c0_35] : memref<18x18x128xf32, #tpu.memory_space<vmem>>, vector<16x16x128xf32>
    %42 = vector.shape_cast %41 : vector<16x16x128xf32> to vector<256x128xf32>
    %43 = arith.truncf %42 : vector<256x128xf32> to vector<256x128xbf16>
    %c256 = arith.constant 256 : index
    %c0_36 = arith.constant 0 : index
    %44 = vector.load %arg6[%c256, %c0_36] : memref<1152x128xbf16, #tpu.memory_space<vmem>>, vector<128x128xbf16>
    %cst_37 = arith.constant dense<0.000000e+00> : vector<256x128xf32>
    %45 = tpu.matmul %43, %44, %cst_37 {dimension_numbers = #tpu.dot_dimension_numbers<[1], [0], [0], [1], [0, 0, 1, 1], [], []>} : vector<256x128xbf16>, vector<128x128xbf16>, vector<256x128xf32> -> vector<256x128xf32>
    %46 = arith.addf %40, %45 : vector<256x128xf32>
    %c1_38 = arith.constant 1 : index
    %c0_39 = arith.constant 0 : index
    %c0_40 = arith.constant 0 : index
    %47 = vector.load %arg9[%c1_38, %c0_39, %c0_40] : memref<18x18x128xf32, #tpu.memory_space<vmem>>, vector<16x16x128xf32>
    %48 = vector.shape_cast %47 : vector<16x16x128xf32> to vector<256x128xf32>
    %49 = arith.truncf %48 : vector<256x128xf32> to vector<256x128xbf16>
    %c384 = arith.constant 384 : index
    %c0_41 = arith.constant 0 : index
    %50 = vector.load %arg6[%c384, %c0_41] : memref<1152x128xbf16, #tpu.memory_space<vmem>>, vector<128x128xbf16>
    %cst_42 = arith.constant dense<0.000000e+00> : vector<256x128xf32>
    %51 = tpu.matmul %49, %50, %cst_42 {dimension_numbers = #tpu.dot_dimension_numbers<[1], [0], [0], [1], [0, 0, 1, 1], [], []>} : vector<256x128xbf16>, vector<128x128xbf16>, vector<256x128xf32> -> vector<256x128xf32>
    %52 = arith.addf %46, %51 : vector<256x128xf32>
    %c1_43 = arith.constant 1 : index
    %c1_44 = arith.constant 1 : index
    %c0_45 = arith.constant 0 : index
    %53 = vector.load %arg9[%c1_43, %c1_44, %c0_45] : memref<18x18x128xf32, #tpu.memory_space<vmem>>, vector<16x16x128xf32>
    %54 = vector.shape_cast %53 : vector<16x16x128xf32> to vector<256x128xf32>
    %55 = arith.truncf %54 : vector<256x128xf32> to vector<256x128xbf16>
    %c512 = arith.constant 512 : index
    %c0_46 = arith.constant 0 : index
    %56 = vector.load %arg6[%c512, %c0_46] : memref<1152x128xbf16, #tpu.memory_space<vmem>>, vector<128x128xbf16>
    %cst_47 = arith.constant dense<0.000000e+00> : vector<256x128xf32>
    %57 = tpu.matmul %55, %56, %cst_47 {dimension_numbers = #tpu.dot_dimension_numbers<[1], [0], [0], [1], [0, 0, 1, 1], [], []>} : vector<256x128xbf16>, vector<128x128xbf16>, vector<256x128xf32> -> vector<256x128xf32>
    %58 = arith.addf %52, %57 : vector<256x128xf32>
    %c1_48 = arith.constant 1 : index
    %c2_49 = arith.constant 2 : index
    %c0_50 = arith.constant 0 : index
    %59 = vector.load %arg9[%c1_48, %c2_49, %c0_50] : memref<18x18x128xf32, #tpu.memory_space<vmem>>, vector<16x16x128xf32>
    %60 = vector.shape_cast %59 : vector<16x16x128xf32> to vector<256x128xf32>
    %61 = arith.truncf %60 : vector<256x128xf32> to vector<256x128xbf16>
    %c640 = arith.constant 640 : index
    %c0_51 = arith.constant 0 : index
    %62 = vector.load %arg6[%c640, %c0_51] : memref<1152x128xbf16, #tpu.memory_space<vmem>>, vector<128x128xbf16>
    %cst_52 = arith.constant dense<0.000000e+00> : vector<256x128xf32>
    %63 = tpu.matmul %61, %62, %cst_52 {dimension_numbers = #tpu.dot_dimension_numbers<[1], [0], [0], [1], [0, 0, 1, 1], [], []>} : vector<256x128xbf16>, vector<128x128xbf16>, vector<256x128xf32> -> vector<256x128xf32>
    %64 = arith.addf %58, %63 : vector<256x128xf32>
    %c2_53 = arith.constant 2 : index
    %c0_54 = arith.constant 0 : index
    %c0_55 = arith.constant 0 : index
    %65 = vector.load %arg9[%c2_53, %c0_54, %c0_55] : memref<18x18x128xf32, #tpu.memory_space<vmem>>, vector<16x16x128xf32>
    %66 = vector.shape_cast %65 : vector<16x16x128xf32> to vector<256x128xf32>
    %67 = arith.truncf %66 : vector<256x128xf32> to vector<256x128xbf16>
    %c768 = arith.constant 768 : index
    %c0_56 = arith.constant 0 : index
    %68 = vector.load %arg6[%c768, %c0_56] : memref<1152x128xbf16, #tpu.memory_space<vmem>>, vector<128x128xbf16>
    %cst_57 = arith.constant dense<0.000000e+00> : vector<256x128xf32>
    %69 = tpu.matmul %67, %68, %cst_57 {dimension_numbers = #tpu.dot_dimension_numbers<[1], [0], [0], [1], [0, 0, 1, 1], [], []>} : vector<256x128xbf16>, vector<128x128xbf16>, vector<256x128xf32> -> vector<256x128xf32>
    %70 = arith.addf %64, %69 : vector<256x128xf32>
    %c2_58 = arith.constant 2 : index
    %c1_59 = arith.constant 1 : index
    %c0_60 = arith.constant 0 : index
    %71 = vector.load %arg9[%c2_58, %c1_59, %c0_60] : memref<18x18x128xf32, #tpu.memory_space<vmem>>, vector<16x16x128xf32>
    %72 = vector.shape_cast %71 : vector<16x16x128xf32> to vector<256x128xf32>
    %73 = arith.truncf %72 : vector<256x128xf32> to vector<256x128xbf16>
    %c896 = arith.constant 896 : index
    %c0_61 = arith.constant 0 : index
    %74 = vector.load %arg6[%c896, %c0_61] : memref<1152x128xbf16, #tpu.memory_space<vmem>>, vector<128x128xbf16>
    %cst_62 = arith.constant dense<0.000000e+00> : vector<256x128xf32>
    %75 = tpu.matmul %73, %74, %cst_62 {dimension_numbers = #tpu.dot_dimension_numbers<[1], [0], [0], [1], [0, 0, 1, 1], [], []>} : vector<256x128xbf16>, vector<128x128xbf16>, vector<256x128xf32> -> vector<256x128xf32>
    %76 = arith.addf %70, %75 : vector<256x128xf32>
    %c2_63 = arith.constant 2 : index
    %c2_64 = arith.constant 2 : index
    %c0_65 = arith.constant 0 : index
    %77 = vector.load %arg9[%c2_63, %c2_64, %c0_65] : memref<18x18x128xf32, #tpu.memory_space<vmem>>, vector<16x16x128xf32>
    %78 = vector.shape_cast %77 : vector<16x16x128xf32> to vector<256x128xf32>
    %79 = arith.truncf %78 : vector<256x128xf32> to vector<256x128xbf16>
    %c1024 = arith.constant 1024 : index
    %c0_66 = arith.constant 0 : index
    %80 = vector.load %arg6[%c1024, %c0_66] : memref<1152x128xbf16, #tpu.memory_space<vmem>>, vector<128x128xbf16>
    %cst_67 = arith.constant dense<0.000000e+00> : vector<256x128xf32>
    %81 = tpu.matmul %79, %80, %cst_67 {dimension_numbers = #tpu.dot_dimension_numbers<[1], [0], [0], [1], [0, 0, 1, 1], [], []>} : vector<256x128xbf16>, vector<128x128xbf16>, vector<256x128xf32> -> vector<256x128xf32>
    %82 = arith.addf %76, %81 : vector<256x128xf32>
    %83 = vector.shape_cast %82 : vector<256x128xf32> to vector<1x16x16x128xf32>
    %84 = arith.truncf %83 : vector<1x16x16x128xf32> to vector<1x16x16x128xbf16>
    %c0_68 = arith.constant 0 : index
    %c0_69 = arith.constant 0 : index
    %c0_70 = arith.constant 0 : index
    %c0_71 = arith.constant 0 : index
    %85 = vector.load %arg7[%c0_68, %c0_69, %c0_70, %c0_71] : memref<1x16x16x128xbf16, #tpu.memory_space<vmem>>, vector<1x16x16x128xbf16>
    tpu.vector_store %arg7[%c0_68, %c0_69, %c0_70, %c0_71], %84 {strides = array<i32>} : memref<1x16x16x128xbf16, #tpu.memory_space<vmem>>, vector<1x16x16x128xbf16>,
    %cst_72 = arith.constant dense<0.000000e+00> : vector<128xf32>
    %86 = vector.multi_reduction <add>, %82, %cst_72 [0] : vector<256x128xf32> to vector<128xf32>
    %87 = vector.shape_cast %86 : vector<128xf32> to vector<1x128xf32>
    %88 = arith.mulf %82, %82 : vector<256x128xf32>
    %cst_73 = arith.constant dense<0.000000e+00> : vector<128xf32>
    %89 = vector.multi_reduction <add>, %88, %cst_73 [0] : vector<256x128xf32> to vector<128xf32>
    %90 = vector.shape_cast %89 : vector<128xf32> to vector<1x128xf32>
    %91 = tpu.concatenate %87, %90 in 0 : vector<1x128xf32>, vector<1x128xf32> -> vector<2x128xf32>
    %92 = vector.shape_cast %91 : vector<2x128xf32> to vector<1x1x2x128xf32>
    %c0_74 = arith.constant 0 : index
    %c0_75 = arith.constant 0 : index
    %c0_76 = arith.constant 0 : index
    %c0_77 = arith.constant 0 : index
    %93 = vector.load %arg8[%c0_74, %c0_75, %c0_76, %c0_77] : memref<1x1x2x128xf32, #tpu.memory_space<vmem>>, vector<1x1x2x128xf32>
    tpu.vector_store %arg8[%c0_74, %c0_75, %c0_76, %c0_77], %92 {strides = array<i32>} : memref<1x1x2x128xf32, #tpu.memory_space<vmem>>, vector<1x1x2x128xf32>,
    return
  }
  func.func @transform_0(%arg0: i32, %arg1: i32) -> (i32, i32, i32, i32) {
    %c16_i32 = arith.constant 16 : i32
    %0 = arith.muli %arg1, %c16_i32 : i32
    %c1_i32 = arith.constant 1 : i32
    %1 = arith.subi %0, %c1_i32 : i32
    %c0_i32 = arith.constant 0 : i32
    %2 = arith.maxsi %1, %c0_i32 : i32
    %c0_i32_0 = arith.constant 0 : i32
    %c0_i32_1 = arith.constant 0 : i32
    %c0_i32_2 = arith.constant 0 : i32
    return %arg0, %2, %c0_i32_0, %c0_i32_1 : i32, i32, i32, i32
  }
  func.func @transform_1(%arg0: i32, %arg1: i32) -> (i32, i32, i32, i32) {
    %c0_i32 = arith.constant 0 : i32
    %c0_i32_0 = arith.constant 0 : i32
    %c0_i32_1 = arith.constant 0 : i32
    return %arg0, %arg1, %c0_i32, %c0_i32_0 : i32, i32, i32, i32
  }
  func.func @transform_2(%arg0: i32, %arg1: i32) -> (i32, i32, i32, i32) {
    %c1_i32 = arith.constant 1 : i32
    %0 = arith.addi %arg1, %c1_i32 : i32
    %c16_i32 = arith.constant 16 : i32
    %1 = arith.muli %0, %c16_i32 : i32
    %c15_i32 = arith.constant 15 : i32
    %2 = arith.minsi %1, %c15_i32 : i32
    %c0_i32 = arith.constant 0 : i32
    %c0_i32_0 = arith.constant 0 : i32
    %c0_i32_1 = arith.constant 0 : i32
    return %arg0, %2, %c0_i32, %c0_i32_0 : i32, i32, i32, i32
  }
  func.func @transform_3(%arg0: i32, %arg1: i32) -> (i32, i32) {
    %c0_i32 = arith.constant 0 : i32
    %c0_i32_0 = arith.constant 0 : i32
    %c0_i32_1 = arith.constant 0 : i32
    return %c0_i32, %c0_i32_0 : i32, i32
  }
  func.func @transform_4(%arg0: i32, %arg1: i32) -> (i32, i32) {
    %c0_i32 = arith.constant 0 : i32
    %c0_i32_0 = arith.constant 0 : i32
    %c0_i32_1 = arith.constant 0 : i32
    return %c0_i32, %c0_i32_0 : i32, i32
  }
  func.func @transform_5(%arg0: i32, %arg1: i32) -> (i32, i32, i32, i32) {
    %c0_i32 = arith.constant 0 : i32
    %c0_i32_0 = arith.constant 0 : i32
    %c0_i32_1 = arith.constant 0 : i32
    return %arg0, %arg1, %c0_i32, %c0_i32_0 : i32, i32, i32, i32
  }
  func.func @transform_6(%arg0: i32, %arg1: i32) -> (i32, i32, i32, i32) {
    %c0_i32 = arith.constant 0 : i32
    %c0_i32_0 = arith.constant 0 : i32
    %c0_i32_1 = arith.constant 0 : i32
    return %arg0, %arg1, %c0_i32, %c0_i32_0 : i32, i32, i32, i32
  }
}

</mosaic_0001>

<bundles_post_ra>
// kernel: resblock_forward.5
= control target key start
LH: loop header
LB: loop body
LE: loop exit
PB: predicated region body
PF: predicated region fallthrough
CT: control target
= control target key end

     0   :  { %s796_s12 = smov 0   ;;  %s798_s13 = smov 0   ;;  %s1000_s0 = inlined_call_operand.vmem [shape: bf16[2,16,16,128], index: 0, kind: input, shape index: {}]   ;;  %s1001_s1 = inlined_call_operand.vmem [shape: f32[2,16,16,128], index: 1, kind: input, shape index: {}]   ;;  %s1002_s2 = inlined_call_operand.vmem [shape: f32[8,128], index: 2, kind: input, shape index: {}]   ;;  %s1003_s3 = inlined_call_operand.vmem [shape: f32[2,16,16,128], index: 3, kind: output, shape index: {}]  }
   0x1   :  { %s800_s14 = smov 0  }
   0x2 LB: > { %s25_s15 = sadd.s32 1, %s770_s13  ;;  %p635_p0 = scmp.ge.s32.totalorder %s774_s14, 1  ;;  %s774_s14 = sphi %s800_s14, %s13_s14   ;;  %s770_s13 = sphi %s798_s13, %s1005_s13   ;;  %s766_s12 = sphi %s796_s12, %s1004_s12  }
   0x3   : > { %p27_p1 = scmp.ge.s32.totalorder %s25_s15, 2  ;;  %p177_p2 = scmp.lt.s32.totalorder %s774_s14, 3 }
   0x5   : > { %s1007_s15 = smov (%p27_p1, %s25_s15), 0  ;;  %p178_p3 = pnand %p635_p0, %p177_p2 }
   0x6   : > { %p222_p4 = scmp.lt.s32.totalorder (!%p178_p3), %s766_s12, 1 }
   0x7   : > { %181 = sbr.rel (%p178_p3) target bundleno = 63 (0x3f), region = 32 }
   0xc   : > { %s1009_s12 = smov (!%p222_p4, %s766_s12), 1  ;;  %v826_v0 = vld [vmem:[%s1002_s2] ss:$0 sm:$0xff]  ;;  %v839_v3 = vld [vmem:[%s1002_s2 + $0x1] ss:$0 sm:$0xff] }
   0xd   : > { %s644_s16 = sshll.u32 %s1009_s12, 7  ;;  %s645_s17 = sshll.u32 %s1009_s12, 8 }
   0xe   : > { %s821_s20 = scalar_lea.vmem %s1000_s0, %s644_s16  ;;  %s834_s25 = scalar_lea.vmem %s1001_s1, %s645_s17 }
   0xf   : > { %v648_v1 = vld [vmem:[%s821_s20] sm:$0xff]   ;;  %v711_v5 = vld [vmem:[%s821_s20 + $0x8] sm:$0xff]   ;;  %v712_v8 = vld [vmem:[%s821_s20 + $0x10] sm:$0xff]   ;;  %s871_s30 = scalar_lea.vmem %s1003_s3, %s645_s17 }
  0x10   : > { %v649_v2 = vunpack.c.l.bf16 %v648_v1  ;;  %v650_v4 = vunpack.c.h.bf16 %v648_v1  ;;  %v653_v6 = vunpack.c.l.bf16 %v711_v5  ;;  %v654_v7 = vunpack.c.h.bf16 %v711_v5  ;;  %v713_v13 = vld [vmem:[%s821_s20 + $0x18] sm:$0xff]   ;;  %v386_v14 = vld [vmem:[%s834_s25] sm:$0xff]  ;;  %v387_v15 = vld [vmem:[%s834_s25 + $0x8] sm:$0xff] }
  0x11   : > { %v657_v11 = vunpack.c.l.bf16 %v712_v8  ;;  %v658_v12 = vunpack.c.h.bf16 %v712_v8  ;;  %v661_v18 = vunpack.c.l.bf16 %v713_v13  ;;  %v662_v19 = vunpack.c.h.bf16 %v713_v13  ;;  %v388_v22 = vld [vmem:[%s834_s25 + $0x10] sm:$0xff]  ;;  %v389_v23 = vld [vmem:[%s834_s25 + $0x18] sm:$0xff]  ;;  %v390_v28 = vld [vmem:[%s834_s25 + $0x20] sm:$0xff] }
  0x12   : > { %v321_v9 = vmul.f32 %v826_v0, %v649_v2  ;;  %v322_v10 = vmul.f32 %v826_v0, %v650_v4  ;;  %v323_v16 = vmul.f32 %v826_v0, %v653_v6  ;;  %v324_v17 = vmul.f32 %v826_v0, %v654_v7  ;;  %v391_v29 = vld [vmem:[%s834_s25 + $0x28] sm:$0xff]  ;;  %v392_v36 = vld [vmem:[%s834_s25 + $0x30] sm:$0xff]  ;;  %v393_v37 = vld [vmem:[%s834_s25 + $0x38] sm:$0xff] }
  0x13   : > { %v325_v24 = vmul.f32 %v826_v0, %v657_v11  ;;  %v326_v25 = vmul.f32 %v826_v0, %v658_v12  ;;  %v327_v30 = vmul.f32 %v826_v0, %v661_v18  ;;  %v328_v31 = vmul.f32 %v826_v0, %v662_v19  ;;  %v714_v42 = vld [vmem:[%s821_s20 + $0x20] sm:$0xff]   ;;  %v715_v47 = vld [vmem:[%s821_s20 + $0x28] sm:$0xff]   ;;  %v716_v52 = vld [vmem:[%s821_s20 + $0x30] sm:$0xff]  }
  0x14   : > { %v354_v20 = vadd.f32 %v839_v3, %v321_v9  ;;  %v355_v21 = vadd.f32 %v839_v3, %v322_v10  ;;  %v356_v26 = vadd.f32 %v839_v3, %v323_v16  ;;  %v357_v27 = vadd.f32 %v839_v3, %v324_v17  ;;  %v717_v57 = vld [vmem:[%s821_s20 + $0x38] sm:$0xff]   ;;  %v394_v4 = vld [vmem:[%s834_s25 + $0x40] sm:$0xff]  ;;  %v395_v5 = vld [vmem:[%s834_s25 + $0x48] sm:$0xff] }
  0x15   : > { %v358_v34 = vadd.f32 %v839_v3, %v325_v24  ;;  %v359_v35 = vadd.f32 %v839_v3, %v326_v25  ;;  %v360_v40 = vadd.f32 %v839_v3, %v327_v30  ;;  %v361_v41 = vadd.f32 %v839_v3, %v328_v31  ;;  %v396_v12 = vld [vmem:[%s834_s25 + $0x50] sm:$0xff]  ;;  %v397_v13 = vld [vmem:[%s834_s25 + $0x58] sm:$0xff]  ;;  %v398_v18 = vld [vmem:[%s834_s25 + $0x60] sm:$0xff] }
  0x16   : > { %v418_v32 = vadd.f32 %v386_v14, %v354_v20  ;;  %v419_v33 = vadd.f32 %v387_v15, %v355_v21  ;;  %v420_v38 = vadd.f32 %v388_v22, %v356_v26  ;;  %v421_v39 = vadd.f32 %v389_v23, %v357_v27  ;;  %v399_v19 = vld [vmem:[%s834_s25 + $0x68] sm:$0xff]  ;;  %v400_v26 = vld [vmem:[%s834_s25 + $0x70] sm:$0xff]  ;;  %v401_v27 = vld [vmem:[%s834_s25 + $0x78] sm:$0xff] }
  0x17   : > { %v422_v45 = vadd.f32 %v390_v28, %v358_v34  ;;  %v423_v46 = vadd.f32 %v391_v29, %v359_v35  ;;  %v424_v50 = vadd.f32 %v392_v36, %v360_v40  ;;  %v425_v51 = vadd.f32 %v393_v37, %v361_v41  ;;  %v719_v37 = vld [vmem:[%s821_s20 + $0x48] sm:$0xff]  }
  0x18   : > { %v450_v43 = vmax.f32 %v418_v32, 0.0  ;;  %v451_v44 = vmax.f32 %v419_v33, 0.0  ;;  %v452_v48 = vmax.f32 %v420_v38, 0.0  ;;  %v453_v49 = vmax.f32 %v421_v39, 0.0  ;;  %v718_v32 = vld [vmem:[%s821_s20 + $0x40] sm:$0xff]  }
  0x19   : > { %v454_v53 = vmax.f32 %v422_v45, 0.0  ;;  %v455_v54 = vmax.f32 %v423_v46, 0.0  ;;  %v665_v55 = vunpack.c.l.bf16 %v714_v42  ;;  %v666_v56 = vunpack.c.h.bf16 %v714_v42  ;;  %v720_v42 = vld [vmem:[%s821_s20 + $0x50] sm:$0xff]  }
  0x1a   : > { %482 = vst [vmem:[%s871_s30] sm:$0xff] %v450_v43  ;;  %v456_v58 = vmax.f32 %v424_v50, 0.0  ;;  %v457_v59 = vmax.f32 %v425_v51, 0.0  ;;  %v669_v60 = vunpack.c.l.bf16 %v715_v47  ;;  %v670_v61 = vunpack.c.h.bf16 %v715_v47  ;;  %v721_v47 = vld [vmem:[%s821_s20 + $0x58] sm:$0xff]  }
  0x1b   : > { %483 = vst [vmem:[%s871_s30 + $0x8] sm:$0xff] %v451_v44  ;;  %v329_v62 = vmul.f32 %v826_v0, %v665_v55  ;;  %v330_v63 = vmul.f32 %v826_v0, %v666_v56  ;;  %v673_v1 = vunpack.c.l.bf16 %v716_v52  ;;  %v674_v2 = vunpack.c.h.bf16 %v716_v52  ;;  %v402_v56 = vld [vmem:[%s834_s25 + $0x80] sm:$0xff] }
  0x1c   : > { %484 = vst [vmem:[%s871_s30 + $0x10] sm:$0xff] %v452_v48  ;;  %v331_v6 = vmul.f32 %v826_v0, %v669_v60  ;;  %v332_v7 = vmul.f32 %v826_v0, %v670_v61  ;;  %v677_v8 = vunpack.c.l.bf16 %v717_v57  ;;  %v678_v9 = vunpack.c.h.bf16 %v717_v57  ;;  %v403_v57 = vld [vmem:[%s834_s25 + $0x88] sm:$0xff] }
  0x1d   : > { %485 = vst [vmem:[%s871_s30 + $0x18] sm:$0xff] %v453_v49  ;;  %v362_v10 = vadd.f32 %v839_v3, %v329_v62  ;;  %v363_v11 = vadd.f32 %v839_v3, %v330_v63  ;;  %v333_v14 = vmul.f32 %v826_v0, %v673_v1  ;;  %v334_v15 = vmul.f32 %v826_v0, %v674_v2  ;;  %v404_v1 = vld [vmem:[%s834_s25 + $0x90] sm:$0xff]  ;;  %v405_v2 = vld [vmem:[%s834_s25 + $0x98] sm:$0xff] }
  0x1e   : > { %486 = vst [vmem:[%s871_s30 + $0x20] sm:$0xff] %v454_v53  ;;  %v364_v16 = vadd.f32 %v839_v3, %v331_v6  ;;  %v365_v17 = vadd.f32 %v839_v3, %v332_v7  ;;  %v335_v20 = vmul.f32 %v826_v0, %v677_v8  ;;  %v336_v21 = vmul.f32 %v826_v0, %v678_v9  ;;  %v406_v8 = vld [vmem:[%s834_s25 + $0xa0] sm:$0xff]  ;;  %v407_v9 = vld [vmem:[%s834_s25 + $0xa8] sm:$0xff] }
  0x1f   : > { %487 = vst [vmem:[%s871_s30 + $0x28] sm:$0xff] %v455_v54  ;;  %v426_v22 = vadd.f32 %v394_v4, %v362_v10  ;;  %v427_v23 = vadd.f32 %v395_v5, %v363_v11  ;;  %v366_v24 = vadd.f32 %v839_v3, %v333_v14  ;;  %v367_v25 = vadd.f32 %v839_v3, %v334_v15 }
  0x20   : > { %488 = vst [vmem:[%s871_s30 + $0x30] sm:$0xff] %v456_v58  ;;  %v428_v28 = vadd.f32 %v396_v12, %v364_v16  ;;  %v429_v29 = vadd.f32 %v397_v13, %v365_v17  ;;  %v368_v30 = vadd.f32 %v839_v3, %v335_v20  ;;  %v369_v31 = vadd.f32 %v839_v3, %v336_v21  ;;  %v408_v16 = vld [vmem:[%s834_s25 + $0xb0] sm:$0xff]  ;;  %v409_v17 = vld [vmem:[%s834_s25 + $0xb8] sm:$0xff] }
  0x21   : > { %489 = vst [vmem:[%s871_s30 + $0x38] sm:$0xff] %v457_v59  ;;  %v458_v33 = vmax.f32 %v426_v22, 0.0  ;;  %v459_v34 = vmax.f32 %v427_v23, 0.0  ;;  %v430_v35 = vadd.f32 %v398_v18, %v366_v24  ;;  %v431_v36 = vadd.f32 %v399_v19, %v367_v25  ;;  %v722_v22 = vld [vmem:[%s821_s20 + $0x60] sm:$0xff]  }
  0x22   : > { %v460_v38 = vmax.f32 %v428_v28, 0.0  ;;  %v461_v39 = vmax.f32 %v429_v29, 0.0  ;;  %v432_v40 = vadd.f32 %v400_v26, %v368_v30  ;;  %v433_v41 = vadd.f32 %v401_v27, %v369_v31  ;;  %v723_v27 = vld [vmem:[%s821_s20 + $0x68] sm:$0xff]  }
  0x23   : > { %490 = vst [vmem:[%s871_s30 + $0x40] sm:$0xff] %v458_v33  ;;  %v462_v43 = vmax.f32 %v430_v35, 0.0  ;;  %v463_v44 = vmax.f32 %v431_v36, 0.0  ;;  %v681_v45 = vunpack.c.l.bf16 %v718_v32  ;;  %v682_v46 = vunpack.c.h.bf16 %v718_v32  ;;  %v724_v32 = vld [vmem:[%s821_s20 + $0x70] sm:$0xff]  }
  0x24   : > { %491 = vst [vmem:[%s871_s30 + $0x48] sm:$0xff] %v459_v34  ;;  %v464_v48 = vmax.f32 %v432_v40, 0.0  ;;  %v465_v49 = vmax.f32 %v433_v41, 0.0  ;;  %v685_v50 = vunpack.c.l.bf16 %v719_v37  ;;  %v686_v51 = vunpack.c.h.bf16 %v719_v37  ;;  %v725_v37 = vld [vmem:[%s821_s20 + $0x78] sm:$0xff]  }
  0x25   : > { %492 = vst [vmem:[%s871_s30 + $0x50] sm:$0xff] %v460_v38  ;;  %v337_v52 = vmul.f32 %v826_v0, %v681_v45  ;;  %v338_v53 = vmul.f32 %v826_v0, %v682_v46  ;;  %v689_v54 = vunpack.c.l.bf16 %v720_v42  ;;  %v690_v55 = vunpack.c.h.bf16 %v720_v42  ;;  %v410_v46 = vld [vmem:[%s834_s25 + $0xc0] sm:$0xff] }
  0x26   : > { %493 = vst [vmem:[%s871_s30 + $0x58] sm:$0xff] %v461_v39  ;;  %v339_v58 = vmul.f32 %v826_v0, %v685_v50  ;;  %v340_v59 = vmul.f32 %v826_v0, %v686_v51  ;;  %v693_v60 = vunpack.c.l.bf16 %v721_v47  ;;  %v694_v61 = vunpack.c.h.bf16 %v721_v47  ;;  %v411_v47 = vld [vmem:[%s834_s25 + $0xc8] sm:$0xff] }
  0x27   : > { %494 = vst [vmem:[%s871_s30 + $0x60] sm:$0xff] %v462_v43  ;;  %v370_v62 = vadd.f32 %v839_v3, %v337_v52  ;;  %v371_v63 = vadd.f32 %v839_v3, %v338_v53  ;;  %v341_v4 = vmul.f32 %v826_v0, %v689_v54  ;;  %v342_v5 = vmul.f32 %v826_v0, %v690_v55  ;;  %v412_v54 = vld [vmem:[%s834_s25 + $0xd0] sm:$0xff]  ;;  %v413_v55 = vld [vmem:[%s834_s25 + $0xd8] sm:$0xff] }
  0x28   : > { %495 = vst [vmem:[%s871_s30 + $0x68] sm:$0xff] %v463_v44  ;;  %v372_v6 = vadd.f32 %v839_v3, %v339_v58  ;;  %v373_v7 = vadd.f32 %v839_v3, %v340_v59  ;;  %v343_v10 = vmul.f32 %v826_v0, %v693_v60  ;;  %v344_v11 = vmul.f32 %v826_v0, %v694_v61  ;;  %v414_v60 = vld [vmem:[%s834_s25 + $0xe0] sm:$0xff]  ;;  %v415_v61 = vld [vmem:[%s834_s25 + $0xe8] sm:$0xff] }
  0x29   : > { %496 = vst [vmem:[%s871_s30 + $0x70] sm:$0xff] %v464_v48  ;;  %v434_v12 = vadd.f32 %v402_v56, %v370_v62  ;;  %v435_v13 = vadd.f32 %v403_v57, %v371_v63  ;;  %v374_v14 = vadd.f32 %v839_v3, %v341_v4  ;;  %v375_v15 = vadd.f32 %v839_v3, %v342_v5 }
  0x2a   : > { %497 = vst [vmem:[%s871_s30 + $0x78] sm:$0xff] %v465_v49  ;;  %v436_v18 = vadd.f32 %v404_v1, %v372_v6  ;;  %v437_v19 = vadd.f32 %v405_v2, %v373_v7  ;;  %v376_v20 = vadd.f32 %v839_v3, %v343_v10  ;;  %v377_v21 = vadd.f32 %v839_v3, %v344_v11  ;;  %v416_v6 = vld [vmem:[%s834_s25 + $0xf0] sm:$0xff]  ;;  %v417_v7 = vld [vmem:[%s834_s25 + $0xf8] sm:$0xff] }
  0x2b   : > { %v466_v23 = vmax.f32 %v434_v12, 0.0  ;;  %v467_v24 = vmax.f32 %v435_v13, 0.0  ;;  %v438_v25 = vadd.f32 %v406_v8, %v374_v14  ;;  %v439_v26 = vadd.f32 %v407_v9, %v375_v15 }
  0x2c   : > { %v468_v28 = vmax.f32 %v436_v18, 0.0  ;;  %v469_v29 = vmax.f32 %v437_v19, 0.0  ;;  %v440_v30 = vadd.f32 %v408_v16, %v376_v20  ;;  %v441_v31 = vadd.f32 %v409_v17, %v377_v21 }
  0x2d   : > { %498 = vst [vmem:[%s871_s30 + $0x80] sm:$0xff] %v466_v23  ;;  %v470_v33 = vmax.f32 %v438_v25, 0.0  ;;  %v471_v34 = vmax.f32 %v439_v26, 0.0  ;;  %v697_v35 = vunpack.c.l.bf16 %v722_v22  ;;  %v698_v36 = vunpack.c.h.bf16 %v722_v22 }
  0x2e   : > { %499 = vst [vmem:[%s871_s30 + $0x88] sm:$0xff] %v467_v24  ;;  %v472_v38 = vmax.f32 %v440_v30, 0.0  ;;  %v473_v39 = vmax.f32 %v441_v31, 0.0  ;;  %v701_v40 = vunpack.c.l.bf16 %v723_v27  ;;  %v702_v41 = vunpack.c.h.bf16 %v723_v27 }
  0x2f   : > { %500 = vst [vmem:[%s871_s30 + $0x90] sm:$0xff] %v468_v28  ;;  %v345_v42 = vmul.f32 %v826_v0, %v697_v35  ;;  %v346_v43 = vmul.f32 %v826_v0, %v698_v36  ;;  %v705_v44 = vunpack.c.l.bf16 %v724_v32  ;;  %v706_v45 = vunpack.c.h.bf16 %v724_v32 }
  0x30   : > { %501 = vst [vmem:[%s871_s30 + $0x98] sm:$0xff] %v469_v29  ;;  %v347_v48 = vmul.f32 %v826_v0, %v701_v40  ;;  %v348_v49 = vmul.f32 %v826_v0, %v702_v41  ;;  %v709_v50 = vunpack.c.l.bf16 %v725_v37  ;;  %v710_v51 = vunpack.c.h.bf16 %v725_v37 }
  0x31   : > { %502 = vst [vmem:[%s871_s30 + $0xa0] sm:$0xff] %v470_v33  ;;  %v378_v52 = vadd.f32 %v839_v3, %v345_v42  ;;  %v379_v53 = vadd.f32 %v839_v3, %v346_v43  ;;  %v349_v56 = vmul.f32 %v826_v0, %v705_v44  ;;  %v350_v57 = vmul.f32 %v826_v0, %v706_v45 }
  0x32   : > { %503 = vst [vmem:[%s871_s30 + $0xa8] sm:$0xff] %v471_v34  ;;  %v380_v58 = vadd.f32 %v839_v3, %v347_v48  ;;  %v381_v59 = vadd.f32 %v839_v3, %v348_v49  ;;  %v351_v62 = vmul.f32 %v826_v0, %v709_v50  ;;  %v352_v63 = vmul.f32 %v826_v0, %v710_v51 }
  0x33   : > { %504 = vst [vmem:[%s871_s30 + $0xb0] sm:$0xff] %v472_v38  ;;  %v442_v1 = vadd.f32 %v410_v46, %v378_v52  ;;  %v443_v2 = vadd.f32 %v411_v47, %v379_v53  ;;  %v382_v4 = vadd.f32 %v839_v3, %v349_v56  ;;  %v383_v5 = vadd.f32 %v839_v3, %v350_v57 }
  0x34   : > { %505 = vst [vmem:[%s871_s30 + $0xb8] sm:$0xff] %v473_v39  ;;  %v444_v8 = vadd.f32 %v412_v54, %v380_v58  ;;  %v445_v9 = vadd.f32 %v413_v55, %v381_v59  ;;  %v384_v10 = vadd.f32 %v839_v3, %v351_v62  ;;  %v385_v0 = vadd.f32 %v839_v3, %v352_v63 }
  0x35   : > { %v474_v11 = vmax.f32 %v442_v1, 0.0  ;;  %v475_v12 = vmax.f32 %v443_v2, 0.0  ;;  %v446_v13 = vadd.f32 %v414_v60, %v382_v4  ;;  %v447_v14 = vadd.f32 %v415_v61, %v383_v5 }
  0x36   : > { %v476_v15 = vmax.f32 %v444_v8, 0.0  ;;  %v477_v16 = vmax.f32 %v445_v9, 0.0  ;;  %v448_v17 = vadd.f32 %v416_v6, %v384_v10  ;;  %v449_v18 = vadd.f32 %v417_v7, %v385_v0 }
  0x37   : > { %506 = vst [vmem:[%s871_s30 + $0xc0] sm:$0xff] %v474_v11  ;;  %v478_v19 = vmax.f32 %v446_v13, 0.0  ;;  %v479_v20 = vmax.f32 %v447_v14, 0.0 }
  0x38   : > { %507 = vst [vmem:[%s871_s30 + $0xc8] sm:$0xff] %v475_v12  ;;  %v480_v21 = vmax.f32 %v448_v17, 0.0  ;;  %v481_v3 = vmax.f32 %v449_v18, 0.0 }
  0x39   : > { %508 = vst [vmem:[%s871_s30 + $0xd0] sm:$0xff] %v476_v15 }
  0x3a   : > { %509 = vst [vmem:[%s871_s30 + $0xd8] sm:$0xff] %v477_v16 }
  0x3b   : > { %510 = vst [vmem:[%s871_s30 + $0xe0] sm:$0xff] %v478_v19 }
  0x3c   : > { %511 = vst [vmem:[%s871_s30 + $0xe8] sm:$0xff] %v479_v20 }
  0x3d   : > { %512 = vst [vmem:[%s871_s30 + $0xf0] sm:$0xff] %v480_v21 }
  0x3e   : > { %513 = vst [vmem:[%s871_s30 + $0xf8] sm:$0xff] %v481_v3 }
  0x3f PF: > { %s13_s14 = sadd.s32 1, %s774_s14   ;;  %s1004_s12 = smov %s770_s13 }
  0x40   : > { %p10_p5 = scmp.ge.s32.totalorder %s13_s14, 4   ;;  %s1005_s13 = smov %s1007_s15 }
  0x42   :  { %12 = sbr.rel (!%p10_p5) target bundleno = 2 (0x2), region = 65 }

// kernel: resblock_forward.3
= control target key start
LH: loop header
LB: loop body
LE: loop exit
PB: predicated region body
PF: predicated region fallthrough
CT: control target
= control target key end

     0   :  { %s3510_s18 = smov 0   ;;  %s3512_s19 = smov 0   ;;  %s4202_s0 = inlined_call_operand.vmem [shape: f32[2,16,16,128], index: 0, kind: input, shape index: {}, may-alias: {0,1,2}]   ;;  %s4203_s1 = inlined_call_operand.vmem [shape: f32[2,16,16,128], index: 1, kind: input, shape index: {}, may-alias: {0,1,2}]   ;;  %s4204_s2 = inlined_call_operand.vmem [shape: f32[2,16,16,128], index: 2, kind: input, shape index: {}, may-alias: {0,1,2}]   ;;  %s4205_s3 = inlined_call_operand.vmem [shape: bf16[1152,128], index: 3, kind: input, shape index: {}]   ;;  %s4206_s4 = inlined_call_operand.vmem [shape: bf16[2,16,16,128], index: 4, kind: output, shape index: {0}]   ;;  %s4207_s5 = inlined_call_operand.vmem [shape: f32[2,1,2,128], index: 5, kind: output, shape index: {1}]  }
   0x1   :  { %s3514_s0 = smov 0  }
   0x2 LB: > { %s28_s2 = sadd.s32 1, %s3472_s19  ;;  %p2932_p0 = scmp.ge.s32.totalorder %s3476_s0, 1  ;;  %s3476_s0 = sphi %s3514_s0, %s16_s0   ;;  %s3472_s19 = sphi %s3512_s19, %s4236_s19   ;;  %s3468_s18 = sphi %s3510_s18, %s4235_s18  }
   0x3   : > { %p30_p1 = scmp.ge.s32.totalorder %s28_s2, 2  ;;  %p278_p2 = scmp.lt.s32.totalorder %s3476_s0, 3 }
   0x5   : > { %s4238_s2 = smov (%p30_p1, %s28_s2), 0  ;;  %p279_p3 = pnand %p2932_p0, %p278_p2 }
   0x7   : > { %282 = sbr.rel (%p279_p3) target bundleno = 768 (0x300), region = 36 }
   0xc   : > { %v3252_v0 = vld [vmem:[%s4205_s3 + $0x78] sm:$0xff]  ;;  %p367_p4 = scmp.lt.s32.totalorder %s3468_s18, 1  ;;  %v3251_v1 = vld [vmem:[%s4205_s3 + $0x70] sm:$0xff]  ;;  %v3478_v2 = vmov 0.0   ;;  %v3250_v3 = vld [vmem:[%s4205_s3 + $0x68] sm:$0xff]  ;;  %v3479_v24 = vmov 0.0|0.0  }
   0xd   : > { %3404 = vmatpush.bf16.msra.mxu1 %v3252_v0  ;;  %3405 = vmatpush.bf16.msra.mxu2 %v3252_v0  ;;  %517 = vst [vmem:[#allocation2 + $0x1] sm:$0xff] %v3478_v2  ;;  %v3249_v8 = vld [vmem:[%s4205_s3 + $0x60] sm:$0xff]  ;;  %v3248_v11 = vld [vmem:[%s4205_s3 + $0x58] sm:$0xff]  ;;  %v3247_v12 = vld [vmem:[%s4205_s3 + $0x50] sm:$0xff]  ;;  %vm2746_vm0 = vcmask 1040384  }
   0xe   : > { %s4240_s18 = smov (!%p367_p4, %s3468_s18), 1  ;;  %3406 = vmatpush.bf16.msra.mxu3 %v3252_v0  ;;  %718 = vmatpush.bf16.msra.mxu0 %v3252_v0  ;;  %518 = vst [vmem:[#allocation2 + $0x9] sm:$0xff] %v3478_v2  ;;  %v3246_v13 = vld [vmem:[%s4205_s3 + $0x48] sm:$0xff]  ;;  %v3245_v14 = vld [vmem:[%s4205_s3 + $0x40] sm:$0xff]  ;;  %v3260_v15 = vld [vmem:[%s4205_s3 + $0xb8] sm:$0xff] }
   0xf   : > { %s3233_s24 = sshll.u32 %s4240_s18, 8  ;;  %412 = vst [vmem:[#allocation2] sm:$0x1] %v3478_v2  ;;  %v3268_v16 = vld [vmem:[%s4205_s3 + $0xf8] sm:$0xff]  ;;  %v3259_v22 = vld [vmem:[%s4205_s3 + $0xb0] sm:$0xff]  ;;  %v3258_v27 = vld [vmem:[%s4205_s3 + $0xa8] sm:$0xff] }
  0x10   : > { %s3543_s27 = scalar_lea.vmem %s4203_s1, %s3233_s24  ;;  %413 = vst [vmem:[#allocation2 + $0x18] sm:$0x1] %v3478_v2  ;;  %v3244_v20 = vld [vmem:[%s4205_s3 + $0x38] sm:$0xff]  ;;  %v3267_v23 = vld [vmem:[%s4205_s3 + $0xf0] sm:$0xff]  ;;  %v3266_v28 = vld [vmem:[%s4205_s3 + $0xe8] sm:$0xff]  ;;  %s2941_s14 = sshll.u32 %s4240_s18, 1 }
  0x11   : > { %3407 = vmatpush.bf16.msra.mxu1 %v3251_v1  ;;  %3408 = vmatpush.bf16.msra.mxu2 %v3251_v1  ;;  %v454_v4 = vld [vmem:[%s3543_s27 + $0x30] sm:$0xff]  ;;  %414 = vst [vmem:[#allocation2 + $0x30] sm:$0x1] %v3478_v2  ;;  %v455_v5 = vld [vmem:[%s3543_s27 + $0x38] sm:$0xff]  ;;  %v3242_v29 = vld [vmem:[%s4205_s3 + $0x28] sm:$0xff]  ;;  %s411_s17 = scalar_lea.vmem %s4207_s5, %s2941_s14 }
  0x12   : > { %3409 = vmatpush.bf16.msra.mxu3 %v3251_v1  ;;  %719 = vmatpush.bf16.msra.mxu0 %v3251_v1  ;;  %487 = vst [vmem:[#allocation2 + $0x61] sm:$0xff] %v454_v4  ;;  %v462_v6 = vld [vmem:[%s3543_s27 + $0x70] sm:$0xff]  ;;  %v463_v7 = vld [vmem:[%s3543_s27 + $0x78] sm:$0xff]  ;;  %v3596_v17 = vpack.c.bf16 %v455_v5, %v454_v4  ;;  %v3274_v30 = vld [vmem:[%s4205_s3 + $0x128] sm:$0xff] }
  0x13   : > { %488 = vst [vmem:[#allocation2 + $0x69] sm:$0xff] %v455_v5  ;;  %v3558_v9 = vld [vmem:[%s3543_s27 + $0xb0] sm:$0xff]  ;;  %v471_v10 = vld [vmem:[%s3543_s27 + $0xb8] sm:$0xff]  ;;  %v3598_v18 = vpack.c.bf16 %v463_v7, %v462_v6  ;;  %v456_v31 = vld [vmem:[%s3543_s27 + $0x40] sm:$0xff] }
  0x14   : > { %495 = vst [vmem:[#allocation2 + $0xc1] sm:$0xff] %v462_v6  ;;  %v650_v19 = vpack.c.bf16 %v471_v10, %v3558_v9  ;;  %v3276_v21 = vld [vmem:[%s4205_s3 + $0x138] sm:$0xff]  ;;  %v3243_v25 = vld [vmem:[%s4205_s3 + $0x30] sm:$0xff]  ;;  %v3257_v32 = vld [vmem:[%s4205_s3 + $0xa0] sm:$0xff] }
  0x15   : > { %3410 = vmatpush.bf16.msra.mxu1 %v3250_v3  ;;  %3411 = vmatpush.bf16.msra.mxu2 %v3250_v3  ;;  %496 = vst [vmem:[#allocation2 + $0xc9] sm:$0xff] %v463_v7  ;;  %v3275_v26 = vld [vmem:[%s4205_s3 + $0x130] sm:$0xff]  ;;  %v3265_v33 = vld [vmem:[%s4205_s3 + $0xe0] sm:$0xff]  ;;  %v457_v34 = vld [vmem:[%s3543_s27 + $0x48] sm:$0xff] }
  0x16   : > { %3412 = vmatpush.bf16.msra.mxu3 %v3250_v3  ;;  %720 = vmatpush.bf16.msra.mxu0 %v3250_v3  ;;  %503 = vst [vmem:[#allocation2 + $0x121] sm:$0xff] %v3558_v9  ;;  %v464_v35 = vld [vmem:[%s3543_s27 + $0x80] sm:$0xff]  ;;  %v465_v36 = vld [vmem:[%s3543_s27 + $0x88] sm:$0xff]  ;;  %v3256_v43 = vld [vmem:[%s4205_s3 + $0x98] sm:$0xff]  ;;  %v3676_v45 = vpack.c.bf16 %v457_v34, %v456_v31 }
  0x17   : > { %504 = vst [vmem:[#allocation2 + $0x129] sm:$0xff] %v471_v10  ;;  %v472_v37 = vld [vmem:[%s3543_s27 + $0xc0] sm:$0xff]  ;;  %v473_v38 = vld [vmem:[%s3543_s27 + $0xc8] sm:$0xff]  ;;  %v3264_v44 = vld [vmem:[%s4205_s3 + $0xd8] sm:$0xff]  ;;  %v3678_v46 = vpack.c.bf16 %v465_v36, %v464_v35 }
  0x18   : > { %415 = vst [vmem:[#allocation2 + $0x48] sm:$0x1] %v3478_v2  ;;  %v448_v39 = vld [vmem:[%s3543_s27] sm:$0xff]  ;;  %v449_v40 = vld [vmem:[%s3543_s27 + $0x8] sm:$0xff]  ;;  %v651_v47 = vpack.c.bf16 %v473_v38, %v472_v37  ;;  %v3240_v49 = vld [vmem:[%s4205_s3 + $0x18] sm:$0xff] }
  0x19   : > { %3413 = vmatpush.bf16.msra.mxu1 %v3249_v8  ;;  %3414 = vmatpush.bf16.msra.mxu2 %v3249_v8  ;;  %416 = vst [vmem:[#allocation2 + $0x60] sm:$0x1] %v3478_v2  ;;  %v3241_v41 = vld [vmem:[%s4205_s3 + $0x20] sm:$0xff]  ;;  %v3681_v48 = vpack.c.bf16 %v449_v40, %v448_v39  ;;  %v3272_v50 = vld [vmem:[%s4205_s3 + $0x118] sm:$0xff]  ;;  %v3255_v51 = vld [vmem:[%s4205_s3 + $0x90] sm:$0xff] }
  0x1a   : > { %3415 = vmatpush.bf16.msra.mxu3 %v3249_v8  ;;  %721 = vmatpush.bf16.msra.mxu0 %v3249_v8  ;;  %417 = vst [vmem:[#allocation2 + $0x78] sm:$0x1] %v3478_v2  ;;  %v3273_v42 = vld [vmem:[%s4205_s3 + $0x120] sm:$0xff]  ;;  %v3263_v52 = vld [vmem:[%s4205_s3 + $0xd0] sm:$0xff]  ;;  %v3254_v55 = vld [vmem:[%s4205_s3 + $0x88] sm:$0xff] }
  0x1b   : > { %418 = vst [vmem:[#allocation2 + $0x90] sm:$0x1] %v3478_v2  ;;  %v3239_v53 = vld [vmem:[%s4205_s3 + $0x10] sm:$0xff]  ;;  %v3262_v56 = vld [vmem:[%s4205_s3 + $0xc8] sm:$0xff]  ;;  %v459_v60 = vld [vmem:[%s3543_s27 + $0x58] sm:$0xff] }
  0x1c   : > { %419 = vst [vmem:[#allocation2 + $0xa8] sm:$0x1] %v3478_v2  ;;  %v3271_v54 = vld [vmem:[%s4205_s3 + $0x110] sm:$0xff]  ;;  %v3238_v58 = vld [vmem:[%s4205_s3 + $0x8] sm:$0xff]  ;;  %v3253_v61 = vld [vmem:[%s4205_s3 + $0x80] sm:$0xff] }
  0x1d   : > { %3416 = vmatpush.bf16.msra.mxu1 %v3248_v11  ;;  %3417 = vmatpush.bf16.msra.mxu2 %v3248_v11  ;;  %420 = vst [vmem:[#allocation2 + $0xc0] sm:$0x1] %v3478_v2  ;;  %v458_v57 = vld [vmem:[%s3543_s27 + $0x50] sm:$0xff]  ;;  %v3270_v59 = vld [vmem:[%s4205_s3 + $0x108] sm:$0xff]  ;;  %v3261_v62 = vld [vmem:[%s4205_s3 + $0xc0] sm:$0xff] }
  0x1e   : > { %3418 = vmatpush.bf16.msra.mxu3 %v3248_v11  ;;  %722 = vmatpush.bf16.msra.mxu0 %v3248_v11  ;;  %421 = vst [vmem:[#allocation2 + $0xd8] sm:$0x1] %v3478_v2  ;;  %v466_v63 = vld [vmem:[%s3543_s27 + $0x90] sm:$0xff]  ;;  %v467_v0 = vld [vmem:[%s3543_s27 + $0x98] sm:$0xff]  ;;  %v3237_v5 = vld [vmem:[%s4205_s3] sm:$0xff]  ;;  %v3737_v7 = vpack.c.bf16 %v459_v60, %v458_v57 }
  0x1f   : > { %422 = vst [vmem:[#allocation2 + $0xf0] sm:$0x1] %v3478_v2  ;;  %v474_v1 = vld [vmem:[%s3543_s27 + $0xd0] sm:$0xff]  ;;  %v451_v4 = vld [vmem:[%s3543_s27 + $0x18] sm:$0xff]  ;;  %v3269_v6 = vld [vmem:[%s4205_s3 + $0x100] sm:$0xff]  ;;  %v3739_v8 = vpack.c.bf16 %v467_v0, %v466_v63 }
  0x20   : > { %423 = vst [vmem:[#allocation2 + $0x108] sm:$0x1] %v3478_v2  ;;  %v450_v3 = vld [vmem:[%s3543_s27 + $0x10] sm:$0xff]  ;;  %v460_v11 = vld [vmem:[%s3543_s27 + $0x60] sm:$0xff] }
  0x21   : > { %3419 = vmatpush.bf16.msra.mxu1 %v3247_v12  ;;  %3420 = vmatpush.bf16.msra.mxu2 %v3247_v12  ;;  %424 = vst [vmem:[#allocation2 + $0x120] sm:$0x1] %v3478_v2  ;;  %v3741_v10 = vpack.c.bf16 %v451_v4, %v450_v3 }
  0x22   : > { %3421 = vmatpush.bf16.msra.mxu3 %v3247_v12  ;;  %723 = vmatpush.bf16.msra.mxu0 %v3247_v12  ;;  %425 = vst [vmem:[#allocation2 + $0x138] sm:$0x1] %v3478_v2  ;;  %v461_v12 = vld [vmem:[%s3543_s27 + $0x68] sm:$0xff] }
  0x23   : > { %426 = vst [vmem:[#allocation2 + $0x150] sm:$0x1] %v3478_v2 }
  0x24   : > { %427 = vst [vmem:[#allocation2 + $0x168] sm:$0x1] %v3478_v2 }
  0x25   : > { %3422 = vmatpush.bf16.msra.mxu1 %v3246_v13  ;;  %3423 = vmatpush.bf16.msra.mxu2 %v3246_v13  ;;  %428 = vst [vmem:[#allocation2 + $0x180] sm:$0x1] %v3478_v2 }
  0x26   : > { %3424 = vmatpush.bf16.msra.mxu3 %v3246_v13  ;;  %724 = vmatpush.bf16.msra.mxu0 %v3246_v13  ;;  %429 = vst [vmem:[#allocation2 + $0x198] sm:$0x1] %v3478_v2  ;;  %v468_v13 = vld [vmem:[%s3543_s27 + $0xa0] sm:$0xff] }
  0x27   : > { %430 = vst [vmem:[#allocation2 + $0x11] sm:$0x1] %v3478_v2 }
  0x28   : > { %431 = vst [vmem:[#allocation2 + $0x29] sm:$0x1] %v3478_v2 }
  0x29   : > { %3425 = vmatpush.bf16.msra.mxu1 %v3245_v14  ;;  %3426 = vmatpush.bf16.msra.mxu2 %v3245_v14  ;;  %432 = vst [vmem:[#allocation2 + $0x41] sm:$0x1] %v3478_v2 }
  0x2a   : > { %3427 = vmatpush.bf16.msra.mxu3 %v3245_v14  ;;  %725 = vmatpush.bf16.msra.mxu0 %v3245_v14  ;;  %433 = vst [vmem:[#allocation2 + $0x59] sm:$0x1] %v3478_v2  ;;  %v469_v14 = vld [vmem:[%s3543_s27 + $0xa8] sm:$0xff] }
  0x2b   : > { %434 = vst [vmem:[#allocation2 + $0x71] sm:$0x1] %v3478_v2 }
  0x2c   : > { %746 = vmatmul.bf16.vlgmr.msra.gmra.mxu1 %v3596_v17  ;;  %766 = vmatmul.bf16.vlgmr.msra.gmra.mxu2 %v3598_v18  ;;  %435 = vst [vmem:[#allocation2 + $0x89] sm:$0x1] %v3478_v2 }
  0x2d   : > { %1056 = vmatpush.bf16.msrb.mxu2 %v3260_v15  ;;  %786 = vmatmul.bf16.vlgmr.msra.gmra.mxu3 %v650_v19  ;;  %436 = vst [vmem:[#allocation2 + $0xa1] sm:$0x1] %v3478_v2  ;;  %v3292_v15 = vld [vmem:[%s4205_s3 + $0x1b8] sm:$0xff] }
  0x2e   : > { %1289 = vmatpush.bf16.msrb.mxu3 %v3268_v16  ;;  %726 = vmatmul.bf16.vlgmr.msra.gmra.mxu0 %v3479_v24  ;;  %437 = vst [vmem:[#allocation2 + $0xb9] sm:$0x1] %v3478_v2  ;;  %v3300_v16 = vld [vmem:[%s4205_s3 + $0x1f8] sm:$0xff]  ;;  %v453_v24 = vld [vmem:[%s3543_s27 + $0x28] sm:$0xff] }
  0x2f   : > { %855 = vmatpush.bf16.msrb.mxu1 %v3244_v20  ;;  %1522 = vmatpush.bf16.msrb.mxu0 %v3276_v21  ;;  %438 = vst [vmem:[#allocation2 + $0xd1] sm:$0x1] %v3478_v2  ;;  %v3284_v19 = vld [vmem:[%s4205_s3 + $0x178] sm:$0xff]  ;;  %v476_v20 = vld [vmem:[%s3543_s27 + $0xe0] sm:$0xff] }
  0x30   : > { %439 = vst [vmem:[#allocation2 + $0xe9] sm:$0x1] %v3478_v2  ;;  %v3308_v21 = vld [vmem:[%s4205_s3 + $0x238] sm:$0xff] }
  0x31   : > { %1057 = vmatpush.bf16.msrb.mxu2 %v3259_v22  ;;  %440 = vst [vmem:[#allocation2 + $0x101] sm:$0x1] %v3478_v2  ;;  %v477_v22 = vld [vmem:[%s3543_s27 + $0xe8] sm:$0xff] }
  0x32   : > { %1290 = vmatpush.bf16.msrb.mxu3 %v3267_v23  ;;  %441 = vst [vmem:[#allocation2 + $0x119] sm:$0x1] %v3478_v2  ;;  %v452_v23 = vld [vmem:[%s3543_s27 + $0x20] sm:$0xff] }
  0x33   : > { %856 = vmatpush.bf16.msrb.mxu1 %v3243_v25  ;;  %1523 = vmatpush.bf16.msrb.mxu0 %v3275_v26  ;;  %442 = vst [vmem:[#allocation2 + $0x131] sm:$0x1] %v3478_v2  ;;  %v3766_v25 = vpack.c.bf16 %v461_v12, %v460_v11  ;;  %v3768_v26 = vpack.c.bf16 %v469_v14, %v468_v13 }
  0x34   : > { %443 = vst [vmem:[#allocation2 + $0x149] sm:$0x1] %v3478_v2 }
  0x35   : > { %1058 = vmatpush.bf16.msrb.mxu2 %v3258_v27  ;;  %444 = vst [vmem:[#allocation2 + $0x161] sm:$0x1] %v3478_v2  ;;  %v653_v27 = vpack.c.bf16 %v477_v22, %v476_v20 }
  0x36   : > { %1291 = vmatpush.bf16.msrb.mxu3 %v3266_v28  ;;  %445 = vst [vmem:[#allocation2 + $0x179] sm:$0x1] %v3478_v2  ;;  %v641_v28 = vpack.c.bf16 %v453_v24, %v452_v23 }
  0x37   : > { %857 = vmatpush.bf16.msrb.mxu1 %v3242_v29  ;;  %1524 = vmatpush.bf16.msrb.mxu0 %v3274_v30  ;;  %446 = vst [vmem:[#allocation2 + $0x191] sm:$0x1] %v3478_v2  ;;  %v542_v29 = vld [vmem:[#allocation2] sm:$0xff]  ;;  %v543_v30 = vld [vmem:[#allocation2 + $0x8] sm:$0xff] }
  0x38   : > { %447 = vst [vmem:[#allocation2 + $0x1a9] sm:$0x1] %v3478_v2 }
  0x39   : > { %1059 = vmatpush.bf16.msrb.mxu2 %v3257_v32  ;;  %531 = vst [vmem:[#allocation2 + $0x199] sm:$0xff] %v3478_v2  ;;  %v945_v32 = vld [vmem:[#allocation2 + $0xa] sm:$0xff] }
  0x3a   : > { %1292 = vmatpush.bf16.msrb.mxu3 %v3265_v33  ;;  %532 = vst [vmem:[#allocation2 + $0x1a1] sm:$0xff] %v3478_v2  ;;  %v475_v2 = vld [vmem:[%s3543_s27 + $0xd8] sm:$0xff] }
  0x3b   : > { %858 = vmatpush.bf16.msrb.mxu1 %v3241_v41  ;;  %1525 = vmatpush.bf16.msrb.mxu0 %v3273_v42  ;;  %489 = vst [vmem:[#allocation2 + $0x79] sm:$0xff] %v456_v31  ;;  %v652_v9 = vpack.c.bf16 %v475_v2, %v474_v1  ;;  %v944_v31 = vld [vmem:[#allocation2 + $0x2] sm:$0xff]  ;;  %v3307_v41 = vld [vmem:[%s4205_s3 + $0x230] sm:$0xff] }
  0x3c   : > { %490 = vst [vmem:[#allocation2 + $0x81] sm:$0xff] %v457_v34  ;;  %751 = vmatmul.bf16.gmra.mxu1 %v3676_v45  ;;  %771 = vmatmul.bf16.gmra.mxu2 %v3678_v46 }
  0x3d   : > { %1060 = vmatpush.bf16.msrb.mxu2 %v3256_v43  ;;  %497 = vst [vmem:[#allocation2 + $0xd9] sm:$0xff] %v464_v35  ;;  %791 = vmatmul.bf16.gmra.mxu3 %v651_v47  ;;  %v574_v35 = vpack.c.bf16 %v543_v30, %v542_v29 }
  0x3e   : > { %1293 = vmatpush.bf16.msrb.mxu3 %v3264_v44  ;;  %731 = vmatmul.bf16.gmra.mxu0 %v3681_v48  ;;  %498 = vst [vmem:[#allocation2 + $0xe1] sm:$0xff] %v465_v36  ;;  %v976_v36 = vpack.c.bf16 %v945_v32, %v944_v31 }
  0x3f   : > { %859 = vmatpush.bf16.msrb.mxu1 %v3240_v49  ;;  %1526 = vmatpush.bf16.msrb.mxu0 %v3272_v50  ;;  %505 = vst [vmem:[#allocation2 + $0x139] sm:$0xff] %v472_v37 }
  0x40   : > { %506 = vst [vmem:[#allocation2 + $0x141] sm:$0xff] %v473_v38  ;;  %v3291_v38 = vld [vmem:[%s4205_s3 + $0x1b0] sm:$0xff] }
  0x41   : > { %1061 = vmatpush.bf16.msrb.mxu2 %v3255_v51  ;;  %481 = vst [vmem:[#allocation2 + $0x19] sm:$0xff] %v448_v39  ;;  %v3299_v39 = vld [vmem:[%s4205_s3 + $0x1f0] sm:$0xff] }
  0x42   : > { %1294 = vmatpush.bf16.msrb.mxu3 %v3263_v52  ;;  %482 = vst [vmem:[#allocation2 + $0x21] sm:$0xff] %v449_v40  ;;  %v3283_v40 = vld [vmem:[%s4205_s3 + $0x170] sm:$0xff] }
  0x43   : > { %860 = vmatpush.bf16.msrb.mxu1 %v3239_v53  ;;  %1527 = vmatpush.bf16.msrb.mxu0 %v3271_v54  ;;  %491 = vst [vmem:[#allocation2 + $0x91] sm:$0xff] %v458_v57  ;;  %v3298_v57 = vld [vmem:[%s4205_s3 + $0x1e8] sm:$0xff] }
  0x44   : > { %492 = vst [vmem:[#allocation2 + $0x99] sm:$0xff] %v459_v60 }
  0x45   : > { %1062 = vmatpush.bf16.msrb.mxu2 %v3254_v55  ;;  %499 = vst [vmem:[#allocation2 + $0xf1] sm:$0xff] %v466_v63  ;;  %v1184_v63 = vld [vmem:[#allocation2 + $0x68] sm:$0xff] }
  0x46   : > { %1295 = vmatpush.bf16.msrb.mxu3 %v3262_v56  ;;  %500 = vst [vmem:[#allocation2 + $0xf9] sm:$0xff] %v467_v0  ;;  %v3290_v56 = vld [vmem:[%s4205_s3 + $0x1a8] sm:$0xff] }
  0x47   : > { %861 = vmatpush.bf16.msrb.mxu1 %v3238_v58  ;;  %1528 = vmatpush.bf16.msrb.mxu0 %v3270_v59  ;;  %507 = vst [vmem:[#allocation2 + $0x151] sm:$0xff] %v474_v1  ;;  %v3282_v58 = vld [vmem:[%s4205_s3 + $0x168] sm:$0xff] }
  0x48   : > { %508 = vst [vmem:[#allocation2 + $0x159] sm:$0xff] %v475_v2  ;;  %v1177_v33 = vld [vmem:[#allocation2 + $0x18] sm:$0xff]  ;;  %v3306_v59 = vld [vmem:[%s4205_s3 + $0x228] sm:$0xff] }
  0x49   : > { %1063 = vmatpush.bf16.msrb.mxu2 %v3253_v61  ;;  %483 = vst [vmem:[#allocation2 + $0x31] sm:$0xff] %v450_v3  ;;  %v1178_v34 = vld [vmem:[#allocation2 + $0x20] sm:$0xff]  ;;  %v953_v3 = vld [vmem:[#allocation2 + $0x6a] sm:$0xff] }
  0x4a   : > { %1296 = vmatpush.bf16.msrb.mxu3 %v3261_v62  ;;  %484 = vst [vmem:[#allocation2 + $0x39] sm:$0xff] %v451_v4  ;;  %v1209_v37 = vpack.c.bf16 %v1178_v34, %v1177_v33  ;;  %v946_v42 = vld [vmem:[#allocation2 + $0x1a] sm:$0xff]  ;;  %v947_v43 = vld [vmem:[#allocation2 + $0x22] sm:$0xff] }
  0x4b   : > { %862 = vmatpush.bf16.msrb.mxu1 %v3237_v5  ;;  %1529 = vmatpush.bf16.msrb.mxu0 %v3269_v6  ;;  %493 = vst [vmem:[#allocation2 + $0xa9] sm:$0xff] %v460_v11  ;;  %v1183_v62 = vld [vmem:[#allocation2 + $0x60] sm:$0xff]  ;;  %v1185_v4 = vld [vmem:[#allocation2 + $0x78] sm:$0xff] }
  0x4c   : > { %756 = vmatmul.bf16.gmra.mxu1 %v3737_v7  ;;  %776 = vmatmul.bf16.gmra.mxu2 %v3739_v8  ;;  %494 = vst [vmem:[#allocation2 + $0xb1] sm:$0xff] %v461_v12  ;;  %v3810_v1 = vpack.c.bf16 %v1184_v63, %v1183_v62  ;;  %v952_v2 = vld [vmem:[#allocation2 + $0x62] sm:$0xff] }
  0x4d   : > { %796 = vmatmul.bf16.gmra.mxu3 %v652_v9  ;;  %501 = vst [vmem:[#allocation2 + $0x109] sm:$0xff] %v468_v13  ;;  %1989 = vmatpush.bf16.msra.mxu2 %v3292_v15  ;;  %v1186_v5 = vld [vmem:[#allocation2 + $0x80] sm:$0xff]  ;;  %v3815_v6 = vpack.c.bf16 %v953_v3, %v952_v2 }
  0x4e   : > { %736 = vmatmul.bf16.gmra.mxu0 %v3741_v10  ;;  %502 = vst [vmem:[#allocation2 + $0x111] sm:$0xff] %v469_v14  ;;  %2222 = vmatpush.bf16.msra.mxu3 %v3300_v16  ;;  %v3297_v12 = vld [vmem:[%s4205_s3 + $0x1e0] sm:$0xff] }
  0x4f   : > { %509 = vst [vmem:[#allocation2 + $0x169] sm:$0xff] %v476_v20  ;;  %1755 = vmatpush.bf16.msra.mxu1 %v3284_v19  ;;  %2455 = vmatpush.bf16.msra.mxu0 %v3308_v21  ;;  %v3281_v15 = vld [vmem:[%s4205_s3 + $0x160] sm:$0xff] }
  0x50   : > { %510 = vst [vmem:[#allocation2 + $0x171] sm:$0xff] %v477_v22  ;;  %v1179_v44 = vld [vmem:[#allocation2 + $0x30] sm:$0xff]  ;;  %v3305_v19 = vld [vmem:[%s4205_s3 + $0x220] sm:$0xff] }
  0x51   : > { %485 = vst [vmem:[#allocation2 + $0x49] sm:$0xff] %v452_v23  ;;  %1990 = vmatpush.bf16.msra.mxu2 %v3291_v38  ;;  %v1180_v47 = vld [vmem:[#allocation2 + $0x38] sm:$0xff]  ;;  %v955_v21 = vld [vmem:[#allocation2 + $0x82] sm:$0xff]  ;;  %v1187_v22 = vld [vmem:[#allocation2 + $0x90] sm:$0xff] }
  0x52   : > { %486 = vst [vmem:[#allocation2 + $0x51] sm:$0xff] %v453_v24  ;;  %2223 = vmatpush.bf16.msra.mxu3 %v3299_v39  ;;  %v3787_v49 = vpack.c.bf16 %v1180_v47, %v1179_v44  ;;  %v948_v50 = vld [vmem:[#allocation2 + $0x32] sm:$0xff]  ;;  %v949_v51 = vld [vmem:[#allocation2 + $0x3a] sm:$0xff]  ;;  %v1189_v38 = vld [vmem:[#allocation2 + $0xa8] sm:$0xff] }
  0x53   : > { %1756 = vmatpush.bf16.msra.mxu1 %v3283_v40  ;;  %2456 = vmatpush.bf16.msra.mxu0 %v3307_v41  ;;  %v3792_v54 = vpack.c.bf16 %v949_v51, %v948_v50  ;;  %v954_v20 = vld [vmem:[#allocation2 + $0x7a] sm:$0xff]  ;;  %v1190_v39 = vld [vmem:[#allocation2 + $0xb0] sm:$0xff] }
  0x54   : > { %v1188_v23 = vld [vmem:[#allocation2 + $0x98] sm:$0xff] }
  0x55   : > { %1991 = vmatpush.bf16.msra.mxu2 %v3290_v56  ;;  %v1214_v30 = vpack.c.bf16 %v1188_v23, %v1187_v22  ;;  %v3288_v47 = vld [vmem:[%s4205_s3 + $0x198] sm:$0xff] }
  0x56   : > { %2224 = vmatpush.bf16.msra.mxu3 %v3298_v57  ;;  %v3296_v50 = vld [vmem:[%s4205_s3 + $0x1d8] sm:$0xff]  ;;  %v958_v57 = vld [vmem:[#allocation2 + $0xaa] sm:$0xff] }
  0x57   : > { %1757 = vmatpush.bf16.msra.mxu1 %v3282_v58  ;;  %2457 = vmatpush.bf16.msra.mxu0 %v3306_v59  ;;  %v3304_v56 = vld [vmem:[%s4205_s3 + $0x218] sm:$0xff]  ;;  %v1191_v59 = vld [vmem:[#allocation2 + $0xc0] sm:$0xff] }
  0x58   : > { %v1181_v52 = vld [vmem:[#allocation2 + $0x48] sm:$0xff]  ;;  %v959_v58 = vld [vmem:[#allocation2 + $0xb2] sm:$0xff] }
  0x59   : > { %v1182_v53 = vld [vmem:[#allocation2 + $0x50] sm:$0xff]  ;;  %v3900_v63 = vpack.c.bf16 %v959_v58, %v958_v57 }
  0x5a   : > { %v1211_v55 = vpack.c.bf16 %v1182_v53, %v1181_v52  ;;  %v950_v60 = vld [vmem:[#allocation2 + $0x4a] sm:$0xff]  ;;  %v951_v61 = vld [vmem:[#allocation2 + $0x52] sm:$0xff]  ;;  %2225 = vmatpush.bf16.msra.mxu3 %v3297_v12 }
  0x5b   : > { %v3808_v0 = vpack.c.bf16 %v951_v61, %v950_v60  ;;  %1758 = vmatpush.bf16.msra.mxu1 %v3281_v15  ;;  %2458 = vmatpush.bf16.msra.mxu0 %v3305_v19  ;;  %v1192_v60 = vld [vmem:[#allocation2 + $0xc8] sm:$0xff] }
  0x5c   : > { %761 = vmatmul.bf16.gmra.mxu1 %v3766_v25  ;;  %781 = vmatmul.bf16.gmra.mxu2 %v3768_v26  ;;  %v3904_v3 = vpack.c.bf16 %v1192_v60, %v1191_v59  ;;  %v960_v15 = vld [vmem:[#allocation2 + $0xc2] sm:$0xff]  ;;  %v961_v19 = vld [vmem:[#allocation2 + $0xca] sm:$0xff] }
  0x5d   : > { %801 = vmatmul.bf16.gmra.mxu3 %v653_v27  ;;  %v3303_v59 = vld [vmem:[%s4205_s3 + $0x210] sm:$0xff] }
  0x5e   : > { %741 = vmatmul.bf16.gmra.mxu0 %v641_v28  ;;  %2226 = vmatpush.bf16.msra.mxu3 %v3296_v50 }
  0x5f   : > { %2459 = vmatpush.bf16.msra.mxu0 %v3304_v56 }
  0x63   : > { %2460 = vmatpush.bf16.msra.mxu0 %v3303_v59 }
  0x6c   : > { %863 = vmatmul.bf16.vlgmr.msrb.gmra.mxu1 %v574_v35  ;;  %1064 = vmatmul.bf16.vlgmr.msrb.gmra.mxu2 %v976_v36  ;;  %v956_v36 = vld [vmem:[#allocation2 + $0x92] sm:$0xff] }
  0x6d   : > { %1297 = vmatmul.bf16.vlgmr.msrb.gmra.mxu3 %v1209_v37 }
  0x6e   : > { %1530 = vmatmul.bf16.vlgmr.msrb.gmra.mxu0 %v3681_v48  ;;  %v3785_v48 = vpack.c.bf16 %v947_v43, %v946_v42 }
  0x7c   : > { %868 = vmatmul.bf16.gmra.mxu1 %v1209_v37  ;;  %1069 = vmatmul.bf16.gmra.mxu2 %v3785_v48  ;;  %v957_v37 = vld [vmem:[#allocation2 + $0x9a] sm:$0xff] }
  0x7d   : > { %1302 = vmatmul.bf16.gmra.mxu3 %v3787_v49  ;;  %v3868_v42 = vpack.c.bf16 %v957_v37, %v956_v36 }
  0x7e   : > { %1535 = vmatmul.bf16.gmra.mxu0 %v3741_v10  ;;  %v1213_v10 = vpack.c.bf16 %v1186_v5, %v1185_v4 }
  0x8c   : > { %873 = vmatmul.bf16.gmra.mxu1 %v3787_v49  ;;  %1074 = vmatmul.bf16.gmra.mxu2 %v3792_v54 }
  0x8d   : > { %1307 = vmatmul.bf16.gmra.mxu3 %v1211_v55 }
  0x8e   : > { %1540 = vmatmul.bf16.gmra.mxu0 %v641_v28  ;;  %v3848_v28 = vpack.c.bf16 %v955_v21, %v954_v20  ;;  %v1193_v20 = vld [vmem:[#allocation2 + $0xd8] sm:$0xff]  ;;  %v1194_v21 = vld [vmem:[#allocation2 + $0xe0] sm:$0xff] }
  0x9c   : > { %878 = vmatmul.bf16.gmra.mxu1 %v1211_v55  ;;  %1079 = vmatmul.bf16.gmra.mxu2 %v3808_v0 }
  0x9d   : > { %1312 = vmatmul.bf16.gmra.mxu3 %v3810_v1 }
  0x9e   : > { %1545 = vmatmul.bf16.gmra.mxu0 %v3596_v17  ;;  %v3289_v17 = vld [vmem:[%s4205_s3 + $0x1a0] sm:$0xff] }
  0x9f   : > { %1992 = vmatpush.bf16.msra.mxu2 %v3289_v17 }
  0xa3   : > { %1993 = vmatpush.bf16.msra.mxu2 %v3288_v47 }
  0xa9   : > { %v3817_v9 = vpop.f32.mrf.mxu1 }
  0xab   : > { %v3819_v11 = vpop.f32.mrf.mxu0 }
  0xac   : > { %883 = vmatmul.bf16.gmra.mxu1 %v3810_v1  ;;  %1084 = vmatmul.bf16.gmra.mxu2 %v3815_v6 }
  0xad   : > { %1317 = vmatmul.bf16.gmra.mxu3 %v1213_v10 }
  0xae   : > { %1550 = vmatmul.bf16.gmra.mxu0 %v3676_v45 }
  0xaf   : > { %v3830_v13 = vpop.f32.mrf.mxu2 }
  0xb0   : > { %v3832_v14 = vpop.f32.mrf.mxu3 }
  0xb1   : > { %v3837_v16 = vpop.f32.mrf.mxu1 }
  0xb3   : > { %v3839_v45 = vpop.f32.mrf.mxu0 }
  0xb7   : > { %v3844_v24 = vpop.f32.mrf.mxu2 }
  0xb8   : > { %v3846_v27 = vpop.f32.mrf.mxu3 }
  0xb9   : > { %v3850_v29 = vpop.f32.mrf.mxu1 }
  0xbb   : > { %v3852_v31 = vpop.f32.mrf.mxu0 }
  0xbc   : > { %888 = vmatmul.bf16.gmra.mxu1 %v1213_v10  ;;  %1089 = vmatmul.bf16.gmra.mxu2 %v3848_v28 }
  0xbd   : > { %1322 = vmatmul.bf16.gmra.mxu3 %v1214_v30 }
  0xbe   : > { %1555 = vmatmul.bf16.gmra.mxu0 %v3737_v7  ;;  %v1215_v7 = vpack.c.bf16 %v1190_v39, %v1189_v38  ;;  %v3287_v39 = vld [vmem:[%s4205_s3 + $0x190] sm:$0xff] }
  0xbf   : > { %v3856_v32 = vpop.f32.mrf.mxu2  ;;  %1994 = vmatpush.bf16.msra.mxu2 %v3287_v39 }
  0xc0   : > { %v3858_v33 = vpop.f32.mrf.mxu3 }
  0xc1   : > { %v3860_v34 = vpop.f32.mrf.mxu1 }
  0xc3   : > { %v3862_v35 = vpop.f32.mrf.mxu0 }
  0xc7   : > { %v3864_v40 = vpop.f32.mrf.mxu2 }
  0xc8   : > { %v3866_v41 = vpop.f32.mrf.mxu3 }
  0xc9   : > { %v3870_v43 = vpop.f32.mrf.mxu1 }
  0xcb   : > { %v3872_v44 = vpop.f32.mrf.mxu0 }
  0xcc   : > { %893 = vmatmul.bf16.gmra.mxu1 %v1214_v30  ;;  %1094 = vmatmul.bf16.gmra.mxu2 %v3868_v42  ;;  %v3923_v30 = vpack.c.bf16 %v961_v19, %v960_v15  ;;  %v962_v15 = vld [vmem:[#allocation2 + $0xda] sm:$0xff]  ;;  %v963_v19 = vld [vmem:[#allocation2 + $0xe2] sm:$0xff] }
  0xcd   : > { %1327 = vmatmul.bf16.gmra.mxu3 %v1215_v7  ;;  %v3944_v39 = vpack.c.bf16 %v963_v19, %v962_v15 }
  0xce   : > { %1560 = vmatmul.bf16.gmra.mxu0 %v3766_v25  ;;  %v3280_v25 = vld [vmem:[%s4205_s3 + $0x158] sm:$0xff] }
  0xcf   : > { %v3882_v51 = vpop.f32.mrf.mxu2  ;;  %1759 = vmatpush.bf16.msra.mxu1 %v3280_v25 }
  0xd0   : > { %v3884_v52 = vpop.f32.mrf.mxu3 }
  0xd1   : > { %v3886_v53 = vpop.f32.mrf.mxu1 }
  0xd3   : > { %v3888_v55 = vpop.f32.mrf.mxu0 }
  0xd7   : > { %v3896_v61 = vpop.f32.mrf.mxu2 }
  0xd8   : > { %v3898_v62 = vpop.f32.mrf.mxu3 }
  0xd9   : > { %v3902_v2 = vpop.f32.mrf.mxu1 }
  0xdb   : > { %v3906_v4 = vpop.f32.mrf.mxu0 }
  0xdc   : > { %898 = vmatmul.bf16.gmra.mxu1 %v1215_v7  ;;  %1099 = vmatmul.bf16.gmra.mxu2 %v3900_v63  ;;  %v3295_v7 = vld [vmem:[%s4205_s3 + $0x1d0] sm:$0xff] }
  0xdd   : > { %1332 = vmatmul.bf16.gmra.mxu3 %v3904_v3 }
  0xde   : > { %1565 = vmatmul.bf16.gmra.mxu0 %v3598_v18  ;;  %v1217_v18 = vpack.c.bf16 %v1194_v21, %v1193_v20  ;;  %2227 = vmatpush.bf16.msra.mxu3 %v3295_v7  ;;  %v1195_v20 = vld [vmem:[#allocation2 + $0xf0] sm:$0xff]  ;;  %v1196_v21 = vld [vmem:[#allocation2 + $0xf8] sm:$0xff] }
  0xdf   : > { %v3911_v5 = vpop.f32.mrf.mxu2 }
  0xe0   : > { %v3913_v10 = vpop.f32.mrf.mxu3 }
  0xe1   : > { %v3915_v17 = vpop.f32.mrf.mxu1 }
  0xe3   : > { %v3917_v12 = vpop.f32.mrf.mxu0 }
  0xe7   : > { %v3919_v22 = vpop.f32.mrf.mxu2 }
  0xe8   : > { %v3921_v23 = vpop.f32.mrf.mxu3 }
  0xe9   : > { %v864_v36 = vpop.f32.mrf.mxu1 }
  0xea   : > { %v865_v37 = vadd.f32 %v864_v36, %v3819_v11 }
  0xeb   : > { %v1531_v38 = vpop.f32.mrf.mxu0 }
  0xec   : > { %903 = vmatmul.bf16.gmra.mxu1 %v3904_v3  ;;  %1104 = vmatmul.bf16.gmra.mxu2 %v3923_v30 }
  0xed   : > { %1337 = vmatmul.bf16.gmra.mxu3 %v1217_v18 }
  0xee   : > { %1570 = vmatmul.bf16.gmra.mxu0 %v3678_v46  ;;  %v3279_v46 = vld [vmem:[%s4205_s3 + $0x150] sm:$0xff] }
  0xef   : > { %v1065_v47 = vpop.f32.mrf.mxu2  ;;  %1760 = vmatpush.bf16.msra.mxu1 %v3279_v46 }
  0xf0   : > { %v1145_v11 = vadd.f32 %v1065_v47, %v865_v37  ;;  %v1298_v50 = vpop.f32.mrf.mxu3  ;;  %v3946_v47 = vpack.c.bf16 %v1196_v21, %v1195_v20 }
  0xf1   : > { %v866_v25 = vpop.f32.mrf.mxu1 }
  0xf2   : > { %v1378_v56 = vadd.f32 %v1298_v50, %v1145_v11  ;;  %v867_v57 = vadd.f32 %v866_v25, %v3839_v45 }
  0xf3   : > { %v1533_v58 = vpop.f32.mrf.mxu0 }
  0xf4   : > { %v3942_v60 = vadd.f32 %v1531_v38, %v1378_v56 }
  0xf7   : > { %v1067_v36 = vpop.f32.mrf.mxu2 }
  0xf8   : > { %v1146_v37 = vadd.f32 %v1067_v36, %v867_v57  ;;  %v1300_v45 = vpop.f32.mrf.mxu3  ;;  %v1197_v36 = vld [vmem:[#allocation2 + $0x108] sm:$0xff] }
  0xf9   : > { %v869_v7 = vpop.f32.mrf.mxu1 }
  0xfa   : > { %v1379_v11 = vadd.f32 %v1300_v45, %v1146_v37  ;;  %v870_v50 = vadd.f32 %v869_v7, %v3852_v31  ;;  %v964_v31 = vld [vmem:[#allocation2 + $0xf2] sm:$0xff] }
  0xfb   : > { %v1536_v25 = vpop.f32.mrf.mxu0  ;;  %v1198_v37 = vld [vmem:[#allocation2 + $0x110] sm:$0xff] }
  0xfc   : > { %908 = vmatmul.bf16.gmra.mxu1 %v1217_v18  ;;  %1109 = vmatmul.bf16.gmra.mxu2 %v3944_v39  ;;  %v3950_v38 = vadd.f32 %v1533_v58, %v1379_v11  ;;  %v965_v18 = vld [vmem:[#allocation2 + $0xfa] sm:$0xff] }
  0xfd   : > { %1342 = vmatmul.bf16.gmra.mxu3 %v3946_v47  ;;  %v3957_v11 = vpack.c.bf16 %v965_v18, %v964_v31 }
  0xfe   : > { %4211 = vst [vmem:[#allocation3_spill] sm:$0xff] %v3950_v38  ;;  %1575 = vmatmul.bf16.gmra.mxu0 %v3739_v8  ;;  %v3959_v38 = vpack.c.bf16 %v1198_v37, %v1197_v36  ;;  %v3302_v36 = vld [vmem:[%s4205_s3 + $0x208] sm:$0xff] }
  0xff   : > { %v1070_v56 = vpop.f32.mrf.mxu2  ;;  %2461 = vmatpush.bf16.msra.mxu0 %v3302_v36 }
 0x100   : > { %v1147_v57 = vadd.f32 %v1070_v56, %v870_v50  ;;  %v1303_v46 = vpop.f32.mrf.mxu3 }
 0x101   : > { %v871_v59 = vpop.f32.mrf.mxu1 }
 0x102   : > { %v1380_v15 = vadd.f32 %v1303_v46, %v1147_v57  ;;  %v872_v19 = vadd.f32 %v871_v59, %v3862_v35  ;;  %v3294_v46 = vld [vmem:[%s4205_s3 + $0x1c8] sm:$0xff] }
 0x103   : > { %v1538_v20 = vpop.f32.mrf.mxu0  ;;  %2228 = vmatpush.bf16.msra.mxu3 %v3294_v46 }
 0x104   : > { %v3955_v21 = vadd.f32 %v1536_v25, %v1380_v15  ;;  %v3286_v25 = vld [vmem:[%s4205_s3 + $0x188] sm:$0xff] }
 0x105   : > { %1995 = vmatpush.bf16.msra.mxu2 %v3286_v25 }
 0x106   : > { %4212 = vst [vmem:[#allocation4_spill] sm:$0xff] %v3955_v21 }
 0x107   : > { %v1072_v58 = vpop.f32.mrf.mxu2 }
 0x108   : > { %v1148_v45 = vadd.f32 %v1072_v58, %v872_v19  ;;  %v1305_v7 = vpop.f32.mrf.mxu3  ;;  %v966_v58 = vld [vmem:[#allocation2 + $0x10a] sm:$0xff] }
 0x109   : > { %v874_v8 = vpop.f32.mrf.mxu1 }
 0x10a   : > { %v1381_v50 = vadd.f32 %v1305_v7, %v1148_v45  ;;  %v875_v56 = vadd.f32 %v874_v8, %v3872_v44  ;;  %v967_v45 = vld [vmem:[#allocation2 + $0x112] sm:$0xff]  ;;  %v1199_v7 = vld [vmem:[#allocation2 + $0x120] sm:$0xff]  ;;  %v1200_v8 = vld [vmem:[#allocation2 + $0x128] sm:$0xff] }
 0x10b   : > { %v1541_v57 = vpop.f32.mrf.mxu0 }
 0x10c   : > { %913 = vmatmul.bf16.gmra.mxu1 %v3946_v47  ;;  %1114 = vmatmul.bf16.gmra.mxu2 %v3957_v11  ;;  %v3964_v35 = vadd.f32 %v1538_v20, %v1381_v50  ;;  %v1432_v50 = vld [vmem:[#allocation2 + $0x121] sm:$0xff] }
 0x10d   : > { %1347 = vmatmul.bf16.gmra.mxu3 %v3959_v38 }
 0x10e   : > { %4213 = vst [vmem:[#allocation5_spill] sm:$0xff] %v3964_v35  ;;  %1580 = vmatmul.bf16.gmra.mxu0 %v3768_v26  ;;  %v3278_v26 = vld [vmem:[%s4205_s3 + $0x148] sm:$0xff] }
 0x10f   : > { %v1075_v44 = vpop.f32.mrf.mxu2  ;;  %1761 = vmatpush.bf16.msra.mxu1 %v3278_v26 }
 0x110   : > { %v1149_v59 = vadd.f32 %v1075_v44, %v875_v56  ;;  %v1308_v15 = vpop.f32.mrf.mxu3  ;;  %v1433_v56 = vld [vmem:[#allocation2 + $0x129] sm:$0xff]  ;;  %v3983_v44 = vpack.c.bf16 %v967_v45, %v966_v58 }
 0x111   : > { %v876_v19 = vpop.f32.mrf.mxu1 }
 0x112   : > { %v1382_v20 = vadd.f32 %v1308_v15, %v1149_v59  ;;  %v877_v31 = vadd.f32 %v876_v19, %v3888_v55  ;;  %v3985_v15 = vpack.c.bf16 %v1200_v8, %v1199_v7  ;;  %v3987_v19 = vpack.c.bf16 %v1433_v56, %v1432_v50 }
 0x113   : > { %v1543_v18 = vpop.f32.mrf.mxu0 }
 0x114   : > { %v3981_v37 = vadd.f32 %v1541_v57, %v1382_v20  ;;  %4215 = vst [vmem:[#allocation7_spill] sm:$0xff] %v3985_v15 }
 0x115   : > { %4216 = vst [vmem:[#allocation8_spill] sm:$0xff] %v3987_v19 }
 0x116   : > { %4214 = vst [vmem:[#allocation6_spill] sm:$0xff] %v3981_v37 }
 0x117   : > { %v1077_v55 = vpop.f32.mrf.mxu2 }
 0x118   : > { %v1150_v25 = vadd.f32 %v1077_v55, %v877_v31  ;;  %v1310_v46 = vpop.f32.mrf.mxu3  ;;  %v968_v55 = vld [vmem:[#allocation2 + $0x122] sm:$0xff] }
 0x119   : > { %v879_v59 = vpop.f32.mrf.mxu1 }
 0x11a   : > { %v1383_v26 = vadd.f32 %v1310_v46, %v1150_v25  ;;  %v880_v57 = vadd.f32 %v879_v59, %v3906_v4  ;;  %v969_v25 = vld [vmem:[#allocation2 + $0x12a] sm:$0xff]  ;;  %v1201_v46 = vld [vmem:[#allocation2 + $0x138] sm:$0xff]  ;;  %v1202_v59 = vld [vmem:[#allocation2 + $0x140] sm:$0xff] }
 0x11b   : > { %v1546_v20 = vpop.f32.mrf.mxu0 }
 0x11c   : > { %918 = vmatmul.bf16.gmra.mxu1 %v3959_v38  ;;  %1119 = vmatmul.bf16.gmra.mxu2 %v3983_v44  ;;  %v3992_v36 = vadd.f32 %v1543_v18, %v1383_v26  ;;  %v1434_v18 = vld [vmem:[#allocation2 + $0x139] sm:$0xff]  ;;  %v1435_v26 = vld [vmem:[#allocation2 + $0x141] sm:$0xff] }
 0x11d   : > { %1352 = vmatmul.bf16.gmra.mxu3 %v3985_v15  ;;  %v1454_v21 = vpack.c.bf16 %v1435_v26, %v1434_v18  ;;  %v970_v18 = vld [vmem:[#allocation2 + $0x13a] sm:$0xff]  ;;  %v971_v26 = vld [vmem:[#allocation2 + $0x142] sm:$0xff] }
 0x11e   : > { %4217 = vst [vmem:[#allocation9_spill] sm:$0xff] %v3992_v36  ;;  %1585 = vmatmul.bf16.gmra.mxu0 %v3987_v19  ;;  %v3999_v19 = vpack.c.bf16 %v969_v25, %v968_v55  ;;  %v3301_v25 = vld [vmem:[%s4205_s3 + $0x200] sm:$0xff] }
 0x11f   : > { %v1080_v31 = vpop.f32.mrf.mxu2  ;;  %2462 = vmatpush.bf16.msra.mxu0 %v3301_v25 }
 0x120   : > { %v1151_v58 = vadd.f32 %v1080_v31, %v880_v57  ;;  %v1313_v45 = vpop.f32.mrf.mxu3  ;;  %4219 = vst [vmem:[#allocation11_spill] sm:$0xff] %v3999_v19  ;;  %v1221_v31 = vpack.c.bf16 %v1202_v59, %v1201_v46  ;;  %v4019_v46 = vld [vmem:[%s3543_s27 + $0xf0] sm:$0xff]  ;;  %v4022_v59 = vld [vmem:[%s3543_s27 + $0xf8] sm:$0xff]  ;;  %s3236_s27 = sshll.u32 %s4240_s18, 7 }
 0x121   : > { %v881_v7 = vpop.f32.mrf.mxu1  ;;  %511 = vst [vmem:[#allocation2 + $0x181] sm:$0xff] %v4019_v46  ;;  %s4133_s13 = scalar_lea.vmem %s4206_s4, %s3236_s27 }
 0x122   : > { %v1384_v8 = vadd.f32 %v1313_v45, %v1151_v58  ;;  %v882_v50 = vadd.f32 %v881_v7, %v3917_v12  ;;  %512 = vst [vmem:[#allocation2 + $0x189] sm:$0xff] %v4022_v59 }
 0x123   : > { %v1548_v56 = vpop.f32.mrf.mxu0 }
 0x124   : > { %v3997_v4 = vadd.f32 %v1546_v20, %v1384_v8  ;;  %v3285_v20 = vld [vmem:[%s4205_s3 + $0x180] sm:$0xff] }
 0x125   : > { %1996 = vmatpush.bf16.msra.mxu2 %v3285_v20  ;;  %v1204_v20 = vld [vmem:[#allocation2 + $0x158] sm:$0xff] }
 0x126   : > { %4218 = vst [vmem:[#allocation10_spill] sm:$0xff] %v3997_v4 }
 0x127   : > { %v1082_v36 = vpop.f32.mrf.mxu2 }
 0x128   : > { %v1152_v37 = vadd.f32 %v1082_v36, %v882_v50  ;;  %v1315_v35 = vpop.f32.mrf.mxu3  ;;  %v3293_v36 = vld [vmem:[%s4205_s3 + $0x1c0] sm:$0xff] }
 0x129   : > { %v884_v57 = vpop.f32.mrf.mxu1  ;;  %2229 = vmatpush.bf16.msra.mxu3 %v3293_v36  ;;  %v1436_v36 = vld [vmem:[#allocation2 + $0x151] sm:$0xff] }
 0x12a   : > { %v1385_v58 = vadd.f32 %v1315_v35, %v1152_v37  ;;  %v885_v35 = vadd.f32 %v884_v57, %v3817_v9  ;;  %v1203_v57 = vld [vmem:[#allocation2 + $0x150] sm:$0xff] }
 0x12b   : > { %v1551_v45 = vpop.f32.mrf.mxu0 }
 0x12c   : > { %923 = vmatmul.bf16.gmra.mxu1 %v3985_v15  ;;  %1124 = vmatmul.bf16.gmra.mxu2 %v3999_v19  ;;  %v4003_v12 = vadd.f32 %v1548_v56, %v1385_v58 }
 0x12d   : > { %1357 = vmatmul.bf16.gmra.mxu3 %v1221_v31 }
 0x12e   : > { %4220 = vst [vmem:[#allocation12_spill] sm:$0xff] %v4003_v12  ;;  %1590 = vmatmul.bf16.gmra.mxu0 %v1454_v21  ;;  %v3277_v21 = vld [vmem:[%s4205_s3 + $0x140] sm:$0xff]  ;;  %v4029_v12 = vpack.c.bf16 %v971_v26, %v970_v18 }
 0x12f   : > { %v1085_v37 = vpop.f32.mrf.mxu2  ;;  %1762 = vmatpush.bf16.msra.mxu1 %v3277_v21  ;;  %v1222_v21 = vpack.c.bf16 %v1204_v20, %v1203_v57  ;;  %v972_v57 = vld [vmem:[#allocation2 + $0x152] sm:$0xff]  ;;  %v973_v20 = vld [vmem:[#allocation2 + $0x15a] sm:$0xff] }
 0x130   : > { %v1153_v7 = vadd.f32 %v1085_v37, %v885_v35  ;;  %v1318_v8 = vpop.f32.mrf.mxu3  ;;  %v1437_v35 = vld [vmem:[#allocation2 + $0x159] sm:$0xff] }
 0x131   : > { %v886_v50 = vpop.f32.mrf.mxu1  ;;  %v1455_v25 = vpack.c.bf16 %v1437_v35, %v1436_v36  ;;  %v1205_v36 = vld [vmem:[#allocation2 + $0x168] sm:$0xff]  ;;  %v1206_v35 = vld [vmem:[#allocation2 + $0x170] sm:$0xff] }
 0x132   : > { %v1386_v56 = vadd.f32 %v1318_v8, %v1153_v7  ;;  %v887_v58 = vadd.f32 %v886_v50, %v3837_v16 }
 0x133   : > { %v1553_v55 = vpop.f32.mrf.mxu0 }
 0x134   : > { %v4026_v9 = vadd.f32 %v1551_v45, %v1386_v56 }
 0x136   : > { %4221 = vst [vmem:[#allocation13_spill] sm:$0xff] %v4026_v9 }
 0x137   : > { %v1087_v37 = vpop.f32.mrf.mxu2 }
 0x138   : > { %v1154_v7 = vadd.f32 %v1087_v37, %v887_v58  ;;  %v1320_v8 = vpop.f32.mrf.mxu3 }
 0x139   : > { %v889_v4 = vpop.f32.mrf.mxu1 }
 0x13a   : > { %v1387_v19 = vadd.f32 %v1320_v8, %v1154_v7  ;;  %v890_v16 = vadd.f32 %v889_v4, %v3850_v29  ;;  %v4038_v29 = vpack.c.bf16 %v973_v20, %v972_v57 }
 0x13b   : > { %v1556_v15 = vpop.f32.mrf.mxu0 }
 0x13c   : > { %928 = vmatmul.bf16.gmra.mxu1 %v1221_v31  ;;  %1129 = vmatmul.bf16.gmra.mxu2 %v4029_v12  ;;  %v4032_v45 = vadd.f32 %v1553_v55, %v1387_v19  ;;  %v1438_v19 = vld [vmem:[#allocation2 + $0x169] sm:$0xff]  ;;  %v1439_v55 = vld [vmem:[#allocation2 + $0x171] sm:$0xff] }
 0x13d   : > { %1362 = vmatmul.bf16.gmra.mxu3 %v1222_v21 }
 0x13e   : > { %1595 = vmatmul.bf16.gmra.mxu0 %v1455_v25 }
 0x13f   : > { %v1090_v50 = vpop.f32.mrf.mxu2 }
 0x140   : > { %v1155_v56 = vadd.f32 %v1090_v50, %v890_v16  ;;  %v1323_v58 = vpop.f32.mrf.mxu3  ;;  %v1223_v16 = vpack.c.bf16 %v1206_v35, %v1205_v36  ;;  %v1456_v50 = vpack.c.bf16 %v1439_v55, %v1438_v19  ;;  %v974_v36 = vld [vmem:[#allocation2 + $0x16a] sm:$0xff]  ;;  %v975_v35 = vld [vmem:[#allocation2 + $0x172] sm:$0xff]  ;;  %v1207_v19 = vld [vmem:[#allocation2 + $0x180] sm:$0xff] }
 0x141   : > { %v891_v37 = vpop.f32.mrf.mxu1  ;;  %v1208_v55 = vld [vmem:[#allocation2 + $0x188] sm:$0xff] }
 0x142   : > { %v1388_v18 = vadd.f32 %v1323_v58, %v1155_v56  ;;  %v892_v31 = vadd.f32 %v891_v37, %v3860_v34 }
 0x143   : > { %v1558_v26 = vpop.f32.mrf.mxu0 }
 0x144   : > { %v4035_v9 = vadd.f32 %v1556_v15, %v1388_v18 }
 0x146   : > { %4222 = vst [vmem:[#allocation14_spill] sm:$0xff] %v4035_v9 }
 0x147   : > { %v1092_v7 = vpop.f32.mrf.mxu2 }
 0x148   : > { %v1156_v8 = vadd.f32 %v1092_v7, %v892_v31  ;;  %v1325_v25 = vpop.f32.mrf.mxu3 }
 0x149   : > { %v894_v4 = vpop.f32.mrf.mxu1 }
 0x14a   : > { %v1389_v56 = vadd.f32 %v1325_v25, %v1156_v8  ;;  %v895_v34 = vadd.f32 %v894_v4, %v3870_v43  ;;  %v1224_v4 = vpack.c.bf16 %v1208_v55, %v1207_v19 }
 0x14b   : > { %v1561_v58 = vpop.f32.mrf.mxu0 }
 0x14c   : > { %933 = vmatmul.bf16.gmra.mxu1 %v1222_v21  ;;  %1134 = vmatmul.bf16.gmra.mxu2 %v4038_v29  ;;  %v4041_v15 = vadd.f32 %v1558_v26, %v1389_v56  ;;  %v1457_v56 = vpack.c.bf16 %v4022_v59, %v4019_v46  ;;  %v2110_v59 = vld [vmem:[#allocation2 + $0x31] sm:$0xff] }
 0x14d   : > { %1367 = vmatmul.bf16.gmra.mxu3 %v1223_v16 }
 0x14e   : > { %1600 = vmatmul.bf16.gmra.mxu0 %v1456_v50  ;;  %v4047_v50 = vpack.c.bf16 %v975_v35, %v974_v36 }
 0x14f   : > { %v1095_v37 = vpop.f32.mrf.mxu2 }
 0x150   : > { %v1157_v18 = vadd.f32 %v1095_v37, %v895_v34  ;;  %v1328_v31 = vpop.f32.mrf.mxu3 }
 0x151   : > { %v896_v7 = vpop.f32.mrf.mxu1 }
 0x152   : > { %v1390_v57 = vadd.f32 %v1328_v31, %v1157_v18  ;;  %v897_v21 = vadd.f32 %v896_v7, %v3886_v53 }
 0x153   : > { %v1563_v20 = vpop.f32.mrf.mxu0 }
 0x154   : > { %v4044_v9 = vadd.f32 %v1561_v58, %v1390_v57 }
 0x157   : > { %v1097_v26 = vpop.f32.mrf.mxu2 }
 0x158   : > { %v1158_v8 = vadd.f32 %v1097_v26, %v897_v21  ;;  %v1330_v25 = vpop.f32.mrf.mxu3 }
 0x159   : > { %v899_v43 = vpop.f32.mrf.mxu1 }
 0x15a   : > { %v1391_v34 = vadd.f32 %v1330_v25, %v1158_v8  ;;  %v900_v53 = vadd.f32 %v899_v43, %v3902_v2 }
 0x15b   : > { %v1566_v37 = vpop.f32.mrf.mxu0 }
 0x15c   : > { %938 = vmatmul.bf16.gmra.mxu1 %v1223_v16  ;;  %1139 = vmatmul.bf16.gmra.mxu2 %v4047_v50  ;;  %v4052_v58 = vadd.f32 %v1563_v20, %v1391_v34  ;;  %v2111_v16 = vld [vmem:[#allocation2 + $0x39] sm:$0xff] }
 0x15d   : > { %1372 = vmatmul.bf16.gmra.mxu3 %v1224_v4  ;;  %v2142_v8 = vpack.c.bf16 %v2111_v16, %v2110_v59 }
 0x15e   : > { %1605 = vmatmul.bf16.gmra.mxu0 %v1457_v56 }
 0x15f   : > { %v1100_v18 = vpop.f32.mrf.mxu2 }
 0x160   : > { %v1159_v31 = vadd.f32 %v1100_v18, %v900_v53  ;;  %v1333_v7 = vpop.f32.mrf.mxu3 }
 0x161   : > { %v901_v57 = vpop.f32.mrf.mxu1 }
 0x162   : > { %v1392_v36 = vadd.f32 %v1333_v7, %v1159_v31  ;;  %v902_v46 = vadd.f32 %v901_v57, %v3915_v17  ;;  %v1645_v31 = vld [vmem:[#allocation2 + $0x32] sm:$0xff]  ;;  %v1646_v57 = vld [vmem:[#allocation2 + $0x3a] sm:$0xff] }
 0x163   : > { %v1568_v35 = vpop.f32.mrf.mxu0 }
 0x164   : > { %v4055_v21 = vadd.f32 %v1566_v37, %v1392_v36  ;;  %v1880_v36 = vld [vmem:[#allocation2 + $0x50] sm:$0xff] }
 0x167   : > { %v1102_v19 = vpop.f32.mrf.mxu2 }
 0x168   : > { %v1160_v55 = vadd.f32 %v1102_v19, %v902_v46  ;;  %v1335_v20 = vpop.f32.mrf.mxu3  ;;  %v2113_v46 = vld [vmem:[#allocation2 + $0x51] sm:$0xff] }
 0x169   : > { %v904_v26 = vpop.f32.mrf.mxu1 }
 0x16a   : > { %v1393_v25 = vadd.f32 %v1335_v20, %v1160_v55  ;;  %v905_v17 = vadd.f32 %v904_v26, %v3830_v13  ;;  %v1676_v13 = vpack.c.bf16 %v1646_v57, %v1645_v31  ;;  %v2114_v57 = vld [vmem:[#allocation2 + $0x61] sm:$0xff] }
 0x16b   : > { %v1571_v4 = vpop.f32.mrf.mxu0 }
 0x16c   : > { %1763 = vmatmul.bf16.vlgmr.msra.gmra.mxu1 %v3785_v48  ;;  %1997 = vmatmul.bf16.vlgmr.msra.gmra.mxu2 %v3787_v49  ;;  %v4060_v2 = vadd.f32 %v1568_v35, %v1393_v25  ;;  %v1879_v48 = vld [vmem:[#allocation2 + $0x48] sm:$0xff] }
 0x16d   : > { %2230 = vmatmul.bf16.vlgmr.msra.gmra.mxu3 %v2142_v8  ;;  %v2112_v35 = vld [vmem:[#allocation2 + $0x49] sm:$0xff]  ;;  %v1910_v19 = vpack.c.bf16 %v1880_v36, %v1879_v48 }
 0x16e   : > { %2463 = vmatmul.bf16.vlgmr.msra.gmra.mxu0 %v3792_v54  ;;  %v2143_v20 = vpack.c.bf16 %v2113_v46, %v2112_v35  ;;  %v2115_v48 = vld [vmem:[#allocation2 + $0x69] sm:$0xff] }
 0x16f   : > { %v1105_v43 = vpop.f32.mrf.mxu2  ;;  %v2144_v46 = vpack.c.bf16 %v2115_v48, %v2114_v57 }
 0x170   : > { %v1161_v56 = vadd.f32 %v1105_v43, %v905_v17  ;;  %v1338_v34 = vpop.f32.mrf.mxu3 }
 0x171   : > { %v906_v37 = vpop.f32.mrf.mxu1 }
 0x172   : > { %v1394_v53 = vadd.f32 %v1338_v34, %v1161_v56  ;;  %v907_v49 = vadd.f32 %v906_v37, %v3844_v24 }
 0x173   : > { %v1573_v18 = vpop.f32.mrf.mxu0 }
 0x174   : > { %v4064_v7 = vadd.f32 %v1571_v4, %v1394_v53 }
 0x177   : > { %v1107_v59 = vpop.f32.mrf.mxu2 }
 0x178   : > { %v1162_v54 = vadd.f32 %v1107_v59, %v907_v49  ;;  %v1340_v16 = vpop.f32.mrf.mxu3 }
 0x179   : > { %v909_v55 = vpop.f32.mrf.mxu1 }
 0x17a   : > { %v1395_v26 = vadd.f32 %v1340_v16, %v1162_v54  ;;  %v910_v24 = vadd.f32 %v909_v55, %v3856_v32 }
 0x17b   : > { %v1576_v8 = vpop.f32.mrf.mxu0 }
 0x17c   : > { %1768 = vmatmul.bf16.gmra.mxu1 %v1676_v13  ;;  %2002 = vmatmul.bf16.gmra.mxu2 %v1910_v19  ;;  %v4067_v25 = vadd.f32 %v1573_v18, %v1395_v26 }
 0x17d   : > { %2235 = vmatmul.bf16.gmra.mxu3 %v2143_v20 }
 0x17e   : > { %2468 = vmatmul.bf16.gmra.mxu0 %v3808_v0 }
 0x17f   : > { %v1110_v4 = vpop.f32.mrf.mxu2 }
 0x180   : > { %v1163_v17 = vadd.f32 %v1110_v4, %v910_v24  ;;  %v1343_v43 = vpop.f32.mrf.mxu3  ;;  %v1650_v4 = vld [vmem:[#allocation2 + $0x6a] sm:$0xff] }
 0x181   : > { %v911_v56 = vpop.f32.mrf.mxu1 }
 0x182   : > { %v1396_v34 = vadd.f32 %v1343_v43, %v1163_v17  ;;  %v912_v31 = vadd.f32 %v911_v56, %v3864_v40  ;;  %v1884_v17 = vld [vmem:[#allocation2 + $0x80] sm:$0xff] }
 0x183   : > { %v1578_v37 = vpop.f32.mrf.mxu0  ;;  %v2116_v43 = vld [vmem:[#allocation2 + $0x79] sm:$0xff]  ;;  %v2117_v56 = vld [vmem:[#allocation2 + $0x81] sm:$0xff] }
 0x184   : > { %v4071_v53 = vadd.f32 %v1576_v8, %v1396_v34  ;;  %v1649_v8 = vld [vmem:[#allocation2 + $0x62] sm:$0xff]  ;;  %v2145_v48 = vpack.c.bf16 %v2117_v56, %v2116_v43 }
 0x187   : > { %v1112_v36 = vpop.f32.mrf.mxu2 }
 0x188   : > { %v1164_v18 = vadd.f32 %v1112_v36, %v912_v31  ;;  %v1345_v49 = vpop.f32.mrf.mxu3 }
 0x189   : > { %v914_v35 = vpop.f32.mrf.mxu1 }
 0x18a   : > { %v1397_v59 = vadd.f32 %v1345_v49, %v1164_v18  ;;  %v915_v40 = vadd.f32 %v914_v35, %v3882_v51  ;;  %v1678_v51 = vpack.c.bf16 %v1650_v4, %v1649_v8  ;;  %v1886_v8 = vld [vmem:[#allocation2 + $0x98] sm:$0xff] }
 0x18b   : > { %v1581_v54 = vpop.f32.mrf.mxu0  ;;  %v2118_v4 = vld [vmem:[#allocation2 + $0x91] sm:$0xff] }
 0x18c   : > { %1773 = vmatmul.bf16.gmra.mxu1 %v3808_v0  ;;  %2007 = vmatmul.bf16.gmra.mxu2 %v3810_v1  ;;  %v4076_v32 = vadd.f32 %v1578_v37, %v1397_v59  ;;  %v1883_v0 = vld [vmem:[#allocation2 + $0x78] sm:$0xff] }
 0x18d   : > { %2240 = vmatmul.bf16.gmra.mxu3 %v2144_v46  ;;  %v1912_v31 = vpack.c.bf16 %v1884_v17, %v1883_v0  ;;  %v2119_v0 = vld [vmem:[#allocation2 + $0x99] sm:$0xff] }
 0x18e   : > { %2473 = vmatmul.bf16.gmra.mxu0 %v3815_v6 }
 0x18f   : > { %v1115_v16 = vpop.f32.mrf.mxu2 }
 0x190   : > { %v1165_v13 = vadd.f32 %v1115_v16, %v915_v40  ;;  %v1348_v19 = vpop.f32.mrf.mxu3 }
 0x191   : > { %v916_v55 = vpop.f32.mrf.mxu1 }
 0x192   : > { %v1398_v20 = vadd.f32 %v1348_v19, %v1165_v13  ;;  %v917_v1 = vadd.f32 %v916_v55, %v3896_v61  ;;  %v1651_v13 = vld [vmem:[#allocation2 + $0x7a] sm:$0xff]  ;;  %v1652_v55 = vld [vmem:[#allocation2 + $0x82] sm:$0xff] }
 0x193   : > { %v1583_v26 = vpop.f32.mrf.mxu0 }
 0x194   : > { %v4080_v24 = vadd.f32 %v1581_v54, %v1398_v20  ;;  %v1885_v20 = vld [vmem:[#allocation2 + $0x90] sm:$0xff] }
 0x195   : > { %v1913_v43 = vpack.c.bf16 %v1886_v8, %v1885_v20 }
 0x197   : > { %v1117_v34 = vpop.f32.mrf.mxu2 }
 0x198   : > { %v1166_v6 = vadd.f32 %v1117_v34, %v917_v1  ;;  %v1350_v37 = vpop.f32.mrf.mxu3  ;;  %v2146_v34 = vpack.c.bf16 %v2119_v0, %v2118_v4 }
 0x199   : > { %v919_v57 = vpop.f32.mrf.mxu1 }
 0x19a   : > { %v1399_v36 = vadd.f32 %v1350_v37, %v1166_v6  ;;  %v920_v61 = vadd.f32 %v919_v57, %v3911_v5  ;;  %v1679_v5 = vpack.c.bf16 %v1652_v55, %v1651_v13  ;;  %v2120_v13 = vld [vmem:[#allocation2 + $0xa9] sm:$0xff]  ;;  %v2121_v55 = vld [vmem:[#allocation2 + $0xb1] sm:$0xff] }
 0x19b   : > { %v1586_v18 = vpop.f32.mrf.mxu0  ;;  %v2147_v0 = vpack.c.bf16 %v2121_v55, %v2120_v13 }
 0x19c   : > { %1778 = vmatmul.bf16.gmra.mxu1 %v1678_v51  ;;  %2012 = vmatmul.bf16.gmra.mxu2 %v1912_v31  ;;  %v4083_v49 = vadd.f32 %v1583_v26, %v1399_v36 }
 0x19d   : > { %2245 = vmatmul.bf16.gmra.mxu3 %v2145_v48 }
 0x19e   : > { %2478 = vmatmul.bf16.gmra.mxu0 %v3848_v28 }
 0x19f   : > { %v1120_v35 = vpop.f32.mrf.mxu2 }
 0x1a0   : > { %v1167_v46 = vadd.f32 %v1120_v35, %v920_v61  ;;  %v1353_v59 = vpop.f32.mrf.mxu3  ;;  %v1653_v35 = vld [vmem:[#allocation2 + $0x92] sm:$0xff] }
 0x1a1   : > { %v921_v54 = vpop.f32.mrf.mxu1 }
 0x1a2   : > { %v1400_v40 = vadd.f32 %v1353_v59, %v1167_v46  ;;  %v922_v26 = vadd.f32 %v921_v54, %v3919_v22  ;;  %v1654_v59 = vld [vmem:[#allocation2 + $0x9a] sm:$0xff]  ;;  %v1887_v54 = vld [vmem:[#allocation2 + $0xa8] sm:$0xff] }
 0x1a3   : > { %v1588_v16 = vpop.f32.mrf.mxu0 }
 0x1a4   : > { %v4087_v19 = vadd.f32 %v1586_v18, %v1400_v40  ;;  %v1888_v40 = vld [vmem:[#allocation2 + $0xb0] sm:$0xff] }
 0x1a7   : > { %v1122_v17 = vpop.f32.mrf.mxu2 }
 0x1a8   : > { %v1168_v28 = vadd.f32 %v1122_v17, %v922_v26  ;;  %v1355_v1 = vpop.f32.mrf.mxu3  ;;  %v1914_v26 = vpack.c.bf16 %v1888_v40, %v1887_v54 }
 0x1a9   : > { %v924_v56 = vpop.f32.mrf.mxu1 }
 0x1aa   : > { %v1401_v6 = vadd.f32 %v1355_v1, %v1168_v28  ;;  %v925_v22 = vadd.f32 %v924_v56, %v3832_v14  ;;  %v1680_v14 = vpack.c.bf16 %v1654_v59, %v1653_v35 }
 0x1ab   : > { %v1591_v37 = vpop.f32.mrf.mxu0 }
 0x1ac   : > { %1783 = vmatmul.bf16.gmra.mxu1 %v1679_v5  ;;  %2017 = vmatmul.bf16.gmra.mxu2 %v1913_v43  ;;  %v4090_v51 = vadd.f32 %v1588_v16, %v1401_v6 }
 0x1ad   : > { %2250 = vmatmul.bf16.gmra.mxu3 %v2146_v34 }
 0x1ae   : > { %2483 = vmatmul.bf16.gmra.mxu0 %v3868_v42 }
 0x1af   : > { %v1125_v31 = vpop.f32.mrf.mxu2 }
 0x1b0   : > { %v1169_v57 = vadd.f32 %v1125_v31, %v925_v22  ;;  %v1358_v48 = vpop.f32.mrf.mxu3 }
 0x1b1   : > { %v926_v36 = vpop.f32.mrf.mxu1 }
 0x1b2   : > { %v1402_v18 = vadd.f32 %v1358_v48, %v1169_v57  ;;  %v927_v16 = vadd.f32 %v926_v36, %v3846_v27  ;;  %v2122_v57 = vld [vmem:[#allocation2 + $0xc1] sm:$0xff]  ;;  %v2123_v48 = vld [vmem:[#allocation2 + $0xc9] sm:$0xff] }
 0x1b3   : > { %v1593_v61 = vpop.f32.mrf.mxu0  ;;  %v2148_v59 = vpack.c.bf16 %v2123_v48, %v2122_v57 }
 0x1b4   : > { %v4094_v46 = vadd.f32 %v1591_v37, %v1402_v18 }
 0x1b7   : > { %v1127_v20 = vpop.f32.mrf.mxu2 }
 0x1b8   : > { %v1170_v42 = vadd.f32 %v1127_v20, %v927_v16  ;;  %v1360_v8 = vpop.f32.mrf.mxu3 }
 0x1b9   : > { %v929_v4 = vpop.f32.mrf.mxu1 }
 0x1ba   : > { %v1403_v17 = vadd.f32 %v1360_v8, %v1170_v42  ;;  %v930_v27 = vadd.f32 %v929_v4, %v3858_v33  ;;  %v1658_v4 = vld [vmem:[#allocation2 + $0xca] sm:$0xff] }
 0x1bb   : > { %v1596_v28 = vpop.f32.mrf.mxu0 }
 0x1bc   : > { %1788 = vmatmul.bf16.gmra.mxu1 %v1680_v14  ;;  %2022 = vmatmul.bf16.gmra.mxu2 %v1914_v26  ;;  %v4097_v1 = vadd.f32 %v1593_v61, %v1403_v17  ;;  %v1657_v14 = vld [vmem:[#allocation2 + $0xc2] sm:$0xff]  ;;  %v2124_v17 = vld [vmem:[#allocation2 + $0xd9] sm:$0xff] }
 0x1bd   : > { %2255 = vmatmul.bf16.gmra.mxu3 %v2147_v0  ;;  %v1892_v0 = vld [vmem:[#allocation2 + $0xe0] sm:$0xff] }
 0x1be   : > { %2488 = vmatmul.bf16.gmra.mxu0 %v3900_v63 }
 0x1bf   : > { %v1130_v5 = vpop.f32.mrf.mxu2 }
 0x1c0   : > { %v1171_v43 = vadd.f32 %v1130_v5, %v930_v27  ;;  %v1363_v56 = vpop.f32.mrf.mxu3 }
 0x1c1   : > { %v931_v34 = vpop.f32.mrf.mxu1 }
 0x1c2   : > { %v1404_v6 = vadd.f32 %v1363_v56, %v1171_v43  ;;  %v932_v31 = vadd.f32 %v931_v34, %v3866_v41 }
 0x1c3   : > { %v1598_v37 = vpop.f32.mrf.mxu0 }
 0x1c4   : > { %v4101_v22 = vadd.f32 %v1596_v28, %v1404_v6  ;;  %v2125_v28 = vld [vmem:[#allocation2 + $0xe1] sm:$0xff] }
 0x1c5   : > { %v2149_v34 = vpack.c.bf16 %v2125_v28, %v2124_v17 }
 0x1c7   : > { %v1132_v36 = vpop.f32.mrf.mxu2 }
 0x1c8   : > { %v1172_v18 = vadd.f32 %v1132_v36, %v932_v31  ;;  %v1365_v61 = vpop.f32.mrf.mxu3 }
 0x1c9   : > { %v934_v35 = vpop.f32.mrf.mxu1 }
 0x1ca   : > { %v1405_v54 = vadd.f32 %v1365_v61, %v1172_v18  ;;  %v935_v41 = vadd.f32 %v934_v35, %v3884_v52  ;;  %v1682_v52 = vpack.c.bf16 %v1658_v4, %v1657_v14 }
 0x1cb   : > { %v1601_v40 = vpop.f32.mrf.mxu0 }
 0x1cc   : > { %1793 = vmatmul.bf16.gmra.mxu1 %v3900_v63  ;;  %2027 = vmatmul.bf16.gmra.mxu2 %v3904_v3  ;;  %v4106_v33 = vadd.f32 %v1598_v37, %v1405_v54  ;;  %v1891_v63 = vld [vmem:[#allocation2 + $0xd8] sm:$0xff] }
 0x1cd   : > { %2260 = vmatmul.bf16.gmra.mxu3 %v2148_v59  ;;  %v1916_v43 = vpack.c.bf16 %v1892_v0, %v1891_v63 }
 0x1ce   : > { %2493 = vmatmul.bf16.gmra.mxu0 %v3923_v30 }
 0x1cf   : > { %v1135_v16 = vpop.f32.mrf.mxu2 }
 0x1d0   : > { %v1173_v13 = vadd.f32 %v1135_v16, %v935_v41  ;;  %v1368_v55 = vpop.f32.mrf.mxu3  ;;  %v2127_v41 = vld [vmem:[#allocation2 + $0xf9] sm:$0xff] }
 0x1d1   : > { %v936_v20 = vpop.f32.mrf.mxu1 }
 0x1d2   : > { %v1406_v42 = vadd.f32 %v1368_v55, %v1173_v13  ;;  %v937_v3 = vadd.f32 %v936_v20, %v3898_v62 }
 0x1d3   : > { %v1603_v8 = vpop.f32.mrf.mxu0 }
 0x1d4   : > { %v4110_v26 = vadd.f32 %v1601_v40, %v1406_v42  ;;  %v2126_v40 = vld [vmem:[#allocation2 + $0xf1] sm:$0xff] }
 0x1d5   : > { %v2150_v42 = vpack.c.bf16 %v2127_v41, %v2126_v40 }
 0x1d7   : > { %v1137_v27 = vpop.f32.mrf.mxu2 }
 0x1d8   : > { %v1174_v30 = vadd.f32 %v1137_v27, %v937_v3  ;;  %v1370_v5 = vpop.f32.mrf.mxu3  ;;  %v4223_v27 = vld [vmem:[#allocation3_spill] sm:$0xff] }
 0x1d9   : > { %v939_v56 = vpop.f32.mrf.mxu1 }
 0x1da   : > { %v1407_v6 = vadd.f32 %v1370_v5, %v1174_v30  ;;  %v940_v62 = vadd.f32 %v939_v56, %v3913_v10  ;;  %v2128_v5 = vld [vmem:[#allocation2 + $0x109] sm:$0xff] }
 0x1db   : > { %v1606_v37 = vpop.f32.mrf.mxu0 }
 0x1dc   : > { %1798 = vmatmul.bf16.gmra.mxu1 %v1682_v52  ;;  %2032 = vmatmul.bf16.gmra.mxu2 %v1916_v43  ;;  %v4113_v31 = vadd.f32 %v1603_v8, %v1407_v6 }
 0x1dd   : > { %2265 = vmatmul.bf16.gmra.mxu3 %v2149_v34 }
 0x1de   : > { %2498 = vmatmul.bf16.gmra.mxu0 %v3944_v39 }
 0x1df   : > { %v1140_v57 = vpop.f32.mrf.mxu2 }
 0x1e0   : > { %v1175_v48 = vadd.f32 %v1140_v57, %v940_v62  ;;  %v1373_v36 = vpop.f32.mrf.mxu3 }
 0x1e1   : > { %v941_v18 = vpop.f32.mrf.mxu1 }
 0x1e2   : > { %v1408_v61 = vadd.f32 %v1373_v36, %v1175_v48  ;;  %v942_v54 = vadd.f32 %v941_v18, %v3921_v23 }
 0x1e3   : > { %v1608_v35 = vpop.f32.mrf.mxu0 }
 0x1e4   : > { %v4117_v59 = vadd.f32 %v1606_v37, %v1408_v61  ;;  %v4224_v61 = vld [vmem:[#allocation4_spill] sm:$0xff] }
 0x1e7   : > { %v1142_v16 = vpop.f32.mrf.mxu2 }
 0x1e8   : > { %v1176_v13 = vadd.f32 %v1142_v16, %v942_v54  ;;  %v1375_v55 = vpop.f32.mrf.mxu3 }
 0x1e9   : > { %v1764_v20 = vpop.f32.mrf.mxu1 }
 0x1ea   : > { %v1409_v8 = vadd.f32 %v1375_v55, %v1176_v13  ;;  %v1844_v23 = vadd.f32 %v1764_v20, %v3942_v60 }
 0x1eb   : > { %v2464_v14 = vpop.f32.mrf.mxu0 }
 0x1ec   : > { %1803 = vmatmul.bf16.gmra.mxu1 %v3944_v39  ;;  %2037 = vmatmul.bf16.gmra.mxu2 %v3946_v47  ;;  %v4122_v10 = vadd.f32 %v1608_v35, %v1409_v8  ;;  %v2129_v39 = vld [vmem:[#allocation2 + $0x111] sm:$0xff]  ;;  %v4225_v8 = vld [vmem:[#allocation5_spill] sm:$0xff] }
 0x1ed   : > { %2270 = vmatmul.bf16.gmra.mxu3 %v2150_v42  ;;  %v2151_v6 = vpack.c.bf16 %v2129_v39, %v2128_v5  ;;  %v4227_v5 = vld [vmem:[#allocation8_spill] sm:$0xff]  ;;  %v4228_v39 = vld [vmem:[#allocation11_spill] sm:$0xff] }
 0x1ee   : > { %2503 = vmatmul.bf16.gmra.mxu0 %v3957_v11 }
 0x1ef   : > { %v1998_v4 = vpop.f32.mrf.mxu2 }
 0x1f0   : > { %v2231_v63 = vpop.f32.mrf.mxu3  ;;  %v2078_v0 = vadd.f32 %v1998_v4, %v1844_v23 }
 0x1f1   : > { %v1766_v3 = vpop.f32.mrf.mxu1 }
 0x1f2   : > { %v2311_v28 = vadd.f32 %v2231_v63, %v2078_v0  ;;  %v1845_v30 = vadd.f32 %v1766_v3, %v4223_v27 }
 0x1f3   : > { %v2466_v17 = vpop.f32.mrf.mxu0 }
 0x1f4   : > { %v2544_v56 = vadd.f32 %v2464_v14, %v2311_v28 }
 0x1f6   : > { %v2677_v57 = vmul.f32 %v2544_v56, %v2544_v56 }
 0x1f7   : > { %v2000_v52 = vpop.f32.mrf.mxu2 }
 0x1f8   : > { %v2079_v47 = vadd.f32 %v2000_v52, %v1845_v30  ;;  %v2233_v43 = vpop.f32.mrf.mxu3  ;;  %v4226_v30 = vld [vmem:[#allocation7_spill] sm:$0xff] }
 0x1f9   : > { %v1769_v34 = vpop.f32.mrf.mxu1 }
 0x1fa   : > { %v2312_v37 = vadd.f32 %v2233_v43, %v2079_v47  ;;  %v1846_v35 = vadd.f32 %v1769_v34, %v4224_v61  ;;  %v1666_v61 = vld [vmem:[#allocation2 + $0x12a] sm:$0xff] }
 0x1fb   : > { %v2469_v60 = vpop.f32.mrf.mxu0 }
 0x1fc   : > { %v2545_v62 = vadd.f32 %v2466_v17, %v2312_v37  ;;  %1808 = vmatmul.bf16.gmra.mxu1 %v3957_v11  ;;  %2042 = vmatmul.bf16.gmra.mxu2 %v3959_v38 }
 0x1fd   : > { %2275 = vmatmul.bf16.gmra.mxu3 %v2151_v6 }
 0x1fe   : > { %2508 = vmatmul.bf16.gmra.mxu0 %v3983_v44  ;;  %v3312_v48 = vpack.c.bf16 %v2545_v62, %v2544_v56  ;;  %v2640_v36 = vadd.f32 %v2545_v62, %v2544_v56  ;;  %v2678_v18 = vmul.f32 %v2545_v62, %v2545_v62  ;;  %v4229_v56 = vld [vmem:[#allocation6_spill] sm:$0xff] }
 0x1ff   : > { %v2003_v54 = vpop.f32.mrf.mxu2 }
 0x200   : > { %3313 = vst [vmem:[%s4133_s13] sm:$0xff] %v3312_v48   ;;  %v2709_v11 = vadd.f32 %v2678_v18, %v2677_v57  ;;  %v2080_v40 = vadd.f32 %v2003_v54, %v1846_v35  ;;  %v2236_v38 = vpop.f32.mrf.mxu3  ;;  %v1665_v18 = vld [vmem:[#allocation2 + $0x122] sm:$0xff]  ;;  %v1899_v35 = vld [vmem:[#allocation2 + $0x138] sm:$0xff] }
 0x201   : > { %v1771_v41 = vpop.f32.mrf.mxu1  ;;  %v1900_v54 = vld [vmem:[#allocation2 + $0x140] sm:$0xff] }
 0x202   : > { %v2313_v16 = vadd.f32 %v2236_v38, %v2080_v40  ;;  %v1847_v14 = vadd.f32 %v1771_v41, %v4225_v8  ;;  %v4230_v38 = vld [vmem:[#allocation9_spill] sm:$0xff] }
 0x203   : > { %v2471_v13 = vpop.f32.mrf.mxu0 }
 0x204   : > { %v2546_v55 = vadd.f32 %v2469_v60, %v2313_v16  ;;  %v2132_v16 = vld [vmem:[#allocation2 + $0x139] sm:$0xff] }
 0x206   : > { %v2641_v20 = vadd.f32 %v2640_v36, %v2546_v55  ;;  %v2679_v42 = vmul.f32 %v2546_v55, %v2546_v55 }
 0x207   : > { %v2005_v23 = vpop.f32.mrf.mxu2 }
 0x208   : > { %v2710_v4 = vadd.f32 %v2709_v11, %v2679_v42  ;;  %v2081_v63 = vadd.f32 %v2005_v23, %v1847_v14  ;;  %v2238_v0 = vpop.f32.mrf.mxu3  ;;  %v1686_v14 = vpack.c.bf16 %v1666_v61, %v1665_v18  ;;  %v1920_v23 = vpack.c.bf16 %v1900_v54, %v1899_v35  ;;  %v2134_v35 = vld [vmem:[#allocation2 + $0x151] sm:$0xff]  ;;  %v2135_v54 = vld [vmem:[#allocation2 + $0x159] sm:$0xff] }
 0x209   : > { %v1774_v3 = vpop.f32.mrf.mxu1 }
 0x20a   : > { %v2314_v17 = vadd.f32 %v2238_v0, %v2081_v63  ;;  %v1848_v34 = vadd.f32 %v1774_v3, %v4229_v56 }
 0x20b   : > { %v2474_v28 = vpop.f32.mrf.mxu0 }
 0x20c   : > { %v2547_v27 = vadd.f32 %v2471_v13, %v2314_v17  ;;  %1813 = vmatmul.bf16.gmra.mxu1 %v3983_v44  ;;  %2047 = vmatmul.bf16.gmra.mxu2 %v4226_v30  ;;  %v2133_v13 = vld [vmem:[#allocation2 + $0x141] sm:$0xff] }
 0x20d   : > { %2280 = vmatmul.bf16.gmra.mxu3 %v4227_v5  ;;  %v2153_v63 = vpack.c.bf16 %v2133_v13, %v2132_v16  ;;  %v4231_v5 = vld [vmem:[#allocation10_spill] sm:$0xff] }
 0x20e   : > { %2513 = vmatmul.bf16.gmra.mxu0 %v4228_v39  ;;  %v3317_v52 = vpack.c.bf16 %v2547_v27, %v2546_v55  ;;  %v2642_v47 = vadd.f32 %v2641_v20, %v2547_v27  ;;  %v2680_v43 = vmul.f32 %v2547_v27, %v2547_v27 }
 0x20f   : > { %v2008_v6 = vpop.f32.mrf.mxu2 }
 0x210   : > { %3389 = vst [vmem:[%s4133_s13 + $0x8] sm:$0xff] %v3317_v52   ;;  %v2711_v37 = vadd.f32 %v2710_v4, %v2680_v43  ;;  %v2082_v60 = vadd.f32 %v2008_v6, %v1848_v34  ;;  %v2241_v62 = vpop.f32.mrf.mxu3 }
 0x211   : > { %v1776_v57 = vpop.f32.mrf.mxu1 }
 0x212   : > { %v2315_v48 = vadd.f32 %v2241_v62, %v2082_v60  ;;  %v1849_v41 = vadd.f32 %v1776_v57, %v4230_v38  ;;  %v1667_v62 = vld [vmem:[#allocation2 + $0x13a] sm:$0xff]  ;;  %v1668_v57 = vld [vmem:[#allocation2 + $0x142] sm:$0xff] }
 0x213   : > { %v2476_v36 = vpop.f32.mrf.mxu0  ;;  %v1687_v16 = vpack.c.bf16 %v1668_v57, %v1667_v62  ;;  %v2136_v62 = vld [vmem:[#allocation2 + $0x169] sm:$0xff]  ;;  %v2137_v57 = vld [vmem:[#allocation2 + $0x171] sm:$0xff] }
 0x214   : > { %v2548_v44 = vadd.f32 %v2474_v28, %v2315_v48  ;;  %v1901_v48 = vld [vmem:[#allocation2 + $0x150] sm:$0xff] }
 0x216   : > { %v2643_v11 = vadd.f32 %v2642_v47, %v2548_v44  ;;  %v2681_v40 = vmul.f32 %v2548_v44, %v2548_v44 }
 0x217   : > { %v2010_v55 = vpop.f32.mrf.mxu2 }
 0x218   : > { %v2712_v20 = vadd.f32 %v2711_v37, %v2681_v40  ;;  %v2083_v42 = vadd.f32 %v2010_v55, %v1849_v41  ;;  %v2243_v8 = vpop.f32.mrf.mxu3 }
 0x219   : > { %v1779_v4 = vpop.f32.mrf.mxu1 }
 0x21a   : > { %v2316_v0 = vadd.f32 %v2243_v8, %v2083_v42  ;;  %v1850_v39 = vadd.f32 %v1779_v4, %v4231_v5 }
 0x21b   : > { %v2479_v3 = vpop.f32.mrf.mxu0 }
 0x21c   : > { %v2549_v17 = vadd.f32 %v2476_v36, %v2316_v0  ;;  %1818 = vmatmul.bf16.gmra.mxu1 %v1686_v14  ;;  %2052 = vmatmul.bf16.gmra.mxu2 %v1920_v23  ;;  %v1902_v36 = vld [vmem:[#allocation2 + $0x158] sm:$0xff]  ;;  %v4233_v0 = vld [vmem:[#allocation13_spill] sm:$0xff] }
 0x21d   : > { %2285 = vmatmul.bf16.gmra.mxu3 %v2153_v63  ;;  %v1921_v13 = vpack.c.bf16 %v1902_v36, %v1901_v48 }
 0x21e   : > { %2518 = vmatmul.bf16.gmra.mxu0 %v4029_v12  ;;  %v3322_v28 = vpack.c.bf16 %v2549_v17, %v2548_v44  ;;  %v2644_v27 = vadd.f32 %v2643_v11, %v2549_v17  ;;  %v2682_v30 = vmul.f32 %v2549_v17, %v2549_v17  ;;  %v4232_v44 = vld [vmem:[#allocation12_spill] sm:$0xff] }
 0x21f   : > { %v2013_v52 = vpop.f32.mrf.mxu2 }
 0x220   : > { %3390 = vst [vmem:[%s4133_s13 + $0x10] sm:$0xff] %v3322_v28   ;;  %v2713_v47 = vadd.f32 %v2712_v20, %v2682_v30  ;;  %v2084_v43 = vadd.f32 %v2013_v52, %v1850_v39  ;;  %v2246_v56 = vpop.f32.mrf.mxu3  ;;  %v2154_v20 = vpack.c.bf16 %v2135_v54, %v2134_v35  ;;  %v2155_v54 = vpack.c.bf16 %v2137_v57, %v2136_v62 }
 0x221   : > { %v1781_v34 = vpop.f32.mrf.mxu1 }
 0x222   : > { %v2317_v6 = vadd.f32 %v2246_v56, %v2084_v43  ;;  %v1851_v61 = vadd.f32 %v1781_v34, %v4232_v44  ;;  %v1669_v43 = vld [vmem:[#allocation2 + $0x152] sm:$0xff]  ;;  %v1670_v56 = vld [vmem:[#allocation2 + $0x15a] sm:$0xff]  ;;  %v1903_v34 = vld [vmem:[#allocation2 + $0x168] sm:$0xff] }
 0x223   : > { %v2481_v37 = vpop.f32.mrf.mxu0  ;;  %v1688_v44 = vpack.c.bf16 %v1670_v56, %v1669_v43  ;;  %v2372_v43 = vld [vmem:[#allocation2 + $0x18a] sm:$0xff] }
 0x224   : > { %v2550_v60 = vadd.f32 %v2479_v3, %v2317_v6  ;;  %v1904_v6 = vld [vmem:[#allocation2 + $0x170] sm:$0xff] }
 0x226   : > { %v2645_v18 = vadd.f32 %v2644_v27, %v2550_v60  ;;  %v2683_v12 = vmul.f32 %v2550_v60, %v2550_v60 }
 0x227   : > { %v2015_v11 = vpop.f32.mrf.mxu2 }
 0x228   : > { %v2714_v40 = vadd.f32 %v2713_v47, %v2683_v12  ;;  %v2085_v38 = vadd.f32 %v2015_v11, %v1851_v61  ;;  %v2248_v41 = vpop.f32.mrf.mxu3  ;;  %v1922_v61 = vpack.c.bf16 %v1904_v6, %v1903_v34 }
 0x229   : > { %v1784_v55 = vpop.f32.mrf.mxu1 }
 0x22a   : > { %v2318_v42 = vadd.f32 %v2248_v41, %v2085_v38  ;;  %v1852_v3 = vadd.f32 %v1784_v55, %v4233_v0 }
 0x22b   : > { %v2484_v8 = vpop.f32.mrf.mxu0 }
 0x22c   : > { %v2551_v14 = vadd.f32 %v2481_v37, %v2318_v42  ;;  %1823 = vmatmul.bf16.gmra.mxu1 %v1687_v16  ;;  %2057 = vmatmul.bf16.gmra.mxu2 %v1921_v13  ;;  %v4234_v13 = vld [vmem:[#allocation14_spill] sm:$0xff] }
 0x22d   : > { %2290 = vmatmul.bf16.gmra.mxu3 %v2154_v20 }
 0x22e   : > { %2523 = vmatmul.bf16.gmra.mxu0 %v4038_v29  ;;  %v3327_v23 = vpack.c.bf16 %v2551_v14, %v2550_v60  ;;  %v2646_v4 = vadd.f32 %v2645_v18, %v2551_v14  ;;  %v2684_v63 = vmul.f32 %v2551_v14, %v2551_v14 }
 0x22f   : > { %v2018_v17 = vpop.f32.mrf.mxu2 }
 0x230   : > { %3391 = vst [vmem:[%s4133_s13 + $0x18] sm:$0xff] %v3327_v23   ;;  %v2715_v28 = vadd.f32 %v2714_v40, %v2684_v63  ;;  %v2086_v27 = vadd.f32 %v2018_v17, %v1852_v3  ;;  %v2251_v30 = vpop.f32.mrf.mxu3  ;;  %v1671_v3 = vld [vmem:[#allocation2 + $0x16a] sm:$0xff]  ;;  %v1672_v17 = vld [vmem:[#allocation2 + $0x172] sm:$0xff] }
 0x231   : > { %v1786_v5 = vpop.f32.mrf.mxu1 }
 0x232   : > { %v2319_v39 = vadd.f32 %v2251_v30, %v2086_v27  ;;  %v1853_v60 = vadd.f32 %v1786_v5, %v4032_v45  ;;  %v1906_v27 = vld [vmem:[#allocation2 + $0x188] sm:$0xff] }
 0x233   : > { %v2486_v52 = vpop.f32.mrf.mxu0  ;;  %v2138_v30 = vld [vmem:[#allocation2 + $0x181] sm:$0xff] }
 0x234   : > { %v2552_v47 = vadd.f32 %v2484_v8, %v2319_v39 }
 0x236   : > { %v2647_v37 = vadd.f32 %v2646_v4, %v2552_v47  ;;  %v2685_v29 = vmul.f32 %v2552_v47, %v2552_v47 }
 0x237   : > { %v2020_v48 = vpop.f32.mrf.mxu2 }
 0x238   : > { %v2716_v36 = vadd.f32 %v2715_v28, %v2685_v29  ;;  %v2087_v18 = vadd.f32 %v2020_v48, %v1853_v60  ;;  %v2253_v12 = vpop.f32.mrf.mxu3  ;;  %v1905_v28 = vld [vmem:[#allocation2 + $0x180] sm:$0xff]  ;;  %v1689_v29 = vpack.c.bf16 %v1672_v17, %v1671_v3 }
 0x239   : > { %v1789_v35 = vpop.f32.mrf.mxu1  ;;  %v1923_v60 = vpack.c.bf16 %v1906_v27, %v1905_v28  ;;  %v3453_v27 = vld [vmem:[#allocation2 + $0x1] sm:$0xff] }
 0x23a   : > { %v2320_v11 = vadd.f32 %v2253_v12, %v2087_v18  ;;  %v1854_v55 = vadd.f32 %v1789_v35, %v4234_v13 }
 0x23b   : > { %v2489_v40 = vpop.f32.mrf.mxu0 }
 0x23c   : > { %v2553_v38 = vadd.f32 %v2486_v52, %v2320_v11  ;;  %1828 = vmatmul.bf16.gmra.mxu1 %v1688_v44  ;;  %2062 = vmatmul.bf16.gmra.mxu2 %v1922_v61  ;;  %v2139_v52 = vld [vmem:[#allocation2 + $0x189] sm:$0xff] }
 0x23d   : > { %2295 = vmatmul.bf16.gmra.mxu3 %v2155_v54  ;;  %v2156_v57 = vpack.c.bf16 %v2139_v52, %v2138_v30  ;;  %v2157_v30 = vpack.c.bf16 %v3453_v27, %v3453_v27 }
 0x23e   : > { %2528 = vmatmul.bf16.gmra.mxu0 %v4047_v50  ;;  %v3332_v45 = vpack.c.bf16 %v2553_v38, %v2552_v47  ;;  %v2648_v41 = vadd.f32 %v2647_v37, %v2553_v38  ;;  %v2686_v16 = vmul.f32 %v2553_v38, %v2553_v38  ;;  %v2371_v47 = vld [vmem:[#allocation2 + $0x182] sm:$0xff] }
 0x23f   : > { %v2023_v20 = vpop.f32.mrf.mxu2  ;;  %v2389_v48 = vpack.c.bf16 %v2372_v43, %v2371_v47 }
 0x240   : > { %3392 = vst [vmem:[%s4133_s13 + $0x20] sm:$0xff] %v3332_v45   ;;  %v2717_v42 = vadd.f32 %v2716_v36, %v2686_v16  ;;  %v2088_v8 = vadd.f32 %v2023_v20, %v1854_v55  ;;  %v2256_v14 = vpop.f32.mrf.mxu3  ;;  %v1907_v55 = vld [vmem:[#allocation2 + $0x198] sm:$0xff]  ;;  %v1908_v20 = vld [vmem:[#allocation2 + $0x1a0] sm:$0xff] }
 0x241   : > { %v1791_v23 = vpop.f32.mrf.mxu1  ;;  %v1924_v17 = vpack.c.bf16 %v1908_v20, %v1907_v55 }
 0x242   : > { %v2321_v4 = vadd.f32 %v2256_v14, %v2088_v8  ;;  %v1855_v39 = vadd.f32 %v1791_v23, %v4041_v15  ;;  %v2373_v23 = vld [vmem:[#allocation2 + $0x19a] sm:$0xff] }
 0x243   : > { %v2491_v63 = vpop.f32.mrf.mxu0 }
 0x244   : > { %v2554_v0 = vadd.f32 %v2489_v40, %v2321_v4  ;;  %v2374_v4 = vld [vmem:[#allocation2 + $0x1a2] sm:$0xff] }
 0x246   : > { %v2649_v50 = vadd.f32 %v2648_v41, %v2554_v0  ;;  %v2687_v5 = vmul.f32 %v2554_v0, %v2554_v0 }
 0x247   : > { %v2025_v56 = vpop.f32.mrf.mxu2 }
 0x248   : > { %v2718_v34 = vadd.f32 %v2717_v42, %v2687_v5  ;;  %v2089_v6 = vadd.f32 %v2025_v56, %v1855_v39  ;;  %v2258_v37 = vpop.f32.mrf.mxu3 }
 0x249   : > { %v1794_v62 = vpop.f32.mrf.mxu1 }
 0x24a   : > { %v2322_v36 = vadd.f32 %v2258_v37, %v2089_v6  ;;  %v1856_v35 = vadd.f32 %v1794_v62, %v4044_v9 }
 0x24b   : > { %v2494_v18 = vpop.f32.mrf.mxu0 }
 0x24c   : > { %v2555_v12 = vadd.f32 %v2491_v63, %v2322_v36  ;;  %1833 = vmatmul.bf16.gmra.mxu1 %v1689_v29  ;;  %2067 = vmatmul.bf16.gmra.mxu2 %v1923_v60 }
 0x24d   : > { %2300 = vmatmul.bf16.gmra.mxu3 %v2156_v57 }
 0x24e   : > { %2533 = vmatmul.bf16.gmra.mxu0 %v2389_v48  ;;  %v3337_v15 = vpack.c.bf16 %v2555_v12, %v2554_v0  ;;  %v2650_v44 = vadd.f32 %v2649_v50, %v2555_v12  ;;  %v2688_v61 = vmul.f32 %v2555_v12, %v2555_v12  ;;  %v2390_v50 = vpack.c.bf16 %v2374_v4, %v2373_v23 }
 0x24f   : > { %v2028_v54 = vpop.f32.mrf.mxu2 }
 0x250   : > { %3393 = vst [vmem:[%s4133_s13 + $0x28] sm:$0xff] %v3337_v15   ;;  %v2719_v11 = vadd.f32 %v2718_v34, %v2688_v61  ;;  %v2090_v40 = vadd.f32 %v2028_v54, %v1856_v35  ;;  %v2261_v38 = vpop.f32.mrf.mxu3 }
 0x251   : > { %v1796_v45 = vpop.f32.mrf.mxu1 }
 0x252   : > { %v2323_v41 = vadd.f32 %v2261_v38, %v2090_v40  ;;  %v1857_v14 = vadd.f32 %v1796_v45, %v4052_v58 }
 0x253   : > { %v2496_v16 = vpop.f32.mrf.mxu0 }
 0x254   : > { %v2556_v13 = vadd.f32 %v2494_v18, %v2323_v41 }
 0x256   : > { %v2651_v42 = vadd.f32 %v2650_v44, %v2556_v13  ;;  %v2689_v8 = vmul.f32 %v2556_v13, %v2556_v13 }
 0x257   : > { %v2030_v63 = vpop.f32.mrf.mxu2 }
 0x258   : > { %v2720_v0 = vadd.f32 %v2719_v11, %v2689_v8  ;;  %v2091_v9 = vadd.f32 %v2030_v63, %v1857_v14  ;;  %v2263_v3 = vpop.f32.mrf.mxu3 }
 0x259   : > { %v1799_v28 = vpop.f32.mrf.mxu1 }
 0x25a   : > { %v2324_v5 = vadd.f32 %v2263_v3, %v2091_v9  ;;  %v1858_v56 = vadd.f32 %v1799_v28, %v4055_v21 }
 0x25b   : > { %v2499_v39 = vpop.f32.mrf.mxu0 }
 0x25c   : > { %v2557_v52 = vadd.f32 %v2496_v16, %v2324_v5  ;;  %1838 = vmatmul.bf16.gmra.mxu1 %v2389_v48  ;;  %2072 = vmatmul.bf16.gmra.mxu2 %v1924_v17 }
 0x25d   : > { %2305 = vmatmul.bf16.gmra.mxu3 %v2157_v30 }
 0x25e   : > { %2538 = vmatmul.bf16.gmra.mxu0 %v2390_v50  ;;  %v3342_v58 = vpack.c.bf16 %v2557_v52, %v2556_v13  ;;  %v2652_v47 = vadd.f32 %v2651_v42, %v2557_v52  ;;  %v2690_v43 = vmul.f32 %v2557_v52, %v2557_v52 }
 0x25f   : > { %v2033_v34 = vpop.f32.mrf.mxu2 }
 0x260   : > { %3394 = vst [vmem:[%s4133_s13 + $0x30] sm:$0xff] %v3342_v58   ;;  %v2721_v6 = vadd.f32 %v2720_v0, %v2690_v43  ;;  %v2092_v37 = vadd.f32 %v2033_v34, %v1858_v56  ;;  %v2266_v29 = vpop.f32.mrf.mxu3 }
 0x261   : > { %v1801_v60 = vpop.f32.mrf.mxu1 }
 0x262   : > { %v2325_v62 = vadd.f32 %v2266_v29, %v2092_v37  ;;  %v1859_v12 = vadd.f32 %v1801_v60, %v4060_v2 }
 0x263   : > { %v2501_v57 = vpop.f32.mrf.mxu0 }
 0x264   : > { %v2558_v36 = vadd.f32 %v2499_v39, %v2325_v62 }
 0x266   : > { %v2653_v18 = vadd.f32 %v2652_v47, %v2558_v36  ;;  %v2691_v48 = vmul.f32 %v2558_v36, %v2558_v36 }
 0x267   : > { %v2035_v15 = vpop.f32.mrf.mxu2 }
 0x268   : > { %v2722_v44 = vadd.f32 %v2721_v6, %v2691_v48  ;;  %v2093_v61 = vadd.f32 %v2035_v15, %v1859_v12  ;;  %v2268_v35 = vpop.f32.mrf.mxu3 }
 0x269   : > { %v1804_v54 = vpop.f32.mrf.mxu1 }
 0x26a   : > { %v2326_v21 = vadd.f32 %v2268_v35, %v2093_v61  ;;  %v1860_v16 = vadd.f32 %v1804_v54, %v4064_v7 }
 0x26b   : > { %v2504_v11 = vpop.f32.mrf.mxu0 }
 0x26c   : > { %v2559_v40 = vadd.f32 %v2501_v57, %v2326_v21 }
 0x26e   : > { %v3347_v38 = vpack.c.bf16 %v2559_v40, %v2558_v36  ;;  %v2654_v45 = vadd.f32 %v2653_v18, %v2559_v40  ;;  %v2692_v41 = vmul.f32 %v2559_v40, %v2559_v40 }
 0x26f   : > { %v2038_v13 = vpop.f32.mrf.mxu2 }
 0x270   : > { %3395 = vst [vmem:[%s4133_s13 + $0x38] sm:$0xff] %v3347_v38   ;;  %v2723_v55 = vadd.f32 %v2722_v44, %v2692_v41  ;;  %v2094_v20 = vadd.f32 %v2038_v13, %v1860_v16  ;;  %v2271_v42 = vpop.f32.mrf.mxu3 }
 0x271   : > { %v1806_v8 = vpop.f32.mrf.mxu1 }
 0x272   : > { %v2327_v2 = vadd.f32 %v2271_v42, %v2094_v20  ;;  %v1861_v0 = vadd.f32 %v1806_v8, %v4067_v25 }
 0x273   : > { %v2506_v14 = vpop.f32.mrf.mxu0 }
 0x274   : > { %v2560_v23 = vadd.f32 %v2504_v11, %v2327_v2 }
 0x276   : > { %v2655_v4 = vadd.f32 %v2654_v45, %v2560_v23  ;;  %v2693_v63 = vmul.f32 %v2560_v23, %v2560_v23 }
 0x277   : > { %v2040_v9 = vpop.f32.mrf.mxu2 }
 0x278   : > { %v2724_v3 = vadd.f32 %v2723_v55, %v2693_v63  ;;  %v2095_v17 = vadd.f32 %v2040_v9, %v1861_v0  ;;  %v2273_v28 = vpop.f32.mrf.mxu3 }
 0x279   : > { %v1809_v27 = vpop.f32.mrf.mxu1 }
 0x27a   : > { %v2328_v7 = vadd.f32 %v2273_v28, %v2095_v17  ;;  %v1862_v58 = vadd.f32 %v1809_v27, %v4071_v53 }
 0x27b   : > { %v2509_v30 = vpop.f32.mrf.mxu0 }
 0x27c   : > { %v2561_v50 = vadd.f32 %v2506_v14, %v2328_v7 }
 0x27e   : > { %v3352_v5 = vpack.c.bf16 %v2561_v50, %v2560_v23  ;;  %v2656_v39 = vadd.f32 %v2655_v4, %v2561_v50  ;;  %v2694_v52 = vmul.f32 %v2561_v50, %v2561_v50 }
 0x27f   : > { %v2043_v47 = vpop.f32.mrf.mxu2 }
 0x280   : > { %3396 = vst [vmem:[%s4133_s13 + $0x40] sm:$0xff] %v3352_v5   ;;  %v2725_v43 = vadd.f32 %v2724_v3, %v2694_v52  ;;  %v2096_v56 = vadd.f32 %v2043_v47, %v1862_v58  ;;  %v2276_v34 = vpop.f32.mrf.mxu3 }
 0x281   : > { %v1811_v6 = vpop.f32.mrf.mxu1 }
 0x282   : > { %v2329_v25 = vadd.f32 %v2276_v34, %v2096_v56  ;;  %v1863_v57 = vadd.f32 %v1811_v6, %v4076_v32 }
 0x283   : > { %v2511_v37 = vpop.f32.mrf.mxu0 }
 0x284   : > { %v2562_v29 = vadd.f32 %v2509_v30, %v2329_v25 }
 0x286   : > { %v2657_v60 = vadd.f32 %v2656_v39, %v2562_v29  ;;  %v2695_v62 = vmul.f32 %v2562_v29, %v2562_v29 }
 0x287   : > { %v2045_v36 = vpop.f32.mrf.mxu2 }
 0x288   : > { %v2726_v18 = vadd.f32 %v2725_v43, %v2695_v62  ;;  %v2097_v48 = vadd.f32 %v2045_v36, %v1863_v57  ;;  %v2278_v12 = vpop.f32.mrf.mxu3 }
 0x289   : > { %v1814_v15 = vpop.f32.mrf.mxu1 }
 0x28a   : > { %v2330_v53 = vadd.f32 %v2278_v12, %v2097_v48  ;;  %v1864_v11 = vadd.f32 %v1814_v15, %v4080_v24 }
 0x28b   : > { %v2514_v44 = vpop.f32.mrf.mxu0 }
 0x28c   : > { %v2563_v61 = vadd.f32 %v2511_v37, %v2330_v53 }
 0x28e   : > { %v3357_v35 = vpack.c.bf16 %v2563_v61, %v2562_v29  ;;  %v2658_v54 = vadd.f32 %v2657_v60, %v2563_v61  ;;  %v2696_v21 = vmul.f32 %v2563_v61, %v2563_v61 }
 0x28f   : > { %v2048_v40 = vpop.f32.mrf.mxu2 }
 0x290   : > { %3397 = vst [vmem:[%s4133_s13 + $0x48] sm:$0xff] %v3357_v35   ;;  %v2727_v38 = vadd.f32 %v2726_v18, %v2696_v21  ;;  %v2098_v45 = vadd.f32 %v2048_v40, %v1864_v11  ;;  %v2281_v41 = vpop.f32.mrf.mxu3 }
 0x291   : > { %v1816_v16 = vpop.f32.mrf.mxu1 }
 0x292   : > { %v2331_v32 = vadd.f32 %v2281_v41, %v2098_v45  ;;  %v1865_v8 = vadd.f32 %v1816_v16, %v4083_v49 }
 0x293   : > { %v2516_v13 = vpop.f32.mrf.mxu0 }
 0x294   : > { %v2564_v55 = vadd.f32 %v2514_v44, %v2331_v32 }
 0x296   : > { %v2659_v20 = vadd.f32 %v2658_v54, %v2564_v55  ;;  %v2697_v42 = vmul.f32 %v2564_v55, %v2564_v55 }
 0x297   : > { %v2050_v2 = vpop.f32.mrf.mxu2 }
 0x298   : > { %v2728_v14 = vadd.f32 %v2727_v38, %v2697_v42  ;;  %v2099_v23 = vadd.f32 %v2050_v2, %v1865_v8  ;;  %v2283_v4 = vpop.f32.mrf.mxu3 }
 0x299   : > { %v1819_v63 = vpop.f32.mrf.mxu1 }
 0x29a   : > { %v2332_v24 = vadd.f32 %v2283_v4, %v2099_v23  ;;  %v1866_v27 = vadd.f32 %v1819_v63, %v4087_v19 }
 0x29b   : > { %v2519_v0 = vpop.f32.mrf.mxu0 }
 0x29c   : > { %v2565_v9 = vadd.f32 %v2516_v13, %v2332_v24 }
 0x29e   : > { %v3362_v3 = vpack.c.bf16 %v2565_v9, %v2564_v55  ;;  %v2660_v17 = vadd.f32 %v2659_v20, %v2565_v9  ;;  %v2698_v28 = vmul.f32 %v2565_v9, %v2565_v9 }
 0x29f   : > { %v2053_v7 = vpop.f32.mrf.mxu2 }
 0x2a0   : > { %3398 = vst [vmem:[%s4133_s13 + $0x50] sm:$0xff] %v3362_v3   ;;  %v2729_v30 = vadd.f32 %v2728_v14, %v2698_v28  ;;  %v2100_v50 = vadd.f32 %v2053_v7, %v1866_v27  ;;  %v2286_v5 = vpop.f32.mrf.mxu3 }
 0x2a1   : > { %v1821_v39 = vpop.f32.mrf.mxu1 }
 0x2a2   : > { %v2333_v49 = vadd.f32 %v2286_v5, %v2100_v50  ;;  %v1867_v56 = vadd.f32 %v1821_v39, %v4090_v51 }
 0x2a3   : > { %v2521_v52 = vpop.f32.mrf.mxu0 }
 0x2a4   : > { %v2566_v58 = vadd.f32 %v2519_v0, %v2333_v49 }
 0x2a6   : > { %v2661_v47 = vadd.f32 %v2660_v17, %v2566_v58  ;;  %v2699_v43 = vmul.f32 %v2566_v58, %v2566_v58 }
 0x2a7   : > { %v2055_v34 = vpop.f32.mrf.mxu2 }
 0x2a8   : > { %v2730_v6 = vadd.f32 %v2729_v30, %v2699_v43  ;;  %v2101_v25 = vadd.f32 %v2055_v34, %v1867_v56  ;;  %v2288_v37 = vpop.f32.mrf.mxu3 }
 0x2a9   : > { %v1824_v29 = vpop.f32.mrf.mxu1 }
 0x2aa   : > { %v2334_v19 = vadd.f32 %v2288_v37, %v2101_v25  ;;  %v1868_v48 = vadd.f32 %v1824_v29, %v4094_v46 }
 0x2ab   : > { %v2524_v60 = vpop.f32.mrf.mxu0 }
 0x2ac   : > { %v2567_v62 = vadd.f32 %v2521_v52, %v2334_v19 }
 0x2ae   : > { %v3367_v57 = vpack.c.bf16 %v2567_v62, %v2566_v58  ;;  %v2662_v36 = vadd.f32 %v2661_v47, %v2567_v62  ;;  %v2700_v18 = vmul.f32 %v2567_v62, %v2567_v62 }
 0x2af   : > { %v2058_v12 = vpop.f32.mrf.mxu2 }
 0x2b0   : > { %3399 = vst [vmem:[%s4133_s13 + $0x58] sm:$0xff] %v3367_v57   ;;  %v2731_v15 = vadd.f32 %v2730_v6, %v2700_v18  ;;  %v2102_v53 = vadd.f32 %v2058_v12, %v1868_v48  ;;  %v2291_v44 = vpop.f32.mrf.mxu3 }
 0x2b1   : > { %v1826_v61 = vpop.f32.mrf.mxu1 }
 0x2b2   : > { %v2335_v51 = vadd.f32 %v2291_v44, %v2102_v53  ;;  %v1869_v40 = vadd.f32 %v1826_v61, %v4097_v1 }
 0x2b3   : > { %v2526_v35 = vpop.f32.mrf.mxu0 }
 0x2b4   : > { %v2568_v54 = vadd.f32 %v2524_v60, %v2335_v51 }
 0x2b6   : > { %v2663_v21 = vadd.f32 %v2662_v36, %v2568_v54  ;;  %v2701_v11 = vmul.f32 %v2568_v54, %v2568_v54 }
 0x2b7   : > { %v2060_v38 = vpop.f32.mrf.mxu2 }
 0x2b8   : > { %v2732_v45 = vadd.f32 %v2731_v15, %v2701_v11  ;;  %v2103_v41 = vadd.f32 %v2060_v38, %v1869_v40  ;;  %v2293_v16 = vpop.f32.mrf.mxu3 }
 0x2b9   : > { %v1829_v32 = vpop.f32.mrf.mxu1 }
 0x2ba   : > { %v2336_v46 = vadd.f32 %v2293_v16, %v2103_v41  ;;  %v1870_v2 = vadd.f32 %v1829_v32, %v4101_v22 }
 0x2bb   : > { %v2529_v13 = vpop.f32.mrf.mxu0 }
 0x2bc   : > { %v2569_v55 = vadd.f32 %v2526_v35, %v2336_v46 }
 0x2be   : > { %v3372_v20 = vpack.c.bf16 %v2569_v55, %v2568_v54  ;;  %v2664_v42 = vadd.f32 %v2663_v21, %v2569_v55  ;;  %v2702_v8 = vmul.f32 %v2569_v55, %v2569_v55 }
 0x2bf   : > { %v2063_v14 = vpop.f32.mrf.mxu2 }
 0x2c0   : > { %3400 = vst [vmem:[%s4133_s13 + $0x60] sm:$0xff] %v3372_v20   ;;  %v2733_v23 = vadd.f32 %v2732_v45, %v2702_v8  ;;  %v2104_v4 = vadd.f32 %v2063_v14, %v1870_v2  ;;  %v2296_v63 = vpop.f32.mrf.mxu3 }
 0x2c1   : > { %v1831_v24 = vpop.f32.mrf.mxu1 }
 0x2c2   : > { %v2337_v1 = vadd.f32 %v2296_v63, %v2104_v4  ;;  %v1871_v28 = vadd.f32 %v1831_v24, %v4106_v33 }
 0x2c3   : > { %v2531_v0 = vpop.f32.mrf.mxu0 }
 0x2c4   : > { %v2570_v9 = vadd.f32 %v2529_v13, %v2337_v1 }
 0x2c6   : > { %v2665_v3 = vadd.f32 %v2664_v42, %v2570_v9  ;;  %v2703_v17 = vmul.f32 %v2570_v9, %v2570_v9 }
 0x2c7   : > { %v2065_v27 = vpop.f32.mrf.mxu2 }
 0x2c8   : > { %v2734_v7 = vadd.f32 %v2733_v23, %v2703_v17  ;;  %v2105_v30 = vadd.f32 %v2065_v27, %v1871_v28  ;;  %v2298_v50 = vpop.f32.mrf.mxu3 }
 0x2c9   : > { %v1834_v5 = vpop.f32.mrf.mxu1 }
 0x2ca   : > { %v2338_v22 = vadd.f32 %v2298_v50, %v2105_v30  ;;  %v1872_v43 = vadd.f32 %v1834_v5, %v4110_v26 }
 0x2cb   : > { %v2534_v49 = vpop.f32.mrf.mxu0 }
 0x2cc   : > { %v2571_v39 = vadd.f32 %v2531_v0, %v2338_v22 }
 0x2ce   : > { %v3377_v52 = vpack.c.bf16 %v2571_v39, %v2570_v9  ;;  %v2666_v58 = vadd.f32 %v2665_v3, %v2571_v39  ;;  %v2704_v47 = vmul.f32 %v2571_v39, %v2571_v39 }
 0x2cf   : > { %v2068_v56 = vpop.f32.mrf.mxu2 }
 0x2d0   : > { %3401 = vst [vmem:[%s4133_s13 + $0x68] sm:$0xff] %v3377_v52   ;;  %v2735_v34 = vadd.f32 %v2734_v7, %v2704_v47  ;;  %v2106_v6 = vadd.f32 %v2068_v56, %v1872_v43  ;;  %v2301_v25 = vpop.f32.mrf.mxu3 }
 0x2d1   : > { %v1836_v37 = vpop.f32.mrf.mxu1 }
 0x2d2   : > { %v2339_v33 = vadd.f32 %v2301_v25, %v2106_v6  ;;  %v1873_v62 = vadd.f32 %v1836_v37, %v4113_v31 }
 0x2d3   : > { %v2536_v57 = vpop.f32.mrf.mxu0 }
 0x2d4   : > { %v2572_v29 = vadd.f32 %v2534_v49, %v2339_v33 }
 0x2d6   : > { %v2667_v19 = vadd.f32 %v2666_v58, %v2572_v29  ;;  %v2705_v60 = vmul.f32 %v2572_v29, %v2572_v29 }
 0x2d7   : > { %v2070_v36 = vpop.f32.mrf.mxu2 }
 0x2d8   : > { %v2736_v18 = vadd.f32 %v2735_v34, %v2705_v60  ;;  %v2107_v48 = vadd.f32 %v2070_v36, %v1873_v62  ;;  %v2303_v12 = vpop.f32.mrf.mxu3 }
 0x2d9   : > { %v1839_v15 = vpop.f32.mrf.mxu1 }
 0x2da   : > { %v2340_v26 = vadd.f32 %v2303_v12, %v2107_v48  ;;  %v1874_v35 = vadd.f32 %v1839_v15, %v4117_v59 }
 0x2db   : > { %v2539_v38 = vpop.f32.mrf.mxu0 }
 0x2dc   : > { %v2573_v53 = vadd.f32 %v2536_v57, %v2340_v26 }
 0x2de   : > { %v3382_v44 = vpack.c.bf16 %v2573_v53, %v2572_v29  ;;  %v2668_v61 = vadd.f32 %v2667_v19, %v2573_v53  ;;  %v2706_v51 = vmul.f32 %v2573_v53, %v2573_v53 }
 0x2df   : > { %v2073_v54 = vpop.f32.mrf.mxu2 }
 0x2e0   : > { %3402 = vst [vmem:[%s4133_s13 + $0x70] sm:$0xff] %v3382_v44   ;;  %v2737_v21 = vadd.f32 %v2736_v18, %v2706_v51  ;;  %v2108_v11 = vadd.f32 %v2073_v54, %v1874_v35  ;;  %v2306_v40 = vpop.f32.mrf.mxu3 }
 0x2e1   : > { %v1841_v45 = vpop.f32.mrf.mxu1 }
 0x2e2   : > { %v2341_v31 = vadd.f32 %v2306_v40, %v2108_v11  ;;  %v1875_v46 = vadd.f32 %v1841_v45, %v4122_v10 }
 0x2e3   : > { %v2541_v59 = vpop.f32.mrf.mxu0 }
 0x2e4   : > { %v2574_v41 = vadd.f32 %v2539_v38, %v2341_v31 }
 0x2e6   : > { %v2669_v16 = vadd.f32 %v2668_v61, %v2574_v41  ;;  %v2707_v32 = vmul.f32 %v2574_v41, %v2574_v41 }
 0x2e7   : > { %v2075_v13 = vpop.f32.mrf.mxu2 }
 0x2e8   : > { %v2738_v55 = vadd.f32 %v2737_v21, %v2707_v32  ;;  %v2109_v20 = vadd.f32 %v2075_v13, %v1875_v46  ;;  %v2308_v42 = vpop.f32.mrf.mxu3 }
 0x2ea   : > { %v2342_v8 = vadd.f32 %v2308_v42, %v2109_v20 }
 0x2ec   : > { %v2575_v2 = vadd.f32 %v2541_v59, %v2342_v8 }
 0x2ee   : > { %v3387_v14 = vpack.c.bf16 %v2575_v2, %v2574_v41  ;;  %v2670_v23 = vadd.f32 %v2669_v16, %v2575_v2  ;;  %v2708_v4 = vmul.f32 %v2575_v2, %v2575_v2 }
 0x2f0   : > { %3403 = vst [vmem:[%s4133_s13 + $0x78] sm:$0xff] %v3387_v14   ;;  %v2671_v63 = vrot.slane %v2670_v23, 4  ;;  %v2739_v24 = vadd.f32 %v2738_v55, %v2708_v4 }
 0x2f2   : > { %v2672_v1 = vadd.f32 %v2671_v63, %v2670_v23  ;;  %v2740_v0 = vrot.slane %v2739_v24, 4 }
 0x2f4   : > { %v2673_v9 = vrot.slane %v2672_v1, 2  ;;  %v2741_v3 = vadd.f32 %v2740_v0, %v2739_v24 }
 0x2f6   : > { %v2674_v17 = vadd.f32 %v2673_v9, %v2672_v1  ;;  %v2742_v10 = vrot.slane %v2741_v3, 2 }
 0x2f8   : > { %v2675_v28 = vrot.slane %v2674_v17, 1  ;;  %v2743_v27 = vadd.f32 %v2742_v10, %v2741_v3 }
 0x2fa   : > { %v2744_v7 = vrot.slane %v2743_v27, 1  ;;  %v2676_v30 = vadd.f32 %v2675_v28, %v2674_v17 }
 0x2fc   : > { %v2745_v50 = vadd.f32 %v2744_v7, %v2743_v27 }
 0x2fe   : > { %v2747_v5 = vsel %vm2746_vm0, %v2676_v30, %v2745_v50 }
 0x2ff   : > { %2748 = vst [vmem:[%s411_s17] sm:$0x3] %v2747_v5 }
 0x300 PF: > { %s16_s0 = sadd.s32 1, %s3476_s0   ;;  %s4235_s18 = smov %s3472_s19 }
 0x301   : > { %p13_p5 = scmp.ge.s32.totalorder %s16_s0, 4   ;;  %s4236_s19 = smov %s4238_s2 }
 0x303   :  { %15 = sbr.rel (!%p13_p5) target bundleno = 2 (0x2), region = 104 }

// kernel: resblock_forward.4
= control target key start
LH: loop header
LB: loop body
LE: loop exit
PB: predicated region body
PF: predicated region fallthrough
CT: control target
= control target key end

     0   :  { %s3773_s21 = smov 0   ;;  %s3775_s0 = smov 0   ;;  %s4548_s0 = inlined_call_operand.vmem [shape: bf16[2,16,16,128], index: 0, kind: input, shape index: {}, may-alias: {0,1,2}]   ;;  %s4549_s1 = inlined_call_operand.vmem [shape: bf16[2,16,16,128], index: 1, kind: input, shape index: {}, may-alias: {0,1,2}]   ;;  %s4550_s2 = inlined_call_operand.vmem [shape: bf16[2,16,16,128], index: 2, kind: input, shape index: {}, may-alias: {0,1,2}]   ;;  %s4551_s3 = inlined_call_operand.vmem [shape: f32[8,128], index: 3, kind: input, shape index: {}]   ;;  %s4552_s4 = inlined_call_operand.vmem [shape: bf16[1152,128], index: 4, kind: input, shape index: {}]   ;;  %s4553_s5 = inlined_call_operand.vmem [shape: bf16[2,16,16,128], index: 5, kind: output, shape index: {0}]   ;;  %s4554_s6 = inlined_call_operand.vmem [shape: f32[2,1,2,128], index: 6, kind: output, shape index: {1}]  }
   0x1   :  { %s3777_s22 = smov 0  }
   0x2 LB: > { %s29_s2 = sadd.s32 1, %s3730_s0  ;;  %p3107_p0 = scmp.ge.s32.totalorder %s3734_s22, 1  ;;  %s3734_s22 = sphi %s3777_s22, %s17_s22   ;;  %s3730_s0 = sphi %s3775_s0, %s4575_s0   ;;  %s3726_s21 = sphi %s3773_s21, %s4574_s21  }
   0x3   : > { %p31_p1 = scmp.ge.s32.totalorder %s29_s2, 2  ;;  %p303_p2 = scmp.lt.s32.totalorder %s3734_s22, 3 }
   0x5   : > { %s4577_s2 = smov (%p31_p1, %s29_s2), 0  ;;  %p304_p3 = pnand %p3107_p0, %p303_p2 }
   0x7   : > { %307 = sbr.rel (%p304_p3) target bundleno = 768 (0x300), region = 40 }
   0xc   : > { %v3427_v0 = vld [vmem:[%s4552_s4 + $0x78] sm:$0xff]  ;;  %p394_p4 = scmp.lt.s32.totalorder %s3726_s21, 1  ;;  %v3426_v1 = vld [vmem:[%s4552_s4 + $0x70] sm:$0xff]  ;;  %v3736_v2 = vmov 0.0   ;;  %v3425_v3 = vld [vmem:[%s4552_s4 + $0x68] sm:$0xff]  ;;  %vm2921_vm0 = vcmask 1040384  }
   0xd   : > { %3658 = vmatpush.bf16.msra.mxu1 %v3427_v0  ;;  %3659 = vmatpush.bf16.msra.mxu2 %v3427_v0  ;;  %676 = vst [vmem:[#allocation2 + $0x1] sm:$0xff] %v3736_v2  ;;  %v3815_v4 = vld [vmem:[%s4551_s3] ss:$0 sm:$0xff]  ;;  %v3825_v10 = vld [vmem:[%s4551_s3 + $0x1] ss:$0 sm:$0xff]  ;;  %v3423_v28 = vld [vmem:[%s4552_s4 + $0x58] sm:$0xff] }
   0xe   : > { %s4579_s21 = smov (!%p394_p4, %s3726_s21), 1  ;;  %3660 = vmatpush.bf16.msra.mxu3 %v3427_v0  ;;  %893 = vmatpush.bf16.msra.mxu0 %v3427_v0  ;;  %677 = vst [vmem:[#allocation2 + $0x9] sm:$0xff] %v3736_v2  ;;  %v3424_v19 = vld [vmem:[%s4552_s4 + $0x60] sm:$0xff]  ;;  %v3422_v34 = vld [vmem:[%s4552_s4 + $0x50] sm:$0xff]  ;;  %v3421_v36 = vld [vmem:[%s4552_s4 + $0x48] sm:$0xff]  ;;  %v3737_v0 = vmov 0.0|0.0  }
   0xf   : > { %s3408_s27 = sshll.u32 %s4579_s21, 7  ;;  %441 = vst [vmem:[#allocation2] sm:$0x1] %v3736_v2  ;;  %v3420_v38 = vld [vmem:[%s4552_s4 + $0x40] sm:$0xff]  ;;  %v3435_v44 = vld [vmem:[%s4552_s4 + $0xb8] sm:$0xff]  ;;  %v3434_v58 = vld [vmem:[%s4552_s4 + $0xb0] sm:$0xff] }
  0x10   : > { %s3810_s8 = scalar_lea.vmem %s4549_s1, %s3408_s27  ;;  %442 = vst [vmem:[#allocation2 + $0x18] sm:$0x1] %v3736_v2  ;;  %v3443_v45 = vld [vmem:[%s4552_s4 + $0xf8] sm:$0xff]  ;;  %v3442_v59 = vld [vmem:[%s4552_s4 + $0xf0] sm:$0xff]  ;;  %s4482_s16 = scalar_lea.vmem %s4553_s5, %s3408_s27 }
  0x11   : > { %3661 = vmatpush.bf16.msra.mxu1 %v3426_v1  ;;  %3662 = vmatpush.bf16.msra.mxu2 %v3426_v1  ;;  %v3630_v5 = vld [vmem:[%s3810_s8 + $0x18] sm:$0xff]   ;;  %443 = vst [vmem:[#allocation2 + $0x30] sm:$0x1] %v3736_v2  ;;  %v3631_v37 = vld [vmem:[%s3810_s8 + $0x20] sm:$0xff]   ;;  %s3116_s27 = sshll.u32 %s4579_s21, 1 }
  0x12   : > { %v3634_v6 = vld [vmem:[%s3810_s8 + $0x38] sm:$0xff]   ;;  %3663 = vmatpush.bf16.msra.mxu3 %v3426_v1  ;;  %894 = vmatpush.bf16.msra.mxu0 %v3426_v1  ;;  %v3498_v8 = vunpack.c.l.bf16 %v3630_v5  ;;  %v3499_v9 = vunpack.c.h.bf16 %v3630_v5  ;;  %444 = vst [vmem:[#allocation2 + $0x48] sm:$0x1] %v3736_v2  ;;  %v3635_v39 = vld [vmem:[%s3810_s8 + $0x40] sm:$0xff]   ;;  %v3502_v41 = vunpack.c.l.bf16 %v3631_v37  ;;  %v3503_v46 = vunpack.c.h.bf16 %v3631_v37  ;;  %v3628_v37 = vld [vmem:[%s3810_s8 + $0x8] sm:$0xff]   ;;  %s438_s19 = scalar_lea.vmem %s4554_s6, %s3116_s27 }
  0x13   : > { %v3638_v7 = vld [vmem:[%s3810_s8 + $0x58] sm:$0xff]   ;;  %v3514_v11 = vunpack.c.l.bf16 %v3634_v6  ;;  %v3515_v12 = vunpack.c.h.bf16 %v3634_v6  ;;  %445 = vst [vmem:[#allocation2 + $0x60] sm:$0x1] %v3736_v2  ;;  %v3639_v40 = vld [vmem:[%s3810_s8 + $0x60] sm:$0xff]   ;;  %v3518_v48 = vunpack.c.l.bf16 %v3635_v39  ;;  %v3519_v49 = vunpack.c.h.bf16 %v3635_v39  ;;  %v3418_v6 = vld [vmem:[%s4552_s4 + $0x30] sm:$0xff] }
  0x14   : > { %v3530_v13 = vunpack.c.l.bf16 %v3638_v7  ;;  %v3531_v14 = vunpack.c.h.bf16 %v3638_v7  ;;  %v548_v15 = vmul.f32 %v3815_v4, %v3498_v8  ;;  %v549_v16 = vmul.f32 %v3815_v4, %v3499_v9  ;;  %446 = vst [vmem:[#allocation2 + $0x78] sm:$0x1] %v3736_v2  ;;  %v3485_v42 = vld [vmem:[%s3810_s8] sm:$0xff]   ;;  %v3419_v55 = vld [vmem:[%s4552_s4 + $0x38] sm:$0xff]  ;;  %v3450_v8 = vld [vmem:[%s4552_s4 + $0x130] sm:$0xff] }
  0x15   : > { %v556_v17 = vmul.f32 %v3815_v4, %v3514_v11  ;;  %v557_v18 = vmul.f32 %v3815_v4, %v3515_v12  ;;  %3664 = vmatpush.bf16.msra.mxu1 %v3425_v3  ;;  %3665 = vmatpush.bf16.msra.mxu2 %v3425_v3  ;;  %447 = vst [vmem:[#allocation2 + $0x90] sm:$0x1] %v3736_v2  ;;  %v3534_v50 = vunpack.c.l.bf16 %v3639_v40  ;;  %v3535_v52 = vunpack.c.h.bf16 %v3639_v40  ;;  %v3451_v56 = vld [vmem:[%s4552_s4 + $0x138] sm:$0xff]  ;;  %v3433_v11 = vld [vmem:[%s4552_s4 + $0xa8] sm:$0xff] }
  0x16   : > { %v564_v20 = vmul.f32 %v3815_v4, %v3530_v13  ;;  %v565_v21 = vmul.f32 %v3815_v4, %v3531_v14  ;;  %3666 = vmatpush.bf16.msra.mxu3 %v3425_v3  ;;  %895 = vmatpush.bf16.msra.mxu0 %v3425_v3  ;;  %v581_v22 = vadd.f32 %v3825_v10, %v548_v15  ;;  %v3486_v53 = vunpack.c.l.bf16 %v3485_v42  ;;  %v3441_v12 = vld [vmem:[%s4552_s4 + $0xe8] sm:$0xff] }
  0x17   : > { %v582_v23 = vadd.f32 %v3825_v10, %v549_v16  ;;  %v589_v24 = vadd.f32 %v3825_v10, %v556_v17  ;;  %v590_v25 = vadd.f32 %v3825_v10, %v557_v18  ;;  %448 = vst [vmem:[#allocation2 + $0xa8] sm:$0x1] %v3736_v2  ;;  %v3487_v54 = vunpack.c.h.bf16 %v3485_v42  ;;  %v3439_v42 = vld [vmem:[%s4552_s4 + $0xd8] sm:$0xff] }
  0x18   : > { %v613_v26 = vmax.f32 %v581_v22, 0.0  ;;  %v597_v27 = vadd.f32 %v3825_v10, %v564_v20  ;;  %449 = vst [vmem:[#allocation2 + $0xc0] sm:$0x1] %v3736_v2  ;;  %v598_v30 = vadd.f32 %v3825_v10, %v565_v21  ;;  %v550_v57 = vmul.f32 %v3815_v4, %v3502_v41  ;;  %v3417_v20 = vld [vmem:[%s4552_s4 + $0x28] sm:$0xff]  ;;  %v3431_v41 = vld [vmem:[%s4552_s4 + $0x98] sm:$0xff] }
  0x19   : > { %3667 = vmatpush.bf16.msra.mxu1 %v3424_v19  ;;  %3668 = vmatpush.bf16.msra.mxu2 %v3424_v19  ;;  %v614_v29 = vmax.f32 %v582_v23, 0.0  ;;  %450 = vst [vmem:[#allocation2 + $0xd8] sm:$0x1] %v3736_v2  ;;  %v621_v31 = vmax.f32 %v589_v24, 0.0  ;;  %v622_v32 = vmax.f32 %v590_v25, 0.0  ;;  %v551_v60 = vmul.f32 %v3815_v4, %v3503_v46  ;;  %v3449_v21 = vld [vmem:[%s4552_s4 + $0x128] sm:$0xff] }
  0x1a   : > { %3669 = vmatpush.bf16.msra.mxu3 %v3424_v19  ;;  %896 = vmatpush.bf16.msra.mxu0 %v3424_v19  ;;  %646 = vst [vmem:[#allocation2 + $0x61] sm:$0xff] %v613_v26  ;;  %v629_v33 = vmax.f32 %v597_v27, 0.0  ;;  %v630_v35 = vmax.f32 %v598_v30, 0.0  ;;  %v558_v61 = vmul.f32 %v3815_v4, %v3518_v48  ;;  %v559_v62 = vmul.f32 %v3815_v4, %v3519_v49  ;;  %v3432_v23 = vld [vmem:[%s4552_s4 + $0xa0] sm:$0xff]  ;;  %v3632_v25 = vld [vmem:[%s3810_s8 + $0x28] sm:$0xff]  }
  0x1b   : > { %647 = vst [vmem:[#allocation2 + $0x69] sm:$0xff] %v614_v29  ;;  %v3873_v43 = vpack.c.bf16 %v614_v29, %v613_v26  ;;  %v821_v47 = vpack.c.bf16 %v622_v32, %v621_v31  ;;  %v566_v63 = vmul.f32 %v3815_v4, %v3534_v50  ;;  %v567_v1 = vmul.f32 %v3815_v4, %v3535_v52  ;;  %v3440_v24 = vld [vmem:[%s4552_s4 + $0xe0] sm:$0xff]  ;;  %v3636_v29 = vld [vmem:[%s3810_s8 + $0x48] sm:$0xff]  }
  0x1c   : > { %654 = vst [vmem:[#allocation2 + $0xc1] sm:$0xff] %v621_v31  ;;  %v825_v51 = vpack.c.bf16 %v630_v35, %v629_v33  ;;  %v542_v3 = vmul.f32 %v3815_v4, %v3486_v53  ;;  %v543_v5 = vmul.f32 %v3815_v4, %v3487_v54  ;;  %v3914_v7 = vadd.f32 %v3825_v10, %v550_v57  ;;  %v3415_v54 = vld [vmem:[%s4552_s4 + $0x18] sm:$0xff] }
  0x1d   : > { %3670 = vmatpush.bf16.msra.mxu1 %v3423_v28  ;;  %3671 = vmatpush.bf16.msra.mxu2 %v3423_v28  ;;  %655 = vst [vmem:[#allocation2 + $0xc9] sm:$0xff] %v622_v32  ;;  %v3921_v9 = vadd.f32 %v3825_v10, %v551_v60  ;;  %v3931_v13 = vadd.f32 %v3825_v10, %v558_v61  ;;  %v3522_v39 = vunpack.c.l.bf16 %v3636_v29  ;;  %v3523_v40 = vunpack.c.h.bf16 %v3636_v29  ;;  %v3633_v60 = vld [vmem:[%s3810_s8 + $0x30] sm:$0xff]   ;;  %v3445_v29 = vld [vmem:[%s4552_s4 + $0x108] sm:$0xff] }
  0x1e   : > { %3672 = vmatpush.bf16.msra.mxu3 %v3423_v28  ;;  %897 = vmatpush.bf16.msra.mxu0 %v3423_v28  ;;  %662 = vst [vmem:[#allocation2 + $0x121] sm:$0xff] %v629_v33  ;;  %v3934_v14 = vadd.f32 %v3825_v10, %v559_v62  ;;  %v3937_v15 = vadd.f32 %v3825_v10, %v566_v63  ;;  %v615_v19 = vmax.f32 %v3914_v7, 0.0  ;;  %v3640_v33 = vld [vmem:[%s3810_s8 + $0x68] sm:$0xff]   ;;  %v3490_v50 = vunpack.c.l.bf16 %v3628_v37  ;;  %v3446_v7 = vld [vmem:[%s4552_s4 + $0x110] sm:$0xff] }
  0x1f   : > { %663 = vst [vmem:[#allocation2 + $0x129] sm:$0xff] %v630_v35  ;;  %v3941_v16 = vadd.f32 %v3825_v10, %v567_v1  ;;  %v3944_v17 = vadd.f32 %v3825_v10, %v542_v3  ;;  %v3947_v18 = vadd.f32 %v3825_v10, %v543_v5  ;;  %v616_v22 = vmax.f32 %v3921_v9, 0.0  ;;  %v3414_v5 = vld [vmem:[%s4552_s4 + $0x10] sm:$0xff] }
  0x20   : > { %451 = vst [vmem:[#allocation2 + $0xf0] sm:$0x1] %v3736_v2  ;;  %v623_v26 = vmax.f32 %v3931_v13, 0.0  ;;  %v624_v27 = vmax.f32 %v3934_v14, 0.0  ;;  %v631_v28 = vmax.f32 %v3937_v15, 0.0  ;;  %v3506_v35 = vunpack.c.l.bf16 %v3632_v25  ;;  %v3429_v13 = vld [vmem:[%s4552_s4 + $0x88] sm:$0xff] }
  0x21   : > { %3673 = vmatpush.bf16.msra.mxu1 %v3422_v34  ;;  %3674 = vmatpush.bf16.msra.mxu2 %v3422_v34  ;;  %452 = vst [vmem:[#allocation2 + $0x108] sm:$0x1] %v3736_v2  ;;  %v632_v30 = vmax.f32 %v3941_v16, 0.0  ;;  %v607_v31 = vmax.f32 %v3944_v17, 0.0  ;;  %v608_v32 = vmax.f32 %v3947_v18, 0.0  ;;  %v3538_v46 = vunpack.c.l.bf16 %v3640_v33  ;;  %v3413_v16 = vld [vmem:[%s4552_s4 + $0x8] sm:$0xff] }
  0x22   : > { %3675 = vmatpush.bf16.msra.mxu3 %v3422_v34  ;;  %898 = vmatpush.bf16.msra.mxu0 %v3422_v34  ;;  %453 = vst [vmem:[#allocation2 + $0x120] sm:$0x1] %v3736_v2  ;;  %v3416_v34 = vld [vmem:[%s4552_s4 + $0x20] sm:$0xff]  ;;  %v552_v52 = vmul.f32 %v3815_v4, %v3506_v35  ;;  %v561_v57 = vmul.f32 %v3815_v4, %v3523_v40 }
  0x23   : > { %454 = vst [vmem:[#allocation2 + $0x138] sm:$0x1] %v3736_v2  ;;  %v826_v48 = vpack.c.bf16 %v632_v30, %v631_v28  ;;  %v4007_v49 = vpack.c.bf16 %v608_v32, %v607_v31  ;;  %v544_v62 = vmul.f32 %v3815_v4, %v3490_v50  ;;  %v3436_v35 = vld [vmem:[%s4552_s4 + $0xc0] sm:$0xff] }
  0x24   : > { %455 = vst [vmem:[#allocation2 + $0x150] sm:$0x1] %v3736_v2  ;;  %v4037_v1 = vadd.f32 %v3825_v10, %v552_v52  ;;  %v594_v9 = vadd.f32 %v3825_v10, %v561_v57 }
  0x25   : > { %3676 = vmatpush.bf16.msra.mxu1 %v3421_v36  ;;  %3677 = vmatpush.bf16.msra.mxu2 %v3421_v36  ;;  %456 = vst [vmem:[#allocation2 + $0x168] sm:$0x1] %v3736_v2 }
  0x26   : > { %3678 = vmatpush.bf16.msra.mxu3 %v3421_v36  ;;  %899 = vmatpush.bf16.msra.mxu0 %v3421_v36  ;;  %457 = vst [vmem:[#allocation2 + $0x180] sm:$0x1] %v3736_v2  ;;  %v3507_v36 = vunpack.c.h.bf16 %v3632_v25  ;;  %v3629_v25 = vld [vmem:[%s3810_s8 + $0x10] sm:$0xff]   ;;  %v617_v15 = vmax.f32 %v4037_v1, 0.0 }
  0x27   : > { %458 = vst [vmem:[#allocation2 + $0x198] sm:$0x1] %v3736_v2 }
  0x28   : > { %459 = vst [vmem:[#allocation2 + $0x11] sm:$0x1] %v3736_v2  ;;  %v553_v53 = vmul.f32 %v3815_v4, %v3507_v36 }
  0x29   : > { %3679 = vmatpush.bf16.msra.mxu1 %v3420_v38  ;;  %3680 = vmatpush.bf16.msra.mxu2 %v3420_v38  ;;  %460 = vst [vmem:[#allocation2 + $0x29] sm:$0x1] %v3736_v2 }
  0x2a   : > { %3681 = vmatpush.bf16.msra.mxu3 %v3420_v38  ;;  %900 = vmatpush.bf16.msra.mxu0 %v3420_v38  ;;  %461 = vst [vmem:[#allocation2 + $0x41] sm:$0x1] %v3736_v2  ;;  %v3448_v38 = vld [vmem:[%s4552_s4 + $0x120] sm:$0xff]  ;;  %v4040_v3 = vadd.f32 %v3825_v10, %v553_v53 }
  0x2b   : > { %462 = vst [vmem:[#allocation2 + $0x59] sm:$0x1] %v3736_v2 }
  0x2c   : > { %921 = vmatmul.bf16.vlgmr.msra.gmra.mxu1 %v3873_v43  ;;  %941 = vmatmul.bf16.vlgmr.msra.gmra.mxu2 %v821_v47  ;;  %463 = vst [vmem:[#allocation2 + $0x71] sm:$0x1] %v3736_v2  ;;  %v3539_v47 = vunpack.c.h.bf16 %v3640_v33 }
  0x2d   : > { %1231 = vmatpush.bf16.msrb.mxu2 %v3435_v44  ;;  %961 = vmatmul.bf16.vlgmr.msra.gmra.mxu3 %v825_v51  ;;  %464 = vst [vmem:[#allocation2 + $0x89] sm:$0x1] %v3736_v2  ;;  %v3992_v44 = vpack.c.bf16 %v616_v22, %v615_v19  ;;  %v3491_v51 = vunpack.c.h.bf16 %v3628_v37 }
  0x2e   : > { %1464 = vmatpush.bf16.msrb.mxu3 %v3443_v45  ;;  %901 = vmatmul.bf16.vlgmr.msra.gmra.mxu0 %v3737_v0  ;;  %465 = vst [vmem:[#allocation2 + $0xa1] sm:$0x1] %v3736_v2  ;;  %v3996_v45 = vpack.c.bf16 %v624_v27, %v623_v26  ;;  %v569_v61 = vmul.f32 %v3815_v4, %v3539_v47  ;;  %v3637_v0 = vld [vmem:[%s3810_s8 + $0x50] sm:$0xff]   ;;  %v3412_v47 = vld [vmem:[%s4552_s4] sm:$0xff] }
  0x2f   : > { %1030 = vmatpush.bf16.msrb.mxu1 %v3419_v55  ;;  %1697 = vmatpush.bf16.msrb.mxu0 %v3451_v56  ;;  %466 = vst [vmem:[#allocation2 + $0xb9] sm:$0x1] %v3736_v2  ;;  %v3447_v55 = vld [vmem:[%s4552_s4 + $0x118] sm:$0xff]  ;;  %v560_v56 = vmul.f32 %v3815_v4, %v3522_v39  ;;  %v545_v63 = vmul.f32 %v3815_v4, %v3491_v51 }
  0x30   : > { %467 = vst [vmem:[#allocation2 + $0xd1] sm:$0x1] %v3736_v2 }
  0x31   : > { %1232 = vmatpush.bf16.msrb.mxu2 %v3434_v58  ;;  %468 = vst [vmem:[#allocation2 + $0xe9] sm:$0x1] %v3736_v2  ;;  %v3430_v58 = vld [vmem:[%s4552_s4 + $0x90] sm:$0xff] }
  0x32   : > { %1465 = vmatpush.bf16.msrb.mxu3 %v3442_v59  ;;  %469 = vst [vmem:[#allocation2 + $0x101] sm:$0x1] %v3736_v2  ;;  %v3438_v59 = vld [vmem:[%s4552_s4 + $0xd0] sm:$0xff] }
  0x33   : > { %1031 = vmatpush.bf16.msrb.mxu1 %v3418_v6  ;;  %1698 = vmatpush.bf16.msrb.mxu0 %v3450_v8  ;;  %470 = vst [vmem:[#allocation2 + $0x119] sm:$0x1] %v3736_v2  ;;  %v3510_v6 = vunpack.c.l.bf16 %v3633_v60  ;;  %v593_v8 = vadd.f32 %v3825_v10, %v560_v56 }
  0x34   : > { %471 = vst [vmem:[#allocation2 + $0x131] sm:$0x1] %v3736_v2 }
  0x35   : > { %1233 = vmatpush.bf16.msrb.mxu2 %v3433_v11  ;;  %472 = vst [vmem:[#allocation2 + $0x149] sm:$0x1] %v3736_v2  ;;  %v3511_v11 = vunpack.c.h.bf16 %v3633_v60  ;;  %v625_v17 = vmax.f32 %v593_v8, 0.0  ;;  %v3483_v8 = vld [vmem:[%s4552_s4 + $0x238] sm:$0xff] }
  0x36   : > { %1466 = vmatpush.bf16.msrb.mxu3 %v3441_v12  ;;  %473 = vst [vmem:[#allocation2 + $0x161] sm:$0x1] %v3736_v2  ;;  %v3641_v12 = vld [vmem:[%s3810_s8 + $0x70] sm:$0xff]  }
  0x37   : > { %1032 = vmatpush.bf16.msrb.mxu1 %v3417_v20  ;;  %1699 = vmatpush.bf16.msrb.mxu0 %v3449_v21  ;;  %474 = vst [vmem:[#allocation2 + $0x179] sm:$0x1] %v3736_v2  ;;  %v602_v20 = vadd.f32 %v3825_v10, %v569_v61  ;;  %v3526_v21 = vunpack.c.l.bf16 %v3637_v0  ;;  %v3543_v33 = vunpack.c.h.bf16 %v3641_v12 }
  0x38   : > { %475 = vst [vmem:[#allocation2 + $0x191] sm:$0x1] %v3736_v2 }
  0x39   : > { %1234 = vmatpush.bf16.msrb.mxu2 %v3432_v23  ;;  %476 = vst [vmem:[#allocation2 + $0x1a9] sm:$0x1] %v3736_v2  ;;  %v578_v23 = vadd.f32 %v3825_v10, %v545_v63  ;;  %v634_v37 = vmax.f32 %v602_v20, 0.0  ;;  %v562_v18 = vmul.f32 %v3815_v4, %v3526_v21  ;;  %v571_v51 = vmul.f32 %v3815_v4, %v3543_v33  ;;  %v717_v20 = vld [vmem:[#allocation2] sm:$0xff]  ;;  %v718_v21 = vld [vmem:[#allocation2 + $0x8] sm:$0xff] }
  0x3a   : > { %1467 = vmatpush.bf16.msrb.mxu3 %v3440_v24  ;;  %698 = vst [vmem:[#allocation2 + $0x199] sm:$0xff] %v3736_v2  ;;  %v3527_v24 = vunpack.c.h.bf16 %v3637_v0 }
  0x3b   : > { %1033 = vmatpush.bf16.msrb.mxu1 %v3416_v34  ;;  %1700 = vmatpush.bf16.msrb.mxu0 %v3448_v38  ;;  %699 = vst [vmem:[#allocation2 + $0x1a1] sm:$0xff] %v3736_v2  ;;  %v568_v2 = vmul.f32 %v3815_v4, %v3538_v46  ;;  %v3428_v34 = vld [vmem:[%s4552_s4 + $0x80] sm:$0xff]  ;;  %v610_v39 = vmax.f32 %v578_v23, 0.0  ;;  %v1120_v23 = vld [vmem:[#allocation2 + $0xa] sm:$0xff] }
  0x3c   : > { %648 = vst [vmem:[#allocation2 + $0x79] sm:$0xff] %v615_v19  ;;  %926 = vmatmul.bf16.gmra.mxu1 %v3992_v44  ;;  %946 = vmatmul.bf16.gmra.mxu2 %v3996_v45  ;;  %v3437_v19 = vld [vmem:[%s4552_s4 + $0xc8] sm:$0xff]  ;;  %v563_v40 = vmul.f32 %v3815_v4, %v3527_v24 }
  0x3d   : > { %1235 = vmatpush.bf16.msrb.mxu2 %v3431_v41  ;;  %649 = vst [vmem:[#allocation2 + $0x81] sm:$0xff] %v616_v22  ;;  %966 = vmatmul.bf16.gmra.mxu3 %v826_v48  ;;  %v601_v14 = vadd.f32 %v3825_v10, %v568_v2  ;;  %v577_v22 = vadd.f32 %v3825_v10, %v544_v62  ;;  %v3495_v41 = vunpack.c.h.bf16 %v3629_v25  ;;  %v3444_v48 = vld [vmem:[%s4552_s4 + $0x100] sm:$0xff] }
  0x3e   : > { %1468 = vmatpush.bf16.msrb.mxu3 %v3439_v42  ;;  %906 = vmatmul.bf16.gmra.mxu0 %v4007_v49  ;;  %656 = vst [vmem:[#allocation2 + $0xd9] sm:$0xff] %v623_v26  ;;  %v618_v26 = vmax.f32 %v4040_v3, 0.0  ;;  %v604_v62 = vadd.f32 %v3825_v10, %v571_v51  ;;  %v3467_v3 = vld [vmem:[%s4552_s4 + $0x1b8] sm:$0xff]  ;;  %v1359_v51 = vld [vmem:[#allocation2 + $0x68] sm:$0xff] }
  0x3f   : > { %1034 = vmatpush.bf16.msrb.mxu1 %v3415_v54  ;;  %1701 = vmatpush.bf16.msrb.mxu0 %v3447_v55  ;;  %657 = vst [vmem:[#allocation2 + $0xe1] sm:$0xff] %v624_v27  ;;  %v554_v27 = vmul.f32 %v3815_v4, %v3510_v6  ;;  %v633_v36 = vmax.f32 %v601_v14, 0.0  ;;  %v609_v38 = vmax.f32 %v577_v22, 0.0  ;;  %v595_v54 = vadd.f32 %v3825_v10, %v562_v18  ;;  %v3459_v6 = vld [vmem:[%s4552_s4 + $0x178] sm:$0xff]  ;;  %v1119_v22 = vld [vmem:[#allocation2 + $0x2] sm:$0xff] }
  0x40   : > { %664 = vst [vmem:[#allocation2 + $0x139] sm:$0xff] %v631_v28  ;;  %v3542_v28 = vunpack.c.l.bf16 %v3641_v12  ;;  %v4100_v52 = vpack.c.bf16 %v618_v26, %v617_v15 }
  0x41   : > { %1236 = vmatpush.bf16.msrb.mxu2 %v3430_v58  ;;  %665 = vst [vmem:[#allocation2 + $0x141] sm:$0xff] %v632_v30  ;;  %v626_v30 = vmax.f32 %v594_v9, 0.0  ;;  %v587_v42 = vadd.f32 %v3825_v10, %v554_v27  ;;  %v827_v56 = vpack.c.bf16 %v634_v37, %v633_v36  ;;  %v4106_v57 = vpack.c.bf16 %v610_v39, %v609_v38 }
  0x42   : > { %1469 = vmatpush.bf16.msrb.mxu3 %v3438_v59  ;;  %640 = vst [vmem:[#allocation2 + $0x19] sm:$0xff] %v607_v31  ;;  %v555_v31 = vmul.f32 %v3815_v4, %v3511_v11  ;;  %v570_v46 = vmul.f32 %v3815_v4, %v3542_v28  ;;  %v596_v58 = vadd.f32 %v3825_v10, %v563_v40  ;;  %v627_v63 = vmax.f32 %v595_v54, 0.0  ;;  %v3466_v28 = vld [vmem:[%s4552_s4 + $0x1b0] sm:$0xff]  ;;  %v3465_v40 = vld [vmem:[%s4552_s4 + $0x1a8] sm:$0xff] }
  0x43   : > { %1035 = vmatpush.bf16.msrb.mxu1 %v3414_v5  ;;  %1702 = vmatpush.bf16.msrb.mxu0 %v3446_v7  ;;  %641 = vst [vmem:[#allocation2 + $0x21] sm:$0xff] %v608_v32  ;;  %v3494_v32 = vunpack.c.l.bf16 %v3629_v25  ;;  %v4102_v53 = vpack.c.bf16 %v626_v30, %v625_v17  ;;  %v547_v59 = vmul.f32 %v3815_v4, %v3495_v41  ;;  %v619_v60 = vmax.f32 %v587_v42, 0.0  ;;  %v3475_v5 = vld [vmem:[%s4552_s4 + $0x1f8] sm:$0xff]  ;;  %v3473_v41 = vld [vmem:[%s4552_s4 + $0x1e8] sm:$0xff] }
  0x44   : > { %650 = vst [vmem:[#allocation2 + $0x91] sm:$0xff] %v617_v15  ;;  %v588_v50 = vadd.f32 %v3825_v10, %v555_v31  ;;  %v603_v2 = vadd.f32 %v3825_v10, %v570_v46  ;;  %v749_v15 = vpack.c.bf16 %v718_v21, %v717_v20  ;;  %v3457_v42 = vld [vmem:[%s4552_s4 + $0x168] sm:$0xff] }
  0x45   : > { %1237 = vmatpush.bf16.msrb.mxu2 %v3429_v13  ;;  %651 = vst [vmem:[#allocation2 + $0x99] sm:$0xff] %v618_v26  ;;  %v546_v55 = vmul.f32 %v3815_v4, %v3494_v32  ;;  %v628_v4 = vmax.f32 %v596_v58, 0.0  ;;  %v580_v1 = vadd.f32 %v3825_v10, %v547_v59  ;;  %v1151_v26 = vpack.c.bf16 %v1120_v23, %v1119_v22  ;;  %v3481_v46 = vld [vmem:[%s4552_s4 + $0x228] sm:$0xff]  ;;  %v1360_v58 = vld [vmem:[#allocation2 + $0x78] sm:$0xff]  ;;  %v1361_v59 = vld [vmem:[#allocation2 + $0x80] sm:$0xff] }
  0x46   : > { %1470 = vmatpush.bf16.msrb.mxu3 %v3437_v19  ;;  %658 = vst [vmem:[#allocation2 + $0xf1] sm:$0xff] %v625_v17  ;;  %v620_v61 = vmax.f32 %v588_v50, 0.0  ;;  %v635_v7 = vmax.f32 %v603_v2, 0.0  ;;  %v3482_v17 = vld [vmem:[%s4552_s4 + $0x230] sm:$0xff]  ;;  %v1358_v50 = vld [vmem:[#allocation2 + $0x60] sm:$0xff] }
  0x47   : > { %1036 = vmatpush.bf16.msrb.mxu1 %v3413_v16  ;;  %1703 = vmatpush.bf16.msrb.mxu0 %v3445_v29  ;;  %659 = vst [vmem:[#allocation2 + $0xf9] sm:$0xff] %v626_v30  ;;  %v579_v0 = vadd.f32 %v3825_v10, %v546_v55  ;;  %v636_v10 = vmax.f32 %v604_v62, 0.0  ;;  %v612_v11 = vmax.f32 %v580_v1, 0.0  ;;  %v4131_v13 = vpack.c.bf16 %v628_v4, %v627_v63  ;;  %v3474_v16 = vld [vmem:[%s4552_s4 + $0x1f0] sm:$0xff]  ;;  %v3456_v1 = vld [vmem:[%s4552_s4 + $0x160] sm:$0xff] }
  0x48   : > { %666 = vst [vmem:[#allocation2 + $0x151] sm:$0xff] %v633_v36  ;;  %v4129_v12 = vpack.c.bf16 %v620_v61, %v619_v60  ;;  %v3458_v29 = vld [vmem:[%s4552_s4 + $0x170] sm:$0xff]  ;;  %v1387_v55 = vpack.c.bf16 %v1359_v51, %v1358_v50 }
  0x49   : > { %1238 = vmatpush.bf16.msrb.mxu2 %v3428_v34  ;;  %667 = vst [vmem:[#allocation2 + $0x159] sm:$0xff] %v634_v37  ;;  %v611_v9 = vmax.f32 %v579_v0, 0.0  ;;  %v828_v19 = vpack.c.bf16 %v636_v10, %v635_v7  ;;  %v1352_v24 = vld [vmem:[#allocation2 + $0x18] sm:$0xff] }
  0x4a   : > { %1471 = vmatpush.bf16.msrb.mxu3 %v3436_v35  ;;  %642 = vst [vmem:[#allocation2 + $0x31] sm:$0xff] %v609_v38  ;;  %v1353_v25 = vld [vmem:[#allocation2 + $0x20] sm:$0xff] }
  0x4b   : > { %1037 = vmatpush.bf16.msrb.mxu1 %v3412_v47  ;;  %1704 = vmatpush.bf16.msrb.mxu0 %v3444_v48  ;;  %643 = vst [vmem:[#allocation2 + $0x39] sm:$0xff] %v610_v39  ;;  %v816_v14 = vpack.c.bf16 %v612_v11, %v611_v9  ;;  %v1384_v27 = vpack.c.bf16 %v1353_v25, %v1352_v24  ;;  %v1122_v30 = vld [vmem:[#allocation2 + $0x22] sm:$0xff] }
  0x4c   : > { %931 = vmatmul.bf16.gmra.mxu1 %v4100_v52  ;;  %951 = vmatmul.bf16.gmra.mxu2 %v4102_v53  ;;  %652 = vst [vmem:[#allocation2 + $0xa9] sm:$0xff] %v619_v60 }
  0x4d   : > { %971 = vmatmul.bf16.gmra.mxu3 %v827_v56  ;;  %653 = vst [vmem:[#allocation2 + $0xb1] sm:$0xff] %v620_v61  ;;  %2164 = vmatpush.bf16.msra.mxu2 %v3467_v3  ;;  %v1127_v56 = vld [vmem:[#allocation2 + $0x62] sm:$0xff]  ;;  %v1388_v61 = vpack.c.bf16 %v1361_v59, %v1360_v58 }
  0x4e   : > { %911 = vmatmul.bf16.gmra.mxu0 %v4106_v57  ;;  %660 = vst [vmem:[#allocation2 + $0x109] sm:$0xff] %v627_v63  ;;  %2397 = vmatpush.bf16.msra.mxu3 %v3475_v5  ;;  %v3472_v63 = vld [vmem:[%s4552_s4 + $0x1e0] sm:$0xff] }
  0x4f   : > { %661 = vst [vmem:[#allocation2 + $0x111] sm:$0xff] %v628_v4  ;;  %1930 = vmatpush.bf16.msra.mxu1 %v3459_v6  ;;  %2630 = vmatpush.bf16.msra.mxu0 %v3483_v8  ;;  %v3480_v5 = vld [vmem:[%s4552_s4 + $0x220] sm:$0xff]  ;;  %v1362_v8 = vld [vmem:[#allocation2 + $0x90] sm:$0xff] }
  0x50   : > { %668 = vst [vmem:[#allocation2 + $0x169] sm:$0xff] %v635_v7  ;;  %v1129_v6 = vld [vmem:[#allocation2 + $0x7a] sm:$0xff]  ;;  %v1130_v7 = vld [vmem:[#allocation2 + $0x82] sm:$0xff] }
  0x51   : > { %669 = vst [vmem:[#allocation2 + $0x171] sm:$0xff] %v636_v10  ;;  %2165 = vmatpush.bf16.msra.mxu2 %v3466_v28  ;;  %v1354_v31 = vld [vmem:[#allocation2 + $0x30] sm:$0xff]  ;;  %v1363_v10 = vld [vmem:[#allocation2 + $0x98] sm:$0xff] }
  0x52   : > { %644 = vst [vmem:[#allocation2 + $0x49] sm:$0xff] %v611_v9  ;;  %2398 = vmatpush.bf16.msra.mxu3 %v3474_v16  ;;  %v1355_v33 = vld [vmem:[#allocation2 + $0x38] sm:$0xff]  ;;  %v1389_v20 = vpack.c.bf16 %v1363_v10, %v1362_v8  ;;  %v1369_v8 = vld [vmem:[#allocation2 + $0xe0] sm:$0xff] }
  0x53   : > { %645 = vst [vmem:[#allocation2 + $0x51] sm:$0xff] %v612_v11  ;;  %1931 = vmatpush.bf16.msra.mxu1 %v3458_v29  ;;  %2631 = vmatpush.bf16.msra.mxu0 %v3482_v17  ;;  %v4150_v35 = vpack.c.bf16 %v1355_v33, %v1354_v31  ;;  %v1123_v36 = vld [vmem:[#allocation2 + $0x32] sm:$0xff]  ;;  %v1124_v37 = vld [vmem:[#allocation2 + $0x3a] sm:$0xff] }
  0x54   : > { %v4155_v38 = vpack.c.bf16 %v1124_v37, %v1123_v36  ;;  %v1365_v28 = vld [vmem:[#allocation2 + $0xb0] sm:$0xff]  ;;  %v3463_v31 = vld [vmem:[%s4552_s4 + $0x198] sm:$0xff] }
  0x55   : > { %2166 = vmatpush.bf16.msra.mxu2 %v3465_v40  ;;  %v3471_v33 = vld [vmem:[%s4552_s4 + $0x1d8] sm:$0xff]  ;;  %v1133_v40 = vld [vmem:[#allocation2 + $0xaa] sm:$0xff] }
  0x56   : > { %2399 = vmatpush.bf16.msra.mxu3 %v3473_v41  ;;  %v1134_v41 = vld [vmem:[#allocation2 + $0xb2] sm:$0xff] }
  0x57   : > { %1932 = vmatpush.bf16.msra.mxu1 %v3457_v42  ;;  %2632 = vmatpush.bf16.msra.mxu0 %v3481_v46  ;;  %v1366_v42 = vld [vmem:[#allocation2 + $0xc0] sm:$0xff]  ;;  %v1367_v46 = vld [vmem:[#allocation2 + $0xc8] sm:$0xff] }
  0x59   : > { %v1356_v18 = vld [vmem:[#allocation2 + $0x48] sm:$0xff] }
  0x5a   : > { %v1357_v32 = vld [vmem:[#allocation2 + $0x50] sm:$0xff]  ;;  %2400 = vmatpush.bf16.msra.mxu3 %v3472_v63 }
  0x5b   : > { %v1386_v39 = vpack.c.bf16 %v1357_v32, %v1356_v18  ;;  %v1125_v47 = vld [vmem:[#allocation2 + $0x4a] sm:$0xff]  ;;  %v1126_v48 = vld [vmem:[#allocation2 + $0x52] sm:$0xff]  ;;  %1933 = vmatpush.bf16.msra.mxu1 %v3456_v1  ;;  %2633 = vmatpush.bf16.msra.mxu0 %v3480_v5  ;;  %v1135_v5 = vld [vmem:[#allocation2 + $0xc2] sm:$0xff] }
  0x5c   : > { %936 = vmatmul.bf16.gmra.mxu1 %v4129_v12  ;;  %956 = vmatmul.bf16.gmra.mxu2 %v4131_v13  ;;  %v4171_v54 = vpack.c.bf16 %v1126_v48, %v1125_v47  ;;  %v1599_v47 = vld [vmem:[#allocation2 + $0xc1] sm:$0xff]  ;;  %v1600_v48 = vld [vmem:[#allocation2 + $0xc9] sm:$0xff] }
  0x5d   : > { %976 = vmatmul.bf16.gmra.mxu3 %v828_v19  ;;  %v4207_v19 = vpack.c.bf16 %v1130_v7, %v1129_v6  ;;  %v1624_v58 = vpack.c.bf16 %v1600_v48, %v1599_v47  ;;  %v1136_v6 = vld [vmem:[#allocation2 + $0xca] sm:$0xff]  ;;  %v1368_v7 = vld [vmem:[#allocation2 + $0xd8] sm:$0xff] }
  0x5e   : > { %916 = vmatmul.bf16.gmra.mxu0 %v816_v14  ;;  %2401 = vmatpush.bf16.msra.mxu3 %v3471_v33  ;;  %v3470_v33 = vld [vmem:[%s4552_s4 + $0x1d0] sm:$0xff] }
  0x5f   : > { %v3478_v47 = vld [vmem:[%s4552_s4 + $0x210] sm:$0xff] }
  0x62   : > { %2402 = vmatpush.bf16.msra.mxu3 %v3470_v33 }
  0x6c   : > { %1038 = vmatmul.bf16.vlgmr.msrb.gmra.mxu1 %v749_v15  ;;  %1239 = vmatmul.bf16.vlgmr.msrb.gmra.mxu2 %v1151_v26  ;;  %v1131_v15 = vld [vmem:[#allocation2 + $0x92] sm:$0xff]  ;;  %v1132_v26 = vld [vmem:[#allocation2 + $0x9a] sm:$0xff] }
  0x6d   : > { %1472 = vmatmul.bf16.vlgmr.msrb.gmra.mxu3 %v1384_v27  ;;  %v4227_v17 = vpack.c.bf16 %v1132_v26, %v1131_v15  ;;  %v4278_v15 = vpack.c.bf16 %v1136_v6, %v1135_v5  ;;  %v1370_v5 = vld [vmem:[#allocation2 + $0xf0] sm:$0xff]  ;;  %v1371_v6 = vld [vmem:[#allocation2 + $0xf8] sm:$0xff] }
  0x6e   : > { %1705 = vmatmul.bf16.vlgmr.msrb.gmra.mxu0 %v4007_v49  ;;  %v1121_v49 = vld [vmem:[#allocation2 + $0x1a] sm:$0xff] }
  0x6f   : > { %v4148_v34 = vpack.c.bf16 %v1122_v30, %v1121_v49 }
  0x7c   : > { %1043 = vmatmul.bf16.gmra.mxu1 %v1384_v27  ;;  %1244 = vmatmul.bf16.gmra.mxu2 %v4148_v34  ;;  %v1364_v27 = vld [vmem:[#allocation2 + $0xa8] sm:$0xff] }
  0x7d   : > { %1477 = vmatmul.bf16.gmra.mxu3 %v4150_v35 }
  0x7e   : > { %1710 = vmatmul.bf16.gmra.mxu0 %v4106_v57  ;;  %v1128_v57 = vld [vmem:[#allocation2 + $0x6a] sm:$0xff] }
  0x7f   : > { %v4175_v60 = vpack.c.bf16 %v1128_v57, %v1127_v56  ;;  %v1391_v57 = vpack.c.bf16 %v1367_v46, %v1366_v42 }
  0x8c   : > { %1048 = vmatmul.bf16.gmra.mxu1 %v4150_v35  ;;  %1249 = vmatmul.bf16.gmra.mxu2 %v4155_v38 }
  0x8d   : > { %1482 = vmatmul.bf16.gmra.mxu3 %v1386_v39 }
  0x8e   : > { %1715 = vmatmul.bf16.gmra.mxu0 %v816_v14 }
  0x9c   : > { %1053 = vmatmul.bf16.gmra.mxu1 %v1386_v39  ;;  %1254 = vmatmul.bf16.gmra.mxu2 %v4171_v54  ;;  %v3479_v39 = vld [vmem:[%s4552_s4 + $0x218] sm:$0xff] }
  0x9d   : > { %1487 = vmatmul.bf16.gmra.mxu3 %v1387_v55  ;;  %2634 = vmatpush.bf16.msra.mxu0 %v3479_v39 }
  0x9e   : > { %1720 = vmatmul.bf16.gmra.mxu0 %v3873_v43  ;;  %v3464_v43 = vld [vmem:[%s4552_s4 + $0x1a0] sm:$0xff] }
  0x9f   : > { %2167 = vmatpush.bf16.msra.mxu2 %v3464_v43 }
  0xa1   : > { %2635 = vmatpush.bf16.msra.mxu0 %v3478_v47 }
  0xa3   : > { %2168 = vmatpush.bf16.msra.mxu2 %v3463_v31  ;;  %v3462_v31 = vld [vmem:[%s4552_s4 + $0x190] sm:$0xff] }
  0xa7   : > { %2169 = vmatpush.bf16.msra.mxu2 %v3462_v31  ;;  %v4300_v31 = vpack.c.bf16 %v1371_v6, %v1370_v5  ;;  %v1372_v5 = vld [vmem:[#allocation2 + $0x108] sm:$0xff]  ;;  %v1373_v6 = vld [vmem:[#allocation2 + $0x110] sm:$0xff] }
  0xa9   : > { %v4177_v2 = vpop.f32.mrf.mxu1 }
  0xab   : > { %v4179_v62 = vpop.f32.mrf.mxu0 }
  0xac   : > { %1058 = vmatmul.bf16.gmra.mxu1 %v1387_v55  ;;  %1259 = vmatmul.bf16.gmra.mxu2 %v4175_v60  ;;  %v4259_v55 = vpack.c.bf16 %v1134_v41, %v1133_v40 }
  0xad   : > { %1492 = vmatmul.bf16.gmra.mxu3 %v1388_v61 }
  0xae   : > { %1725 = vmatmul.bf16.gmra.mxu0 %v3992_v44 }
  0xaf   : > { %v4189_v0 = vpop.f32.mrf.mxu2 }
  0xb0   : > { %v4191_v4 = vpop.f32.mrf.mxu3 }
  0xb1   : > { %v4196_v3 = vpop.f32.mrf.mxu1 }
  0xb3   : > { %v4198_v44 = vpop.f32.mrf.mxu0 }
  0xb7   : > { %v4203_v9 = vpop.f32.mrf.mxu2 }
  0xb8   : > { %v4205_v11 = vpop.f32.mrf.mxu3 }
  0xb9   : > { %v4209_v14 = vpop.f32.mrf.mxu1 }
  0xbb   : > { %v4211_v21 = vpop.f32.mrf.mxu0 }
  0xbc   : > { %1063 = vmatmul.bf16.gmra.mxu1 %v1388_v61  ;;  %1264 = vmatmul.bf16.gmra.mxu2 %v4207_v19 }
  0xbd   : > { %1497 = vmatmul.bf16.gmra.mxu3 %v1389_v20 }
  0xbe   : > { %1730 = vmatmul.bf16.gmra.mxu0 %v4100_v52  ;;  %v1390_v52 = vpack.c.bf16 %v1365_v28, %v1364_v27  ;;  %v1392_v27 = vpack.c.bf16 %v1369_v8, %v1368_v7 }
  0xbf   : > { %v4215_v22 = vpop.f32.mrf.mxu2 }
  0xc0   : > { %v4217_v23 = vpop.f32.mrf.mxu3 }
  0xc1   : > { %v4219_v24 = vpop.f32.mrf.mxu1 }
  0xc3   : > { %v4221_v25 = vpop.f32.mrf.mxu0 }
  0xc7   : > { %v4223_v16 = vpop.f32.mrf.mxu2 }
  0xc8   : > { %v4225_v29 = vpop.f32.mrf.mxu3 }
  0xc9   : > { %v4229_v49 = vpop.f32.mrf.mxu1 }
  0xcb   : > { %v4231_v30 = vpop.f32.mrf.mxu0 }
  0xcc   : > { %1068 = vmatmul.bf16.gmra.mxu1 %v1389_v20  ;;  %1269 = vmatmul.bf16.gmra.mxu2 %v4227_v17 }
  0xcd   : > { %1502 = vmatmul.bf16.gmra.mxu3 %v1390_v52 }
  0xce   : > { %1735 = vmatmul.bf16.gmra.mxu0 %v4129_v12  ;;  %v3455_v12 = vld [vmem:[%s4552_s4 + $0x158] sm:$0xff] }
  0xcf   : > { %v4241_v36 = vpop.f32.mrf.mxu2  ;;  %1934 = vmatpush.bf16.msra.mxu1 %v3455_v12 }
  0xd0   : > { %v4243_v37 = vpop.f32.mrf.mxu3 }
  0xd1   : > { %v4245_v18 = vpop.f32.mrf.mxu1 }
  0xd3   : > { %v4247_v32 = vpop.f32.mrf.mxu0 }
  0xd7   : > { %v4255_v50 = vpop.f32.mrf.mxu2 }
  0xd8   : > { %v4257_v51 = vpop.f32.mrf.mxu3 }
  0xd9   : > { %v4261_v56 = vpop.f32.mrf.mxu1 }
  0xdb   : > { %v4263_v59 = vpop.f32.mrf.mxu0 }
  0xdc   : > { %1073 = vmatmul.bf16.gmra.mxu1 %v1390_v52  ;;  %1274 = vmatmul.bf16.gmra.mxu2 %v4259_v55 }
  0xdd   : > { %1507 = vmatmul.bf16.gmra.mxu3 %v1391_v57 }
  0xde   : > { %1740 = vmatmul.bf16.gmra.mxu0 %v1624_v58  ;;  %v1138_v58 = vld [vmem:[#allocation2 + $0xe2] sm:$0xff] }
  0xdf   : > { %v4266_v61 = vpop.f32.mrf.mxu2 }
  0xe0   : > { %v4268_v43 = vpop.f32.mrf.mxu3 }
  0xe1   : > { %v4270_v63 = vpop.f32.mrf.mxu1 }
  0xe3   : > { %v4272_v1 = vpop.f32.mrf.mxu0 }
  0xe7   : > { %v4274_v10 = vpop.f32.mrf.mxu2 }
  0xe8   : > { %v4276_v20 = vpop.f32.mrf.mxu3 }
  0xe9   : > { %v1039_v26 = vpop.f32.mrf.mxu1 }
  0xea   : > { %v1040_v28 = vadd.f32 %v1039_v26, %v4179_v62 }
  0xeb   : > { %v1706_v52 = vpop.f32.mrf.mxu0 }
  0xec   : > { %1078 = vmatmul.bf16.gmra.mxu1 %v1391_v57  ;;  %1279 = vmatmul.bf16.gmra.mxu2 %v4278_v15  ;;  %v1137_v57 = vld [vmem:[#allocation2 + $0xda] sm:$0xff] }
  0xed   : > { %1512 = vmatmul.bf16.gmra.mxu3 %v1392_v27  ;;  %v4298_v26 = vpack.c.bf16 %v1138_v58, %v1137_v57 }
  0xee   : > { %1745 = vmatmul.bf16.gmra.mxu0 %v3996_v45  ;;  %v3454_v45 = vld [vmem:[%s4552_s4 + $0x150] sm:$0xff] }
  0xef   : > { %v1240_v12 = vpop.f32.mrf.mxu2  ;;  %1935 = vmatpush.bf16.msra.mxu1 %v3454_v45 }
  0xf0   : > { %v1320_v39 = vadd.f32 %v1240_v12, %v1040_v28  ;;  %v1473_v62 = vpop.f32.mrf.mxu3 }
  0xf1   : > { %v1041_v40 = vpop.f32.mrf.mxu1 }
  0xf2   : > { %v1553_v41 = vadd.f32 %v1473_v62, %v1320_v39  ;;  %v1042_v42 = vadd.f32 %v1041_v40, %v4198_v44 }
  0xf3   : > { %v1708_v46 = vpop.f32.mrf.mxu0 }
  0xf4   : > { %v4296_v48 = vadd.f32 %v1706_v52, %v1553_v41 }
  0xf7   : > { %v1242_v7 = vpop.f32.mrf.mxu2 }
  0xf8   : > { %v1321_v8 = vadd.f32 %v1242_v7, %v1042_v42  ;;  %v1475_v44 = vpop.f32.mrf.mxu3 }
  0xf9   : > { %v1044_v28 = vpop.f32.mrf.mxu1 }
  0xfa   : > { %v1554_v33 = vadd.f32 %v1475_v44, %v1321_v8  ;;  %v1045_v12 = vadd.f32 %v1044_v28, %v4211_v21  ;;  %v1139_v21 = vld [vmem:[#allocation2 + $0xf2] sm:$0xff]  ;;  %v1394_v28 = vpack.c.bf16 %v1373_v6, %v1372_v5  ;;  %v1141_v6 = vld [vmem:[#allocation2 + $0x10a] sm:$0xff] }
  0xfb   : > { %v1711_v39 = vpop.f32.mrf.mxu0 }
  0xfc   : > { %1083 = vmatmul.bf16.gmra.mxu1 %v1392_v27  ;;  %1284 = vmatmul.bf16.gmra.mxu2 %v4298_v26  ;;  %v4304_v52 = vadd.f32 %v1708_v46, %v1554_v33  ;;  %v1140_v27 = vld [vmem:[#allocation2 + $0xfa] sm:$0xff] }
  0xfd   : > { %1517 = vmatmul.bf16.gmra.mxu3 %v4300_v31  ;;  %v4311_v44 = vpack.c.bf16 %v1140_v27, %v1139_v21  ;;  %v3477_v27 = vld [vmem:[%s4552_s4 + $0x208] sm:$0xff] }
  0xfe   : > { %1750 = vmatmul.bf16.gmra.mxu0 %v4102_v53 }
  0xff   : > { %v1245_v62 = vpop.f32.mrf.mxu2  ;;  %2636 = vmatpush.bf16.msra.mxu0 %v3477_v27 }
 0x100   : > { %v1322_v40 = vadd.f32 %v1245_v62, %v1045_v12  ;;  %v1478_v41 = vpop.f32.mrf.mxu3 }
 0x101   : > { %v1046_v42 = vpop.f32.mrf.mxu1 }
 0x102   : > { %v1555_v45 = vadd.f32 %v1478_v41, %v1322_v40  ;;  %v1047_v47 = vadd.f32 %v1046_v42, %v4221_v25  ;;  %v3469_v40 = vld [vmem:[%s4552_s4 + $0x1c8] sm:$0xff] }
 0x103   : > { %v1713_v57 = vpop.f32.mrf.mxu0  ;;  %2403 = vmatpush.bf16.msra.mxu3 %v3469_v40 }
 0x104   : > { %v4309_v58 = vadd.f32 %v1711_v39, %v1555_v45  ;;  %v3461_v39 = vld [vmem:[%s4552_s4 + $0x188] sm:$0xff] }
 0x105   : > { %2170 = vmatpush.bf16.msra.mxu2 %v3461_v39 }
 0x107   : > { %v1247_v46 = vpop.f32.mrf.mxu2 }
 0x108   : > { %v1323_v7 = vadd.f32 %v1247_v46, %v1047_v47  ;;  %v1480_v8 = vpop.f32.mrf.mxu3  ;;  %v1142_v46 = vld [vmem:[#allocation2 + $0x112] sm:$0xff] }
 0x109   : > { %v1049_v53 = vpop.f32.mrf.mxu1  ;;  %v4334_v40 = vpack.c.bf16 %v1142_v46, %v1141_v6 }
 0x10a   : > { %v1556_v33 = vadd.f32 %v1480_v8, %v1323_v7  ;;  %v1050_v12 = vadd.f32 %v1049_v53, %v4231_v30  ;;  %v1374_v7 = vld [vmem:[#allocation2 + $0x120] sm:$0xff]  ;;  %v1375_v8 = vld [vmem:[#allocation2 + $0x128] sm:$0xff] }
 0x10b   : > { %v1716_v62 = vpop.f32.mrf.mxu0  ;;  %v1607_v53 = vld [vmem:[#allocation2 + $0x121] sm:$0xff] }
 0x10c   : > { %1088 = vmatmul.bf16.gmra.mxu1 %v4300_v31  ;;  %1289 = vmatmul.bf16.gmra.mxu2 %v4311_v44  ;;  %v4316_v25 = vadd.f32 %v1713_v57, %v1556_v33  ;;  %v1608_v33 = vld [vmem:[#allocation2 + $0x129] sm:$0xff] }
 0x10d   : > { %1522 = vmatmul.bf16.gmra.mxu3 %v1394_v28 }
 0x10e   : > { %1755 = vmatmul.bf16.gmra.mxu0 %v4131_v13  ;;  %v3453_v13 = vld [vmem:[%s4552_s4 + $0x148] sm:$0xff] }
 0x10f   : > { %v1250_v41 = vpop.f32.mrf.mxu2  ;;  %1936 = vmatpush.bf16.msra.mxu1 %v3453_v13 }
 0x110   : > { %v1324_v30 = vadd.f32 %v1250_v41, %v1050_v12  ;;  %v1483_v42 = vpop.f32.mrf.mxu3 }
 0x111   : > { %v1051_v45 = vpop.f32.mrf.mxu1 }
 0x112   : > { %v1557_v47 = vadd.f32 %v1483_v42, %v1324_v30  ;;  %v1052_v57 = vadd.f32 %v1051_v45, %v4247_v32  ;;  %v1395_v30 = vpack.c.bf16 %v1375_v8, %v1374_v7  ;;  %v1628_v42 = vpack.c.bf16 %v1608_v33, %v1607_v53  ;;  %v1144_v53 = vld [vmem:[#allocation2 + $0x12a] sm:$0xff]  ;;  %v1377_v33 = vld [vmem:[#allocation2 + $0x140] sm:$0xff] }
 0x113   : > { %v1718_v21 = vpop.f32.mrf.mxu0 }
 0x114   : > { %v4332_v5 = vadd.f32 %v1716_v62, %v1557_v47 }
 0x116   : > { %4558 = vst [vmem:[#allocation3_spill] sm:$0xff] %v4332_v5 }
 0x117   : > { %v1252_v32 = vpop.f32.mrf.mxu2 }
 0x118   : > { %v1325_v12 = vadd.f32 %v1252_v32, %v1052_v57  ;;  %v1485_v39 = vpop.f32.mrf.mxu3 }
 0x119   : > { %v1054_v41 = vpop.f32.mrf.mxu1 }
 0x11a   : > { %v1558_v45 = vadd.f32 %v1485_v39, %v1325_v12  ;;  %v1055_v13 = vadd.f32 %v1054_v41, %v4263_v59  ;;  %v1143_v59 = vld [vmem:[#allocation2 + $0x122] sm:$0xff]  ;;  %v1609_v12 = vld [vmem:[#allocation2 + $0x139] sm:$0xff] }
 0x11b   : > { %v1721_v27 = vpop.f32.mrf.mxu0 }
 0x11c   : > { %1093 = vmatmul.bf16.gmra.mxu1 %v1394_v28  ;;  %1294 = vmatmul.bf16.gmra.mxu2 %v4334_v40  ;;  %v4338_v62 = vadd.f32 %v1718_v21, %v1558_v45  ;;  %v1376_v28 = vld [vmem:[#allocation2 + $0x138] sm:$0xff]  ;;  %v1610_v21 = vld [vmem:[#allocation2 + $0x141] sm:$0xff]  ;;  %v4343_v45 = vpack.c.bf16 %v1144_v53, %v1143_v59 }
 0x11d   : > { %1527 = vmatmul.bf16.gmra.mxu3 %v1395_v30  ;;  %v3468_v59 = vld [vmem:[%s4552_s4 + $0x1c0] sm:$0xff] }
 0x11e   : > { %4559 = vst [vmem:[#allocation4_spill] sm:$0xff] %v4338_v62  ;;  %1760 = vmatmul.bf16.gmra.mxu0 %v1628_v42  ;;  %2404 = vmatpush.bf16.msra.mxu3 %v3468_v59  ;;  %v1145_v59 = vld [vmem:[#allocation2 + $0x13a] sm:$0xff] }
 0x11f   : > { %v1255_v47 = vpop.f32.mrf.mxu2  ;;  %4561 = vst [vmem:[#allocation6_spill] sm:$0xff] %v4343_v45 }
 0x120   : > { %v1326_v5 = vadd.f32 %v1255_v47, %v1055_v13  ;;  %v1488_v57 = vpop.f32.mrf.mxu3  ;;  %v1396_v47 = vpack.c.bf16 %v1377_v33, %v1376_v28 }
 0x121   : > { %v1056_v32 = vpop.f32.mrf.mxu1 }
 0x122   : > { %v1559_v6 = vadd.f32 %v1488_v57, %v1326_v5  ;;  %v1057_v46 = vadd.f32 %v1056_v32, %v4272_v1  ;;  %v1629_v5 = vpack.c.bf16 %v1610_v21, %v1609_v12  ;;  %v3642_v32 = vld [vmem:[%s3810_s8 + $0x78] sm:$0xff]  }
 0x123   : > { %v1723_v7 = vpop.f32.mrf.mxu0 }
 0x124   : > { %v4341_v8 = vadd.f32 %v1721_v27, %v1559_v6  ;;  %v3546_v27 = vunpack.c.l.bf16 %v3642_v32  ;;  %v3547_v6 = vunpack.c.h.bf16 %v3642_v32  ;;  %v3476_v32 = vld [vmem:[%s4552_s4 + $0x200] sm:$0xff] }
 0x125   : > { %2637 = vmatpush.bf16.msra.mxu0 %v3476_v32 }
 0x126   : > { %4560 = vst [vmem:[#allocation5_spill] sm:$0xff] %v4341_v8 }
 0x127   : > { %v1257_v39 = vpop.f32.mrf.mxu2 }
 0x128   : > { %v1327_v41 = vadd.f32 %v1257_v39, %v1057_v46  ;;  %v1490_v42 = vpop.f32.mrf.mxu3  ;;  %v3460_v46 = vld [vmem:[%s4552_s4 + $0x180] sm:$0xff] }
 0x129   : > { %v1059_v13 = vpop.f32.mrf.mxu1  ;;  %2171 = vmatpush.bf16.msra.mxu2 %v3460_v46  ;;  %v3710_v39 = vld [vmem:[%s4551_s3 + $0x1] ss:$0 sm:$0xff] }
 0x12a   : > { %v1560_v57 = vadd.f32 %v1490_v42, %v1327_v41  ;;  %v1060_v53 = vadd.f32 %v1059_v13, %v4177_v2 }
 0x12b   : > { %v1726_v1 = vpop.f32.mrf.mxu0 }
 0x12c   : > { %1098 = vmatmul.bf16.gmra.mxu1 %v1395_v30  ;;  %1299 = vmatmul.bf16.gmra.mxu2 %v4343_v45  ;;  %v4347_v8 = vadd.f32 %v1723_v7, %v1560_v57  ;;  %v3709_v30 = vld [vmem:[%s4551_s3] ss:$0 sm:$0xff] }
 0x12d   : > { %1532 = vmatmul.bf16.gmra.mxu3 %v1396_v47  ;;  %v572_v28 = vmul.f32 %v3709_v30, %v3546_v27  ;;  %v573_v33 = vmul.f32 %v3709_v30, %v3547_v6  ;;  %v3452_v57 = vld [vmem:[%s4552_s4 + $0x140] sm:$0xff]  ;;  %v1378_v30 = vld [vmem:[#allocation2 + $0x150] sm:$0xff] }
 0x12e   : > { %4562 = vst [vmem:[#allocation7_spill] sm:$0xff] %v4347_v8  ;;  %1765 = vmatmul.bf16.gmra.mxu0 %v1629_v5  ;;  %1937 = vmatpush.bf16.msra.mxu1 %v3452_v57 }
 0x12f   : > { %v1260_v7 = vpop.f32.mrf.mxu2  ;;  %v4362_v41 = vadd.f32 %v3710_v39, %v572_v28  ;;  %v4364_v42 = vadd.f32 %v3710_v39, %v573_v33  ;;  %v1379_v33 = vld [vmem:[#allocation2 + $0x158] sm:$0xff] }
 0x130   : > { %v1328_v12 = vadd.f32 %v1260_v7, %v1060_v53  ;;  %v1493_v21 = vpop.f32.mrf.mxu3  ;;  %v1146_v53 = vld [vmem:[#allocation2 + $0x142] sm:$0xff]  ;;  %v1611_v7 = vld [vmem:[#allocation2 + $0x151] sm:$0xff] }
 0x131   : > { %v1061_v2 = vpop.f32.mrf.mxu1  ;;  %v4555_v27 = vmax.f32 %v4362_v41, 0.0  ;;  %v4556_v6 = vmax.f32 %v4364_v42, 0.0  ;;  %v4381_v32 = vpack.c.bf16 %v1146_v53, %v1145_v59 }
 0x132   : > { %v1561_v13 = vadd.f32 %v1493_v21, %v1328_v12  ;;  %v1062_v28 = vadd.f32 %v1061_v2, %v4196_v3  ;;  %v1612_v12 = vld [vmem:[#allocation2 + $0x159] sm:$0xff] }
 0x133   : > { %v1728_v5 = vpop.f32.mrf.mxu0  ;;  %670 = vst [vmem:[#allocation2 + $0x181] sm:$0xff] %v4555_v27  ;;  %v1397_v27 = vpack.c.bf16 %v1379_v33, %v1378_v30  ;;  %v1147_v30 = vld [vmem:[#allocation2 + $0x152] sm:$0xff]  ;;  %v1148_v33 = vld [vmem:[#allocation2 + $0x15a] sm:$0xff] }
 0x134   : > { %v4376_v46 = vadd.f32 %v1726_v1, %v1561_v13  ;;  %671 = vst [vmem:[#allocation2 + $0x189] sm:$0xff] %v4556_v6  ;;  %v1630_v1 = vpack.c.bf16 %v1612_v12, %v1611_v7  ;;  %v1380_v7 = vld [vmem:[#allocation2 + $0x168] sm:$0xff]  ;;  %v1381_v12 = vld [vmem:[#allocation2 + $0x170] sm:$0xff] }
 0x136   : > { %4563 = vst [vmem:[#allocation8_spill] sm:$0xff] %v4376_v46 }
 0x137   : > { %v1262_v21 = vpop.f32.mrf.mxu2 }
 0x138   : > { %v1329_v39 = vadd.f32 %v1262_v21, %v1062_v28  ;;  %v1495_v57 = vpop.f32.mrf.mxu3 }
 0x139   : > { %v1064_v8 = vpop.f32.mrf.mxu1 }
 0x13a   : > { %v1562_v13 = vadd.f32 %v1495_v57, %v1329_v39  ;;  %v1065_v3 = vadd.f32 %v1064_v8, %v4209_v14  ;;  %v1614_v39 = vld [vmem:[#allocation2 + $0x171] sm:$0xff]  ;;  %v4390_v14 = vpack.c.bf16 %v1148_v33, %v1147_v30 }
 0x13b   : > { %v1731_v46 = vpop.f32.mrf.mxu0 }
 0x13c   : > { %1103 = vmatmul.bf16.gmra.mxu1 %v1396_v47  ;;  %1304 = vmatmul.bf16.gmra.mxu2 %v4381_v32  ;;  %v4384_v62 = vadd.f32 %v1728_v5, %v1562_v13  ;;  %v1613_v5 = vld [vmem:[#allocation2 + $0x169] sm:$0xff] }
 0x13d   : > { %1537 = vmatmul.bf16.gmra.mxu3 %v1397_v27 }
 0x13e   : > { %1770 = vmatmul.bf16.gmra.mxu0 %v1630_v1 }
 0x13f   : > { %v1265_v2 = vpop.f32.mrf.mxu2 }
 0x140   : > { %v1330_v6 = vadd.f32 %v1265_v2, %v1065_v3  ;;  %v1498_v28 = vpop.f32.mrf.mxu3  ;;  %v1398_v3 = vpack.c.bf16 %v1381_v12, %v1380_v7  ;;  %v1631_v2 = vpack.c.bf16 %v1614_v39, %v1613_v5  ;;  %v1149_v7 = vld [vmem:[#allocation2 + $0x16a] sm:$0xff]  ;;  %v1150_v12 = vld [vmem:[#allocation2 + $0x172] sm:$0xff]  ;;  %v1382_v5 = vld [vmem:[#allocation2 + $0x180] sm:$0xff] }
 0x141   : > { %v1066_v21 = vpop.f32.mrf.mxu1  ;;  %v1383_v39 = vld [vmem:[#allocation2 + $0x188] sm:$0xff] }
 0x142   : > { %v1563_v59 = vadd.f32 %v1498_v28, %v1330_v6  ;;  %v1067_v47 = vadd.f32 %v1066_v21, %v4219_v24 }
 0x143   : > { %v1733_v53 = vpop.f32.mrf.mxu0 }
 0x144   : > { %v4387_v45 = vadd.f32 %v1731_v46, %v1563_v59 }
 0x146   : > { %4564 = vst [vmem:[#allocation9_spill] sm:$0xff] %v4387_v45 }
 0x147   : > { %v1267_v57 = vpop.f32.mrf.mxu2 }
 0x148   : > { %v1331_v1 = vadd.f32 %v1267_v57, %v1067_v47  ;;  %v1500_v13 = vpop.f32.mrf.mxu3 }
 0x149   : > { %v1069_v8 = vpop.f32.mrf.mxu1 }
 0x14a   : > { %v1564_v6 = vadd.f32 %v1500_v13, %v1331_v1  ;;  %v1070_v24 = vadd.f32 %v1069_v8, %v4229_v49  ;;  %v1399_v8 = vpack.c.bf16 %v1383_v39, %v1382_v5  ;;  %v2285_v39 = vld [vmem:[#allocation2 + $0x31] sm:$0xff] }
 0x14b   : > { %v1736_v28 = vpop.f32.mrf.mxu0 }
 0x14c   : > { %1108 = vmatmul.bf16.gmra.mxu1 %v1397_v27  ;;  %1309 = vmatmul.bf16.gmra.mxu2 %v4390_v14  ;;  %v4393_v46 = vadd.f32 %v1733_v53, %v1564_v6  ;;  %v4565_v6 = vmax.f32 %v4362_v41, 0.0 }
 0x14d   : > { %1542 = vmatmul.bf16.gmra.mxu3 %v1398_v3 }
 0x14e   : > { %1775 = vmatmul.bf16.gmra.mxu0 %v1631_v2  ;;  %v4399_v2 = vpack.c.bf16 %v1150_v12, %v1149_v7 }
 0x14f   : > { %v1270_v21 = vpop.f32.mrf.mxu2 }
 0x150   : > { %v1332_v59 = vadd.f32 %v1270_v21, %v1070_v24  ;;  %v1503_v47 = vpop.f32.mrf.mxu3  ;;  %v4566_v24 = vmax.f32 %v4364_v42, 0.0 }
 0x151   : > { %v1071_v57 = vpop.f32.mrf.mxu1 }
 0x152   : > { %v1565_v30 = vadd.f32 %v1503_v47, %v1332_v59  ;;  %v1072_v27 = vadd.f32 %v1071_v57, %v4245_v18  ;;  %v1632_v21 = vpack.c.bf16 %v4566_v24, %v4565_v6 }
 0x153   : > { %v1738_v33 = vpop.f32.mrf.mxu0 }
 0x154   : > { %v4396_v45 = vadd.f32 %v1736_v28, %v1565_v30 }
 0x157   : > { %v1272_v53 = vpop.f32.mrf.mxu2 }
 0x158   : > { %v1333_v1 = vadd.f32 %v1272_v53, %v1072_v27  ;;  %v1505_v13 = vpop.f32.mrf.mxu3 }
 0x159   : > { %v1074_v49 = vpop.f32.mrf.mxu1 }
 0x15a   : > { %v1566_v28 = vadd.f32 %v1505_v13, %v1333_v1  ;;  %v1075_v47 = vadd.f32 %v1074_v49, %v4261_v56 }
 0x15b   : > { %v1741_v59 = vpop.f32.mrf.mxu0 }
 0x15c   : > { %1113 = vmatmul.bf16.gmra.mxu1 %v1398_v3  ;;  %1314 = vmatmul.bf16.gmra.mxu2 %v4399_v2  ;;  %v4406_v18 = vadd.f32 %v1738_v33, %v1566_v28  ;;  %v2286_v3 = vld [vmem:[#allocation2 + $0x39] sm:$0xff] }
 0x15d   : > { %1547 = vmatmul.bf16.gmra.mxu3 %v1399_v8  ;;  %v2317_v8 = vpack.c.bf16 %v2286_v3, %v2285_v39 }
 0x15e   : > { %1780 = vmatmul.bf16.gmra.mxu0 %v1632_v21 }
 0x15f   : > { %v1275_v57 = vpop.f32.mrf.mxu2 }
 0x160   : > { %v1334_v30 = vadd.f32 %v1275_v57, %v1075_v47  ;;  %v1508_v7 = vpop.f32.mrf.mxu3 }
 0x161   : > { %v1076_v12 = vpop.f32.mrf.mxu1 }
 0x162   : > { %v1567_v27 = vadd.f32 %v1508_v7, %v1334_v30  ;;  %v1077_v42 = vadd.f32 %v1076_v12, %v4270_v63  ;;  %v1820_v30 = vld [vmem:[#allocation2 + $0x32] sm:$0xff]  ;;  %v1821_v12 = vld [vmem:[#allocation2 + $0x3a] sm:$0xff] }
 0x163   : > { %v1743_v41 = vpop.f32.mrf.mxu0 }
 0x164   : > { %v4409_v5 = vadd.f32 %v1741_v59, %v1567_v27  ;;  %v2055_v27 = vld [vmem:[#allocation2 + $0x50] sm:$0xff] }
 0x167   : > { %v1277_v53 = vpop.f32.mrf.mxu2 }
 0x168   : > { %v1335_v1 = vadd.f32 %v1277_v53, %v1077_v42  ;;  %v1510_v33 = vpop.f32.mrf.mxu3  ;;  %v2288_v42 = vld [vmem:[#allocation2 + $0x51] sm:$0xff] }
 0x169   : > { %v1079_v13 = vpop.f32.mrf.mxu1 }
 0x16a   : > { %v1568_v6 = vadd.f32 %v1510_v33, %v1335_v1  ;;  %v1080_v63 = vadd.f32 %v1079_v13, %v4189_v0  ;;  %v1851_v0 = vpack.c.bf16 %v1821_v12, %v1820_v30  ;;  %v1823_v12 = vld [vmem:[#allocation2 + $0x52] sm:$0xff] }
 0x16b   : > { %v1746_v24 = vpop.f32.mrf.mxu0 }
 0x16c   : > { %1938 = vmatmul.bf16.vlgmr.msra.gmra.mxu1 %v4148_v34  ;;  %2172 = vmatmul.bf16.vlgmr.msra.gmra.mxu2 %v4150_v35  ;;  %v4414_v56 = vadd.f32 %v1743_v41, %v1568_v6  ;;  %v2054_v34 = vld [vmem:[#allocation2 + $0x48] sm:$0xff] }
 0x16d   : > { %2405 = vmatmul.bf16.vlgmr.msra.gmra.mxu3 %v2317_v8  ;;  %v2287_v41 = vld [vmem:[#allocation2 + $0x49] sm:$0xff]  ;;  %v2085_v53 = vpack.c.bf16 %v2055_v27, %v2054_v34  ;;  %v2056_v34 = vld [vmem:[#allocation2 + $0x60] sm:$0xff] }
 0x16e   : > { %2638 = vmatmul.bf16.vlgmr.msra.gmra.mxu0 %v4155_v38  ;;  %v2318_v33 = vpack.c.bf16 %v2288_v42, %v2287_v41  ;;  %v2057_v27 = vld [vmem:[#allocation2 + $0x68] sm:$0xff] }
 0x16f   : > { %v1280_v49 = vpop.f32.mrf.mxu2  ;;  %v2290_v41 = vld [vmem:[#allocation2 + $0x69] sm:$0xff] }
 0x170   : > { %v1336_v21 = vadd.f32 %v1280_v49, %v1080_v63  ;;  %v1513_v28 = vpop.f32.mrf.mxu3 }
 0x171   : > { %v1081_v59 = vpop.f32.mrf.mxu1 }
 0x172   : > { %v1569_v47 = vadd.f32 %v1513_v28, %v1336_v21  ;;  %v1082_v35 = vadd.f32 %v1081_v59, %v4203_v9 }
 0x173   : > { %v1748_v57 = vpop.f32.mrf.mxu0 }
 0x174   : > { %v4418_v7 = vadd.f32 %v1746_v24, %v1569_v47  ;;  %v1822_v47 = vld [vmem:[#allocation2 + $0x4a] sm:$0xff] }
 0x177   : > { %v1282_v39 = vpop.f32.mrf.mxu2 }
 0x178   : > { %v1337_v38 = vadd.f32 %v1282_v39, %v1082_v35  ;;  %v1515_v3 = vpop.f32.mrf.mxu3  ;;  %v2289_v35 = vld [vmem:[#allocation2 + $0x61] sm:$0xff] }
 0x179   : > { %v1084_v1 = vpop.f32.mrf.mxu1 }
 0x17a   : > { %v1570_v13 = vadd.f32 %v1515_v3, %v1337_v38  ;;  %v1085_v9 = vadd.f32 %v1084_v1, %v4215_v22  ;;  %v1852_v22 = vpack.c.bf16 %v1823_v12, %v1822_v47  ;;  %v2086_v38 = vpack.c.bf16 %v2057_v27, %v2056_v34  ;;  %v1825_v47 = vld [vmem:[#allocation2 + $0x6a] sm:$0xff]  ;;  %v2058_v12 = vld [vmem:[#allocation2 + $0x78] sm:$0xff]  ;;  %v2059_v34 = vld [vmem:[#allocation2 + $0x80] sm:$0xff] }
 0x17b   : > { %v1751_v8 = vpop.f32.mrf.mxu0  ;;  %v2291_v27 = vld [vmem:[#allocation2 + $0x79] sm:$0xff] }
 0x17c   : > { %1943 = vmatmul.bf16.gmra.mxu1 %v1851_v0  ;;  %2177 = vmatmul.bf16.gmra.mxu2 %v2085_v53  ;;  %v4421_v6 = vadd.f32 %v1748_v57, %v1570_v13  ;;  %v2319_v0 = vpack.c.bf16 %v2290_v41, %v2289_v35 }
 0x17d   : > { %2410 = vmatmul.bf16.gmra.mxu3 %v2318_v33 }
 0x17e   : > { %2643 = vmatmul.bf16.gmra.mxu0 %v4171_v54 }
 0x17f   : > { %v1285_v24 = vpop.f32.mrf.mxu2 }
 0x180   : > { %v1338_v63 = vadd.f32 %v1285_v24, %v1085_v9  ;;  %v1518_v49 = vpop.f32.mrf.mxu3 }
 0x181   : > { %v1086_v21 = vpop.f32.mrf.mxu1 }
 0x182   : > { %v1571_v28 = vadd.f32 %v1518_v49, %v1338_v63  ;;  %v1087_v57 = vadd.f32 %v1086_v21, %v4223_v16  ;;  %v1824_v21 = vld [vmem:[#allocation2 + $0x62] sm:$0xff] }
 0x183   : > { %v1753_v59 = vpop.f32.mrf.mxu0 }
 0x184   : > { %v4425_v30 = vadd.f32 %v1751_v8, %v1571_v28 }
 0x187   : > { %v1287_v42 = vpop.f32.mrf.mxu2 }
 0x188   : > { %v1339_v54 = vadd.f32 %v1287_v42, %v1087_v57  ;;  %v1520_v39 = vpop.f32.mrf.mxu3  ;;  %v2292_v57 = vld [vmem:[#allocation2 + $0x81] sm:$0xff]  ;;  %v2087_v42 = vpack.c.bf16 %v2059_v34, %v2058_v12  ;;  %v2293_v12 = vld [vmem:[#allocation2 + $0x91] sm:$0xff]  ;;  %v2294_v34 = vld [vmem:[#allocation2 + $0x99] sm:$0xff] }
 0x189   : > { %v1089_v3 = vpop.f32.mrf.mxu1 }
 0x18a   : > { %v1572_v53 = vadd.f32 %v1520_v39, %v1339_v54  ;;  %v1090_v16 = vadd.f32 %v1089_v3, %v4241_v36  ;;  %v1853_v36 = vpack.c.bf16 %v1825_v47, %v1824_v21  ;;  %v2320_v39 = vpack.c.bf16 %v2292_v57, %v2291_v27  ;;  %v2060_v21 = vld [vmem:[#allocation2 + $0x90] sm:$0xff]  ;;  %v2061_v47 = vld [vmem:[#allocation2 + $0x98] sm:$0xff] }
 0x18b   : > { %v1756_v1 = vpop.f32.mrf.mxu0  ;;  %v2088_v57 = vpack.c.bf16 %v2061_v47, %v2060_v21  ;;  %v2296_v21 = vld [vmem:[#allocation2 + $0xb1] sm:$0xff] }
 0x18c   : > { %1948 = vmatmul.bf16.gmra.mxu1 %v1852_v22  ;;  %2182 = vmatmul.bf16.gmra.mxu2 %v2086_v38  ;;  %v4428_v33 = vadd.f32 %v1753_v59, %v1572_v53 }
 0x18d   : > { %2415 = vmatmul.bf16.gmra.mxu3 %v2319_v0 }
 0x18e   : > { %2648 = vmatmul.bf16.gmra.mxu0 %v4175_v60 }
 0x18f   : > { %v1290_v13 = vpop.f32.mrf.mxu2 }
 0x190   : > { %v1340_v8 = vadd.f32 %v1290_v13, %v1090_v16  ;;  %v1523_v9 = vpop.f32.mrf.mxu3 }
 0x191   : > { %v1091_v24 = vpop.f32.mrf.mxu1 }
 0x192   : > { %v1573_v63 = vadd.f32 %v1523_v9, %v1340_v8  ;;  %v1092_v59 = vadd.f32 %v1091_v24, %v4255_v50  ;;  %v1826_v9 = vld [vmem:[#allocation2 + $0x7a] sm:$0xff] }
 0x193   : > { %v1758_v49 = vpop.f32.mrf.mxu0 }
 0x194   : > { %v4432_v28 = vadd.f32 %v1756_v1, %v1573_v63  ;;  %v1827_v63 = vld [vmem:[#allocation2 + $0x82] sm:$0xff] }
 0x197   : > { %v1292_v35 = vpop.f32.mrf.mxu2 }
 0x198   : > { %v1341_v60 = vadd.f32 %v1292_v35, %v1092_v59  ;;  %v1525_v41 = vpop.f32.mrf.mxu3 }
 0x199   : > { %v1094_v54 = vpop.f32.mrf.mxu1 }
 0x19a   : > { %v1574_v22 = vadd.f32 %v1525_v41, %v1341_v60  ;;  %v1095_v50 = vadd.f32 %v1094_v54, %v4266_v61  ;;  %v1854_v61 = vpack.c.bf16 %v1827_v63, %v1826_v9  ;;  %v2321_v60 = vpack.c.bf16 %v2294_v34, %v2293_v12  ;;  %v2063_v9 = vld [vmem:[#allocation2 + $0xb0] sm:$0xff] }
 0x19b   : > { %v1761_v38 = vpop.f32.mrf.mxu0  ;;  %v2295_v63 = vld [vmem:[#allocation2 + $0xa9] sm:$0xff] }
 0x19c   : > { %1953 = vmatmul.bf16.gmra.mxu1 %v1853_v36  ;;  %2187 = vmatmul.bf16.gmra.mxu2 %v2087_v42  ;;  %v4435_v3 = vadd.f32 %v1758_v49, %v1574_v22 }
 0x19d   : > { %2420 = vmatmul.bf16.gmra.mxu3 %v2320_v39 }
 0x19e   : > { %2653 = vmatmul.bf16.gmra.mxu0 %v4207_v19 }
 0x19f   : > { %v1295_v0 = vpop.f32.mrf.mxu2 }
 0x1a0   : > { %v1342_v53 = vadd.f32 %v1295_v0, %v1095_v50  ;;  %v1528_v1 = vpop.f32.mrf.mxu3 }
 0x1a1   : > { %v1096_v16 = vpop.f32.mrf.mxu1 }
 0x1a2   : > { %v1575_v13 = vadd.f32 %v1528_v1, %v1342_v53  ;;  %v1097_v49 = vadd.f32 %v1096_v16, %v4274_v10  ;;  %v1828_v53 = vld [vmem:[#allocation2 + $0x92] sm:$0xff]  ;;  %v1829_v16 = vld [vmem:[#allocation2 + $0x9a] sm:$0xff] }
 0x1a3   : > { %v1763_v8 = vpop.f32.mrf.mxu0 }
 0x1a4   : > { %v4439_v24 = vadd.f32 %v1761_v38, %v1575_v13  ;;  %v2062_v13 = vld [vmem:[#allocation2 + $0xa8] sm:$0xff] }
 0x1a5   : > { %v2089_v12 = vpack.c.bf16 %v2063_v9, %v2062_v13 }
 0x1a7   : > { %v1297_v59 = vpop.f32.mrf.mxu2 }
 0x1a8   : > { %v1343_v19 = vadd.f32 %v1297_v59, %v1097_v49  ;;  %v1530_v27 = vpop.f32.mrf.mxu3  ;;  %v2322_v59 = vpack.c.bf16 %v2296_v21, %v2295_v63 }
 0x1a9   : > { %v1099_v35 = vpop.f32.mrf.mxu1 }
 0x1aa   : > { %v1576_v41 = vadd.f32 %v1530_v27, %v1343_v19  ;;  %v1100_v10 = vadd.f32 %v1099_v35, %v4191_v4  ;;  %v1855_v4 = vpack.c.bf16 %v1829_v16, %v1828_v53  ;;  %v2297_v53 = vld [vmem:[#allocation2 + $0xc1] sm:$0xff]  ;;  %v2298_v16 = vld [vmem:[#allocation2 + $0xc9] sm:$0xff] }
 0x1ab   : > { %v1766_v36 = vpop.f32.mrf.mxu0  ;;  %v2323_v21 = vpack.c.bf16 %v2298_v16, %v2297_v53 }
 0x1ac   : > { %1958 = vmatmul.bf16.gmra.mxu1 %v1854_v61  ;;  %2192 = vmatmul.bf16.gmra.mxu2 %v2088_v57  ;;  %v4442_v42 = vadd.f32 %v1763_v8, %v1576_v41 }
 0x1ad   : > { %2425 = vmatmul.bf16.gmra.mxu3 %v2321_v60 }
 0x1ae   : > { %2658 = vmatmul.bf16.gmra.mxu0 %v4227_v17 }
 0x1af   : > { %v1300_v54 = vpop.f32.mrf.mxu2 }
 0x1b0   : > { %v1344_v39 = vadd.f32 %v1300_v54, %v1100_v10  ;;  %v1533_v22 = vpop.f32.mrf.mxu3  ;;  %v1830_v54 = vld [vmem:[#allocation2 + $0xaa] sm:$0xff] }
 0x1b1   : > { %v1101_v38 = vpop.f32.mrf.mxu1 }
 0x1b2   : > { %v1577_v50 = vadd.f32 %v1533_v22, %v1344_v39  ;;  %v1102_v8 = vadd.f32 %v1101_v38, %v4205_v11  ;;  %v1831_v22 = vld [vmem:[#allocation2 + $0xb2] sm:$0xff]  ;;  %v2064_v38 = vld [vmem:[#allocation2 + $0xc0] sm:$0xff] }
 0x1b3   : > { %v1768_v0 = vpop.f32.mrf.mxu0 }
 0x1b4   : > { %v4446_v1 = vadd.f32 %v1766_v36, %v1577_v50  ;;  %v2065_v50 = vld [vmem:[#allocation2 + $0xc8] sm:$0xff] }
 0x1b7   : > { %v1302_v47 = vpop.f32.mrf.mxu2 }
 0x1b8   : > { %v1345_v17 = vadd.f32 %v1302_v47, %v1102_v8  ;;  %v1535_v49 = vpop.f32.mrf.mxu3  ;;  %v2090_v8 = vpack.c.bf16 %v2065_v50, %v2064_v38 }
 0x1b9   : > { %v1104_v34 = vpop.f32.mrf.mxu1 }
 0x1ba   : > { %v1578_v19 = vadd.f32 %v1535_v49, %v1345_v17  ;;  %v1105_v11 = vadd.f32 %v1104_v34, %v4217_v23  ;;  %v1856_v23 = vpack.c.bf16 %v1831_v22, %v1830_v54  ;;  %v2300_v54 = vld [vmem:[#allocation2 + $0xe1] sm:$0xff] }
 0x1bb   : > { %v1771_v27 = vpop.f32.mrf.mxu0 }
 0x1bc   : > { %1963 = vmatmul.bf16.gmra.mxu1 %v1855_v4  ;;  %2197 = vmatmul.bf16.gmra.mxu2 %v2089_v12  ;;  %v4449_v61 = vadd.f32 %v1768_v0, %v1578_v19 }
 0x1bd   : > { %2430 = vmatmul.bf16.gmra.mxu3 %v2322_v59 }
 0x1be   : > { %2663 = vmatmul.bf16.gmra.mxu0 %v4259_v55 }
 0x1bf   : > { %v1305_v57 = vpop.f32.mrf.mxu2 }
 0x1c0   : > { %v1346_v35 = vadd.f32 %v1305_v57, %v1105_v11  ;;  %v1538_v60 = vpop.f32.mrf.mxu3  ;;  %v1832_v11 = vld [vmem:[#allocation2 + $0xc2] sm:$0xff] }
 0x1c1   : > { %v1106_v41 = vpop.f32.mrf.mxu1 }
 0x1c2   : > { %v1579_v36 = vadd.f32 %v1538_v60, %v1346_v35  ;;  %v1107_v0 = vadd.f32 %v1106_v41, %v4225_v29  ;;  %v1833_v35 = vld [vmem:[#allocation2 + $0xca] sm:$0xff]  ;;  %v2066_v60 = vld [vmem:[#allocation2 + $0xd8] sm:$0xff]  ;;  %v2067_v41 = vld [vmem:[#allocation2 + $0xe0] sm:$0xff] }
 0x1c3   : > { %v1773_v10 = vpop.f32.mrf.mxu0  ;;  %v2091_v50 = vpack.c.bf16 %v2067_v41, %v2066_v60 }
 0x1c4   : > { %v4453_v39 = vadd.f32 %v1771_v27, %v1579_v36 }
 0x1c7   : > { %v1307_v13 = vpop.f32.mrf.mxu2 }
 0x1c8   : > { %v1347_v55 = vadd.f32 %v1307_v13, %v1107_v0  ;;  %v1540_v9 = vpop.f32.mrf.mxu3 }
 0x1c9   : > { %v1109_v63 = vpop.f32.mrf.mxu1 }
 0x1ca   : > { %v1580_v47 = vadd.f32 %v1540_v9, %v1347_v55  ;;  %v1110_v29 = vadd.f32 %v1109_v63, %v4243_v37  ;;  %v1857_v37 = vpack.c.bf16 %v1833_v35, %v1832_v11 }
 0x1cb   : > { %v1776_v17 = vpop.f32.mrf.mxu0 }
 0x1cc   : > { %1968 = vmatmul.bf16.gmra.mxu1 %v1856_v23  ;;  %2202 = vmatmul.bf16.gmra.mxu2 %v2090_v8  ;;  %v4456_v49 = vadd.f32 %v1773_v10, %v1580_v47  ;;  %v2299_v10 = vld [vmem:[#allocation2 + $0xd9] sm:$0xff] }
 0x1cd   : > { %2435 = vmatmul.bf16.gmra.mxu3 %v2323_v21  ;;  %v2324_v53 = vpack.c.bf16 %v2300_v54, %v2299_v10 }
 0x1ce   : > { %2668 = vmatmul.bf16.gmra.mxu0 %v4278_v15 }
 0x1cf   : > { %v1310_v4 = vpop.f32.mrf.mxu2 }
 0x1d0   : > { %v1348_v12 = vadd.f32 %v1310_v4, %v1110_v29  ;;  %v1543_v34 = vpop.f32.mrf.mxu3  ;;  %v2301_v4 = vld [vmem:[#allocation2 + $0xf1] sm:$0xff] }
 0x1d1   : > { %v1111_v59 = vpop.f32.mrf.mxu1 }
 0x1d2   : > { %v1581_v19 = vadd.f32 %v1543_v34, %v1348_v12  ;;  %v1112_v36 = vadd.f32 %v1111_v59, %v4257_v51  ;;  %v2302_v12 = vld [vmem:[#allocation2 + $0xf9] sm:$0xff] }
 0x1d3   : > { %v1778_v27 = vpop.f32.mrf.mxu0  ;;  %v2325_v11 = vpack.c.bf16 %v2302_v12, %v2301_v4 }
 0x1d4   : > { %v4460_v57 = vadd.f32 %v1776_v17, %v1581_v19 }
 0x1d7   : > { %v1312_v22 = vpop.f32.mrf.mxu2 }
 0x1d8   : > { %v1349_v15 = vadd.f32 %v1312_v22, %v1112_v36  ;;  %v1545_v38 = vpop.f32.mrf.mxu3 }
 0x1d9   : > { %v1114_v0 = vpop.f32.mrf.mxu1 }
 0x1da   : > { %v1582_v16 = vadd.f32 %v1545_v38, %v1349_v15  ;;  %v1115_v51 = vadd.f32 %v1114_v0, %v4268_v43  ;;  %v1836_v15 = vld [vmem:[#allocation2 + $0xf2] sm:$0xff] }
 0x1db   : > { %v1781_v13 = vpop.f32.mrf.mxu0  ;;  %v2071_v0 = vld [vmem:[#allocation2 + $0x110] sm:$0xff] }
 0x1dc   : > { %1973 = vmatmul.bf16.gmra.mxu1 %v1857_v37  ;;  %2207 = vmatmul.bf16.gmra.mxu2 %v2091_v50  ;;  %v4463_v55 = vadd.f32 %v1778_v27, %v1582_v16  ;;  %v1837_v37 = vld [vmem:[#allocation2 + $0xfa] sm:$0xff]  ;;  %v2070_v50 = vld [vmem:[#allocation2 + $0x108] sm:$0xff] }
 0x1dd   : > { %2440 = vmatmul.bf16.gmra.mxu3 %v2324_v53  ;;  %v2304_v53 = vld [vmem:[#allocation2 + $0x111] sm:$0xff] }
 0x1de   : > { %2673 = vmatmul.bf16.gmra.mxu0 %v4298_v26 }
 0x1df   : > { %v1315_v9 = vpop.f32.mrf.mxu2 }
 0x1e0   : > { %v1350_v23 = vadd.f32 %v1315_v9, %v1115_v51  ;;  %v1548_v8 = vpop.f32.mrf.mxu3  ;;  %v1859_v51 = vpack.c.bf16 %v1837_v37, %v1836_v15  ;;  %v2305_v37 = vld [vmem:[#allocation2 + $0x121] sm:$0xff] }
 0x1e1   : > { %v1116_v63 = vpop.f32.mrf.mxu1 }
 0x1e2   : > { %v1583_v21 = vadd.f32 %v1548_v8, %v1350_v23  ;;  %v1117_v29 = vadd.f32 %v1116_v63, %v4276_v20 }
 0x1e3   : > { %v1783_v47 = vpop.f32.mrf.mxu0 }
 0x1e4   : > { %v4467_v17 = vadd.f32 %v1781_v13, %v1583_v21 }
 0x1e7   : > { %v1317_v34 = vpop.f32.mrf.mxu2 }
 0x1e8   : > { %v1351_v59 = vadd.f32 %v1317_v34, %v1117_v29  ;;  %v1550_v19 = vpop.f32.mrf.mxu3 }
 0x1e9   : > { %v1939_v27 = vpop.f32.mrf.mxu1 }
 0x1ea   : > { %v1584_v35 = vadd.f32 %v1550_v19, %v1351_v59  ;;  %v2019_v20 = vadd.f32 %v1939_v27, %v4296_v48  ;;  %v2093_v48 = vpack.c.bf16 %v2071_v0, %v2070_v50  ;;  %v2306_v50 = vld [vmem:[#allocation2 + $0x129] sm:$0xff] }
 0x1eb   : > { %v2639_v60 = vpop.f32.mrf.mxu0 }
 0x1ec   : > { %1978 = vmatmul.bf16.gmra.mxu1 %v4298_v26  ;;  %2212 = vmatmul.bf16.gmra.mxu2 %v4300_v31  ;;  %v4472_v43 = vadd.f32 %v1783_v47, %v1584_v35  ;;  %v2303_v31 = vld [vmem:[#allocation2 + $0x109] sm:$0xff] }
 0x1ed   : > { %2445 = vmatmul.bf16.gmra.mxu3 %v2325_v11  ;;  %v2326_v8 = vpack.c.bf16 %v2304_v53, %v2303_v31 }
 0x1ee   : > { %2678 = vmatmul.bf16.gmra.mxu0 %v4311_v44 }
 0x1ef   : > { %v2173_v41 = vpop.f32.mrf.mxu2 }
 0x1f0   : > { %v2406_v36 = vpop.f32.mrf.mxu3  ;;  %v2253_v10 = vadd.f32 %v2173_v41, %v2019_v20 }
 0x1f1   : > { %v1941_v54 = vpop.f32.mrf.mxu1 }
 0x1f2   : > { %v2486_v38 = vadd.f32 %v2406_v36, %v2253_v10  ;;  %v2020_v26 = vadd.f32 %v1941_v54, %v4304_v52  ;;  %v1838_v36 = vld [vmem:[#allocation2 + $0x10a] sm:$0xff]  ;;  %v1839_v10 = vld [vmem:[#allocation2 + $0x112] sm:$0xff]  ;;  %v2072_v54 = vld [vmem:[#allocation2 + $0x120] sm:$0xff] }
 0x1f3   : > { %v2641_v22 = vpop.f32.mrf.mxu0  ;;  %v1860_v53 = vpack.c.bf16 %v1839_v10, %v1838_v36 }
 0x1f4   : > { %v2719_v9 = vadd.f32 %v2639_v60, %v2486_v38 }
 0x1f6   : > { %v2852_v29 = vmul.f32 %v2719_v9, %v2719_v9 }
 0x1f7   : > { %v2175_v16 = vpop.f32.mrf.mxu2 }
 0x1f8   : > { %v2254_v13 = vadd.f32 %v2175_v16, %v2020_v26  ;;  %v2408_v44 = vpop.f32.mrf.mxu3 }
 0x1f9   : > { %v1944_v23 = vpop.f32.mrf.mxu1 }
 0x1fa   : > { %v2487_v63 = vadd.f32 %v2408_v44, %v2254_v13  ;;  %v2021_v34 = vadd.f32 %v1944_v23, %v4309_v58  ;;  %v2327_v44 = vpack.c.bf16 %v2306_v50, %v2305_v37  ;;  %v4567_v23 = vld [vmem:[#allocation6_spill] sm:$0xff] }
 0x1fb   : > { %v2644_v21 = vpop.f32.mrf.mxu0 }
 0x1fc   : > { %v2720_v47 = vadd.f32 %v2641_v22, %v2487_v63  ;;  %1983 = vmatmul.bf16.gmra.mxu1 %v1859_v51  ;;  %2217 = vmatmul.bf16.gmra.mxu2 %v2093_v48  ;;  %v2073_v22 = vld [vmem:[#allocation2 + $0x128] sm:$0xff] }
 0x1fd   : > { %2450 = vmatmul.bf16.gmra.mxu3 %v2326_v8  ;;  %v2094_v16 = vpack.c.bf16 %v2073_v22, %v2072_v54  ;;  %v2307_v22 = vld [vmem:[#allocation2 + $0x139] sm:$0xff] }
 0x1fe   : > { %2683 = vmatmul.bf16.gmra.mxu0 %v4334_v40  ;;  %v3551_v52 = vpack.c.bf16 %v2720_v47, %v2719_v9  ;;  %v2815_v4 = vadd.f32 %v2720_v47, %v2719_v9  ;;  %v2853_v12 = vmul.f32 %v2720_v47, %v2720_v47 }
 0x1ff   : > { %v2178_v59 = vpop.f32.mrf.mxu2 }
 0x200   : > { %3552 = vst [vmem:[%s4482_s16] sm:$0xff] %v3551_v52   ;;  %v2884_v19 = vadd.f32 %v2853_v12, %v2852_v29  ;;  %v2255_v27 = vadd.f32 %v2178_v59, %v2021_v34  ;;  %v2411_v11 = vpop.f32.mrf.mxu3 }
 0x201   : > { %v1946_v35 = vpop.f32.mrf.mxu1 }
 0x202   : > { %v2488_v60 = vadd.f32 %v2411_v11, %v2255_v27  ;;  %v2022_v38 = vadd.f32 %v1946_v35, %v4316_v25  ;;  %v1840_v11 = vld [vmem:[#allocation2 + $0x122] sm:$0xff]  ;;  %v1841_v35 = vld [vmem:[#allocation2 + $0x12a] sm:$0xff] }
 0x203   : > { %v2646_v20 = vpop.f32.mrf.mxu0 }
 0x204   : > { %v2721_v41 = vadd.f32 %v2644_v21, %v2488_v60  ;;  %v4568_v21 = vld [vmem:[#allocation3_spill] sm:$0xff]  ;;  %v2074_v60 = vld [vmem:[#allocation2 + $0x138] sm:$0xff] }
 0x206   : > { %v2816_v15 = vadd.f32 %v2815_v4, %v2721_v41  ;;  %v2854_v40 = vmul.f32 %v2721_v41, %v2721_v41 }
 0x207   : > { %v2180_v58 = vpop.f32.mrf.mxu2 }
 0x208   : > { %v2885_v0 = vadd.f32 %v2884_v19, %v2854_v40  ;;  %v2256_v26 = vadd.f32 %v2180_v58, %v2022_v38  ;;  %v2413_v31 = vpop.f32.mrf.mxu3  ;;  %v1861_v58 = vpack.c.bf16 %v1841_v35, %v1840_v11 }
 0x209   : > { %v1949_v13 = vpop.f32.mrf.mxu1 }
 0x20a   : > { %v2489_v51 = vadd.f32 %v2413_v31, %v2256_v26  ;;  %v2023_v47 = vadd.f32 %v1949_v13, %v4568_v21 }
 0x20b   : > { %v2649_v48 = vpop.f32.mrf.mxu0 }
 0x20c   : > { %v2722_v9 = vadd.f32 %v2646_v20, %v2489_v51  ;;  %1988 = vmatmul.bf16.gmra.mxu1 %v1860_v53  ;;  %2222 = vmatmul.bf16.gmra.mxu2 %v2094_v16  ;;  %v2075_v20 = vld [vmem:[#allocation2 + $0x140] sm:$0xff] }
 0x20d   : > { %2455 = vmatmul.bf16.gmra.mxu3 %v2327_v44 }
 0x20e   : > { %2688 = vmatmul.bf16.gmra.mxu0 %v4567_v23  ;;  %v3556_v25 = vpack.c.bf16 %v2722_v9, %v2721_v41  ;;  %v2817_v8 = vadd.f32 %v2816_v15, %v2722_v9  ;;  %v2855_v63 = vmul.f32 %v2722_v9, %v2722_v9  ;;  %v4569_v41 = vld [vmem:[#allocation4_spill] sm:$0xff]  ;;  %v2308_v15 = vld [vmem:[#allocation2 + $0x141] sm:$0xff] }
 0x20f   : > { %v2183_v29 = vpop.f32.mrf.mxu2  ;;  %v2328_v31 = vpack.c.bf16 %v2308_v15, %v2307_v22  ;;  %v4570_v9 = vld [vmem:[#allocation5_spill] sm:$0xff] }
 0x210   : > { %3643 = vst [vmem:[%s4482_s16 + $0x8] sm:$0xff] %v3556_v25   ;;  %v2886_v52 = vadd.f32 %v2885_v0, %v2855_v63  ;;  %v2257_v4 = vadd.f32 %v2183_v29, %v2023_v47  ;;  %v2416_v12 = vpop.f32.mrf.mxu3  ;;  %v2095_v0 = vpack.c.bf16 %v2075_v20, %v2074_v60  ;;  %v2309_v60 = vld [vmem:[#allocation2 + $0x151] sm:$0xff]  ;;  %v2310_v20 = vld [vmem:[#allocation2 + $0x159] sm:$0xff] }
 0x211   : > { %v1951_v34 = vpop.f32.mrf.mxu1 }
 0x212   : > { %v2490_v59 = vadd.f32 %v2416_v12, %v2257_v4  ;;  %v2024_v54 = vadd.f32 %v1951_v34, %v4569_v41  ;;  %v1842_v12 = vld [vmem:[#allocation2 + $0x13a] sm:$0xff]  ;;  %v1843_v34 = vld [vmem:[#allocation2 + $0x142] sm:$0xff] }
 0x213   : > { %v2651_v19 = vpop.f32.mrf.mxu0  ;;  %v1862_v22 = vpack.c.bf16 %v1843_v34, %v1842_v12  ;;  %v2311_v12 = vld [vmem:[#allocation2 + $0x169] sm:$0xff]  ;;  %v2312_v34 = vld [vmem:[#allocation2 + $0x171] sm:$0xff] }
 0x214   : > { %v2723_v27 = vadd.f32 %v2649_v48, %v2490_v59  ;;  %v2076_v59 = vld [vmem:[#allocation2 + $0x150] sm:$0xff] }
 0x216   : > { %v2818_v36 = vadd.f32 %v2817_v8, %v2723_v27  ;;  %v2856_v10 = vmul.f32 %v2723_v27, %v2723_v27 }
 0x217   : > { %v2185_v40 = vpop.f32.mrf.mxu2 }
 0x218   : > { %v2887_v38 = vadd.f32 %v2886_v52, %v2856_v10  ;;  %v2258_v37 = vadd.f32 %v2185_v40, %v2024_v54  ;;  %v2418_v50 = vpop.f32.mrf.mxu3 }
 0x219   : > { %v1954_v26 = vpop.f32.mrf.mxu1 }
 0x21a   : > { %v2491_v53 = vadd.f32 %v2418_v50, %v2258_v37  ;;  %v2025_v23 = vadd.f32 %v1954_v26, %v4570_v9 }
 0x21b   : > { %v2654_v16 = vpop.f32.mrf.mxu0 }
 0x21c   : > { %v2724_v13 = vadd.f32 %v2651_v19, %v2491_v53  ;;  %1993 = vmatmul.bf16.gmra.mxu1 %v1861_v58  ;;  %2227 = vmatmul.bf16.gmra.mxu2 %v2095_v0  ;;  %v2077_v19 = vld [vmem:[#allocation2 + $0x158] sm:$0xff] }
 0x21d   : > { %2460 = vmatmul.bf16.gmra.mxu3 %v2328_v31  ;;  %v2096_v15 = vpack.c.bf16 %v2077_v19, %v2076_v59  ;;  %v4572_v53 = vld [vmem:[#allocation8_spill] sm:$0xff] }
 0x21e   : > { %2693 = vmatmul.bf16.gmra.mxu0 %v4381_v32  ;;  %v3561_v44 = vpack.c.bf16 %v2724_v13, %v2723_v27  ;;  %v2819_v51 = vadd.f32 %v2818_v36, %v2724_v13  ;;  %v2857_v48 = vmul.f32 %v2724_v13, %v2724_v13  ;;  %v4571_v27 = vld [vmem:[#allocation7_spill] sm:$0xff] }
 0x21f   : > { %v2188_v25 = vpop.f32.mrf.mxu2 }
 0x220   : > { %3644 = vst [vmem:[%s4482_s16 + $0x10] sm:$0xff] %v3561_v44   ;;  %v2888_v8 = vadd.f32 %v2887_v38, %v2857_v48  ;;  %v2259_v63 = vadd.f32 %v2188_v25, %v2025_v23  ;;  %v2421_v21 = vpop.f32.mrf.mxu3  ;;  %v2329_v38 = vpack.c.bf16 %v2310_v20, %v2309_v60  ;;  %v2330_v20 = vpack.c.bf16 %v2312_v34, %v2311_v12 }
 0x221   : > { %v1956_v47 = vpop.f32.mrf.mxu1 }
 0x222   : > { %v2492_v29 = vadd.f32 %v2421_v21, %v2259_v63  ;;  %v2026_v35 = vadd.f32 %v1956_v47, %v4571_v27  ;;  %v1844_v63 = vld [vmem:[#allocation2 + $0x152] sm:$0xff]  ;;  %v1845_v21 = vld [vmem:[#allocation2 + $0x15a] sm:$0xff]  ;;  %v2078_v47 = vld [vmem:[#allocation2 + $0x168] sm:$0xff] }
 0x223   : > { %v2656_v52 = vpop.f32.mrf.mxu0  ;;  %v1863_v27 = vpack.c.bf16 %v1845_v21, %v1844_v63  ;;  %v2547_v63 = vld [vmem:[#allocation2 + $0x18a] sm:$0xff] }
 0x224   : > { %v2725_v4 = vadd.f32 %v2654_v16, %v2492_v29  ;;  %v2079_v29 = vld [vmem:[#allocation2 + $0x170] sm:$0xff] }
 0x226   : > { %v2820_v11 = vadd.f32 %v2819_v51, %v2725_v4  ;;  %v2858_v32 = vmul.f32 %v2725_v4, %v2725_v4 }
 0x227   : > { %v2190_v36 = vpop.f32.mrf.mxu2 }
 0x228   : > { %v2889_v10 = vadd.f32 %v2888_v8, %v2858_v32  ;;  %v2260_v41 = vadd.f32 %v2190_v36, %v2026_v35  ;;  %v2423_v54 = vpop.f32.mrf.mxu3  ;;  %v2097_v35 = vpack.c.bf16 %v2079_v29, %v2078_v47 }
 0x229   : > { %v1959_v40 = vpop.f32.mrf.mxu1 }
 0x22a   : > { %v2493_v37 = vadd.f32 %v2423_v54, %v2260_v41  ;;  %v2027_v16 = vadd.f32 %v1959_v40, %v4572_v53 }
 0x22b   : > { %v2659_v50 = vpop.f32.mrf.mxu0 }
 0x22c   : > { %v2726_v58 = vadd.f32 %v2656_v52, %v2493_v37  ;;  %1998 = vmatmul.bf16.gmra.mxu1 %v1862_v22  ;;  %2232 = vmatmul.bf16.gmra.mxu2 %v2096_v15  ;;  %v4573_v15 = vld [vmem:[#allocation9_spill] sm:$0xff] }
 0x22d   : > { %2465 = vmatmul.bf16.gmra.mxu3 %v2329_v38 }
 0x22e   : > { %2698 = vmatmul.bf16.gmra.mxu0 %v4390_v14  ;;  %v3566_v0 = vpack.c.bf16 %v2726_v58, %v2725_v4  ;;  %v2821_v26 = vadd.f32 %v2820_v11, %v2726_v58  ;;  %v2859_v31 = vmul.f32 %v2726_v58, %v2726_v58 }
 0x22f   : > { %v2193_v13 = vpop.f32.mrf.mxu2 }
 0x230   : > { %3645 = vst [vmem:[%s4482_s16 + $0x18] sm:$0xff] %v3566_v0   ;;  %v2890_v44 = vadd.f32 %v2889_v10, %v2859_v31  ;;  %v2261_v51 = vadd.f32 %v2193_v13, %v2027_v16  ;;  %v2426_v48 = vpop.f32.mrf.mxu3  ;;  %v1846_v16 = vld [vmem:[#allocation2 + $0x16a] sm:$0xff]  ;;  %v1847_v13 = vld [vmem:[#allocation2 + $0x172] sm:$0xff] }
 0x231   : > { %v1961_v9 = vpop.f32.mrf.mxu1 }
 0x232   : > { %v2494_v23 = vadd.f32 %v2426_v48, %v2261_v51  ;;  %v2028_v4 = vadd.f32 %v1961_v9, %v4384_v62  ;;  %v2081_v51 = vld [vmem:[#allocation2 + $0x188] sm:$0xff] }
 0x233   : > { %v2661_v25 = vpop.f32.mrf.mxu0  ;;  %v2313_v48 = vld [vmem:[#allocation2 + $0x181] sm:$0xff] }
 0x234   : > { %v2727_v8 = vadd.f32 %v2659_v50, %v2494_v23 }
 0x236   : > { %v2822_v52 = vadd.f32 %v2821_v26, %v2727_v8  ;;  %v2860_v14 = vmul.f32 %v2727_v8, %v2727_v8 }
 0x237   : > { %v2195_v59 = vpop.f32.mrf.mxu2 }
 0x238   : > { %v2891_v19 = vadd.f32 %v2890_v44, %v2860_v14  ;;  %v2262_v11 = vadd.f32 %v2195_v59, %v2028_v4  ;;  %v2428_v32 = vpop.f32.mrf.mxu3  ;;  %v2080_v44 = vld [vmem:[#allocation2 + $0x180] sm:$0xff]  ;;  %v1864_v14 = vpack.c.bf16 %v1847_v13, %v1846_v16 }
 0x239   : > { %v1964_v60 = vpop.f32.mrf.mxu1  ;;  %v2098_v4 = vpack.c.bf16 %v2081_v51, %v2080_v44  ;;  %v3711_v51 = vld [vmem:[#allocation2 + $0x1] sm:$0xff] }
 0x23a   : > { %v2495_v36 = vadd.f32 %v2428_v32, %v2262_v11  ;;  %v2029_v40 = vadd.f32 %v1964_v60, %v4573_v15 }
 0x23b   : > { %v2664_v10 = vpop.f32.mrf.mxu0 }
 0x23c   : > { %v2728_v41 = vadd.f32 %v2661_v25, %v2495_v36  ;;  %2003 = vmatmul.bf16.gmra.mxu1 %v1863_v27  ;;  %2237 = vmatmul.bf16.gmra.mxu2 %v2097_v35  ;;  %v2314_v25 = vld [vmem:[#allocation2 + $0x189] sm:$0xff] }
 0x23d   : > { %2470 = vmatmul.bf16.gmra.mxu3 %v2330_v20  ;;  %v2331_v34 = vpack.c.bf16 %v2314_v25, %v2313_v48  ;;  %v2332_v48 = vpack.c.bf16 %v3711_v51, %v3711_v51 }
 0x23e   : > { %2703 = vmatmul.bf16.gmra.mxu0 %v4399_v2  ;;  %v3571_v62 = vpack.c.bf16 %v2728_v41, %v2727_v8  ;;  %v2823_v54 = vadd.f32 %v2822_v52, %v2728_v41  ;;  %v2861_v22 = vmul.f32 %v2728_v41, %v2728_v41  ;;  %v2546_v8 = vld [vmem:[#allocation2 + $0x182] sm:$0xff] }
 0x23f   : > { %v2198_v38 = vpop.f32.mrf.mxu2  ;;  %v2564_v59 = vpack.c.bf16 %v2547_v63, %v2546_v8 }
 0x240   : > { %3646 = vst [vmem:[%s4482_s16 + $0x20] sm:$0xff] %v3571_v62   ;;  %v2892_v37 = vadd.f32 %v2891_v19, %v2861_v22  ;;  %v2263_v50 = vadd.f32 %v2198_v38, %v2029_v40  ;;  %v2431_v58 = vpop.f32.mrf.mxu3  ;;  %v2082_v40 = vld [vmem:[#allocation2 + $0x198] sm:$0xff]  ;;  %v2083_v38 = vld [vmem:[#allocation2 + $0x1a0] sm:$0xff] }
 0x241   : > { %v1966_v0 = vpop.f32.mrf.mxu1  ;;  %v2099_v13 = vpack.c.bf16 %v2083_v38, %v2082_v40 }
 0x242   : > { %v2496_v26 = vadd.f32 %v2431_v58, %v2263_v50  ;;  %v2030_v23 = vadd.f32 %v1966_v0, %v4393_v46  ;;  %v2548_v0 = vld [vmem:[#allocation2 + $0x19a] sm:$0xff] }
 0x243   : > { %v2666_v31 = vpop.f32.mrf.mxu0 }
 0x244   : > { %v2729_v53 = vadd.f32 %v2664_v10, %v2496_v26  ;;  %v2549_v26 = vld [vmem:[#allocation2 + $0x1a2] sm:$0xff] }
 0x246   : > { %v2824_v2 = vadd.f32 %v2823_v54, %v2729_v53  ;;  %v2862_v9 = vmul.f32 %v2729_v53, %v2729_v53 }
 0x247   : > { %v2200_v21 = vpop.f32.mrf.mxu2 }
 0x248   : > { %v2893_v47 = vadd.f32 %v2892_v37, %v2862_v9  ;;  %v2264_v29 = vadd.f32 %v2200_v21, %v2030_v23  ;;  %v2433_v52 = vpop.f32.mrf.mxu3 }
 0x249   : > { %v1969_v12 = vpop.f32.mrf.mxu1 }
 0x24a   : > { %v2497_v19 = vadd.f32 %v2433_v52, %v2264_v29  ;;  %v2031_v60 = vadd.f32 %v1969_v12, %v4396_v45 }
 0x24b   : > { %v2669_v11 = vpop.f32.mrf.mxu0 }
 0x24c   : > { %v2730_v32 = vadd.f32 %v2666_v31, %v2497_v19  ;;  %2008 = vmatmul.bf16.gmra.mxu1 %v1864_v14  ;;  %2242 = vmatmul.bf16.gmra.mxu2 %v2098_v4 }
 0x24d   : > { %2475 = vmatmul.bf16.gmra.mxu3 %v2331_v34 }
 0x24e   : > { %2708 = vmatmul.bf16.gmra.mxu0 %v2564_v59  ;;  %v3576_v46 = vpack.c.bf16 %v2730_v32, %v2729_v53  ;;  %v2825_v27 = vadd.f32 %v2824_v2, %v2730_v32  ;;  %v2863_v35 = vmul.f32 %v2730_v32, %v2730_v32  ;;  %v2565_v2 = vpack.c.bf16 %v2549_v26, %v2548_v0 }
 0x24f   : > { %v2203_v20 = vpop.f32.mrf.mxu2 }
 0x250   : > { %3647 = vst [vmem:[%s4482_s16 + $0x28] sm:$0xff] %v3576_v46   ;;  %v2894_v36 = vadd.f32 %v2893_v47, %v2863_v35  ;;  %v2265_v10 = vadd.f32 %v2203_v20, %v2031_v60  ;;  %v2436_v41 = vpop.f32.mrf.mxu3 }
 0x251   : > { %v1971_v62 = vpop.f32.mrf.mxu1 }
 0x252   : > { %v2498_v54 = vadd.f32 %v2436_v41, %v2265_v10  ;;  %v2032_v58 = vadd.f32 %v1971_v62, %v4406_v18 }
 0x253   : > { %v2671_v22 = vpop.f32.mrf.mxu0 }
 0x254   : > { %v2731_v15 = vadd.f32 %v2669_v11, %v2498_v54 }
 0x256   : > { %v2826_v37 = vadd.f32 %v2825_v27, %v2731_v15  ;;  %v2864_v50 = vmul.f32 %v2731_v15, %v2731_v15 }
 0x257   : > { %v2205_v31 = vpop.f32.mrf.mxu2 }
 0x258   : > { %v2895_v53 = vadd.f32 %v2894_v36, %v2864_v50  ;;  %v2266_v45 = vadd.f32 %v2205_v31, %v2032_v58  ;;  %v2438_v16 = vpop.f32.mrf.mxu3 }
 0x259   : > { %v1974_v44 = vpop.f32.mrf.mxu1 }
 0x25a   : > { %v2499_v9 = vadd.f32 %v2438_v16, %v2266_v45  ;;  %v2033_v21 = vadd.f32 %v1974_v44, %v4409_v5 }
 0x25b   : > { %v2674_v23 = vpop.f32.mrf.mxu0 }
 0x25c   : > { %v2732_v25 = vadd.f32 %v2671_v22, %v2499_v9  ;;  %2013 = vmatmul.bf16.gmra.mxu1 %v2564_v59  ;;  %2247 = vmatmul.bf16.gmra.mxu2 %v2099_v13 }
 0x25d   : > { %2480 = vmatmul.bf16.gmra.mxu3 %v2332_v48 }
 0x25e   : > { %2713 = vmatmul.bf16.gmra.mxu0 %v2565_v2  ;;  %v3581_v18 = vpack.c.bf16 %v2732_v25, %v2731_v15  ;;  %v2827_v8 = vadd.f32 %v2826_v37, %v2732_v25  ;;  %v2865_v63 = vmul.f32 %v2732_v25, %v2732_v25 }
 0x25f   : > { %v2208_v47 = vpop.f32.mrf.mxu2 }
 0x260   : > { %3648 = vst [vmem:[%s4482_s16 + $0x30] sm:$0xff] %v3581_v18   ;;  %v2896_v29 = vadd.f32 %v2895_v53, %v2865_v63  ;;  %v2267_v52 = vadd.f32 %v2208_v47, %v2033_v21  ;;  %v2441_v14 = vpop.f32.mrf.mxu3 }
 0x261   : > { %v1976_v4 = vpop.f32.mrf.mxu1 }
 0x262   : > { %v2500_v12 = vadd.f32 %v2441_v14, %v2267_v52  ;;  %v2034_v32 = vadd.f32 %v1976_v4, %v4414_v56 }
 0x263   : > { %v2676_v34 = vpop.f32.mrf.mxu0 }
 0x264   : > { %v2733_v19 = vadd.f32 %v2674_v23, %v2500_v12 }
 0x266   : > { %v2828_v11 = vadd.f32 %v2827_v8, %v2733_v19  ;;  %v2866_v59 = vmul.f32 %v2733_v19, %v2733_v19 }
 0x267   : > { %v2210_v46 = vpop.f32.mrf.mxu2 }
 0x268   : > { %v2897_v27 = vadd.f32 %v2896_v29, %v2866_v59  ;;  %v2268_v35 = vadd.f32 %v2210_v46, %v2034_v32  ;;  %v2443_v60 = vpop.f32.mrf.mxu3 }
 0x269   : > { %v1979_v20 = vpop.f32.mrf.mxu1 }
 0x26a   : > { %v2501_v5 = vadd.f32 %v2443_v60, %v2268_v35  ;;  %v2035_v22 = vadd.f32 %v1979_v20, %v4418_v7 }
 0x26b   : > { %v2679_v36 = vpop.f32.mrf.mxu0 }
 0x26c   : > { %v2734_v10 = vadd.f32 %v2676_v34, %v2501_v5 }
 0x26e   : > { %v3586_v41 = vpack.c.bf16 %v2734_v10, %v2733_v19  ;;  %v2829_v62 = vadd.f32 %v2828_v11, %v2734_v10  ;;  %v2867_v54 = vmul.f32 %v2734_v10, %v2734_v10 }
 0x26f   : > { %v2213_v15 = vpop.f32.mrf.mxu2 }
 0x270   : > { %3649 = vst [vmem:[%s4482_s16 + $0x38] sm:$0xff] %v3586_v41   ;;  %v2898_v40 = vadd.f32 %v2897_v27, %v2867_v54  ;;  %v2269_v38 = vadd.f32 %v2213_v15, %v2035_v22  ;;  %v2446_v37 = vpop.f32.mrf.mxu3 }
 0x271   : > { %v1981_v50 = vpop.f32.mrf.mxu1 }
 0x272   : > { %v2502_v56 = vadd.f32 %v2446_v37, %v2269_v38  ;;  %v2036_v53 = vadd.f32 %v1981_v50, %v4421_v6 }
 0x273   : > { %v2681_v58 = vpop.f32.mrf.mxu0 }
 0x274   : > { %v2735_v0 = vadd.f32 %v2679_v36, %v2502_v56 }
 0x276   : > { %v2830_v26 = vadd.f32 %v2829_v62, %v2735_v0  ;;  %v2868_v31 = vmul.f32 %v2735_v0, %v2735_v0 }
 0x277   : > { %v2215_v45 = vpop.f32.mrf.mxu2 }
 0x278   : > { %v2899_v16 = vadd.f32 %v2898_v40, %v2868_v31  ;;  %v2270_v13 = vadd.f32 %v2215_v45, %v2036_v53  ;;  %v2448_v44 = vpop.f32.mrf.mxu3 }
 0x279   : > { %v1984_v51 = vpop.f32.mrf.mxu1 }
 0x27a   : > { %v2503_v7 = vadd.f32 %v2448_v44, %v2270_v13  ;;  %v2037_v18 = vadd.f32 %v1984_v51, %v4425_v30 }
 0x27b   : > { %v2684_v48 = vpop.f32.mrf.mxu0 }
 0x27c   : > { %v2736_v2 = vadd.f32 %v2681_v58, %v2503_v7 }
 0x27e   : > { %v3591_v9 = vpack.c.bf16 %v2736_v2, %v2735_v0  ;;  %v2831_v23 = vadd.f32 %v2830_v26, %v2736_v2  ;;  %v2869_v25 = vmul.f32 %v2736_v2, %v2736_v2 }
 0x27f   : > { %v2218_v8 = vpop.f32.mrf.mxu2 }
 0x280   : > { %3650 = vst [vmem:[%s4482_s16 + $0x40] sm:$0xff] %v3591_v9   ;;  %v2900_v63 = vadd.f32 %v2899_v16, %v2869_v25  ;;  %v2271_v21 = vadd.f32 %v2218_v8, %v2037_v18  ;;  %v2451_v47 = vpop.f32.mrf.mxu3 }
 0x281   : > { %v1986_v29 = vpop.f32.mrf.mxu1 }
 0x282   : > { %v2504_v6 = vadd.f32 %v2451_v47, %v2271_v21  ;;  %v2038_v34 = vadd.f32 %v1986_v29, %v4428_v33 }
 0x283   : > { %v2686_v52 = vpop.f32.mrf.mxu0 }
 0x284   : > { %v2737_v14 = vadd.f32 %v2684_v48, %v2504_v6 }
 0x286   : > { %v2832_v4 = vadd.f32 %v2831_v23, %v2737_v14  ;;  %v2870_v12 = vmul.f32 %v2737_v14, %v2737_v14 }
 0x287   : > { %v2220_v19 = vpop.f32.mrf.mxu2 }
 0x288   : > { %v2901_v11 = vadd.f32 %v2900_v63, %v2870_v12  ;;  %v2272_v59 = vadd.f32 %v2220_v19, %v2038_v34  ;;  %v2453_v32 = vpop.f32.mrf.mxu3 }
 0x289   : > { %v1989_v46 = vpop.f32.mrf.mxu1 }
 0x28a   : > { %v2505_v30 = vadd.f32 %v2453_v32, %v2272_v59  ;;  %v2039_v36 = vadd.f32 %v1989_v46, %v4432_v28 }
 0x28b   : > { %v2689_v27 = vpop.f32.mrf.mxu0 }
 0x28c   : > { %v2738_v35 = vadd.f32 %v2686_v52, %v2505_v30 }
 0x28e   : > { %v3596_v60 = vpack.c.bf16 %v2738_v35, %v2737_v14  ;;  %v2833_v20 = vadd.f32 %v2832_v4, %v2738_v35  ;;  %v2871_v5 = vmul.f32 %v2738_v35, %v2738_v35 }
 0x28f   : > { %v2223_v10 = vpop.f32.mrf.mxu2 }
 0x290   : > { %3651 = vst [vmem:[%s4482_s16 + $0x48] sm:$0xff] %v3596_v60   ;;  %v2902_v41 = vadd.f32 %v2901_v11, %v2871_v5  ;;  %v2273_v62 = vadd.f32 %v2223_v10, %v2039_v36  ;;  %v2456_v54 = vpop.f32.mrf.mxu3 }
 0x291   : > { %v1991_v22 = vpop.f32.mrf.mxu1 }
 0x292   : > { %v2506_v33 = vadd.f32 %v2456_v54, %v2273_v62  ;;  %v2040_v50 = vadd.f32 %v1991_v22, %v4435_v3 }
 0x293   : > { %v2691_v15 = vpop.f32.mrf.mxu0 }
 0x294   : > { %v2739_v40 = vadd.f32 %v2689_v27, %v2506_v33 }
 0x296   : > { %v2834_v38 = vadd.f32 %v2833_v20, %v2739_v40  ;;  %v2872_v37 = vmul.f32 %v2739_v40, %v2739_v40 }
 0x297   : > { %v2225_v56 = vpop.f32.mrf.mxu2 }
 0x298   : > { %v2903_v58 = vadd.f32 %v2902_v41, %v2872_v37  ;;  %v2274_v0 = vadd.f32 %v2225_v56, %v2040_v50  ;;  %v2458_v26 = vpop.f32.mrf.mxu3 }
 0x299   : > { %v1994_v31 = vpop.f32.mrf.mxu1 }
 0x29a   : > { %v2507_v28 = vadd.f32 %v2458_v26, %v2274_v0  ;;  %v2041_v51 = vadd.f32 %v1994_v31, %v4439_v24 }
 0x29b   : > { %v2694_v53 = vpop.f32.mrf.mxu0 }
 0x29c   : > { %v2740_v45 = vadd.f32 %v2691_v15, %v2507_v28 }
 0x29e   : > { %v3601_v16 = vpack.c.bf16 %v2740_v45, %v2739_v40  ;;  %v2835_v13 = vadd.f32 %v2834_v38, %v2740_v45  ;;  %v2873_v44 = vmul.f32 %v2740_v45, %v2740_v45 }
 0x29f   : > { %v2228_v7 = vpop.f32.mrf.mxu2 }
 0x2a0   : > { %3652 = vst [vmem:[%s4482_s16 + $0x50] sm:$0xff] %v3601_v16   ;;  %v2904_v48 = vadd.f32 %v2903_v58, %v2873_v44  ;;  %v2275_v2 = vadd.f32 %v2228_v7, %v2041_v51  ;;  %v2461_v9 = vpop.f32.mrf.mxu3 }
 0x2a1   : > { %v1996_v23 = vpop.f32.mrf.mxu1 }
 0x2a2   : > { %v2508_v3 = vadd.f32 %v2461_v9, %v2275_v2  ;;  %v2042_v21 = vadd.f32 %v1996_v23, %v4442_v42 }
 0x2a3   : > { %v2696_v25 = vpop.f32.mrf.mxu0 }
 0x2a4   : > { %v2741_v18 = vadd.f32 %v2694_v53, %v2508_v3 }
 0x2a6   : > { %v2836_v8 = vadd.f32 %v2835_v13, %v2741_v18  ;;  %v2874_v63 = vmul.f32 %v2741_v18, %v2741_v18 }
 0x2a7   : > { %v2230_v47 = vpop.f32.mrf.mxu2 }
 0x2a8   : > { %v2905_v29 = vadd.f32 %v2904_v48, %v2874_v63  ;;  %v2276_v6 = vadd.f32 %v2230_v47, %v2042_v21  ;;  %v2463_v52 = vpop.f32.mrf.mxu3 }
 0x2a9   : > { %v1999_v14 = vpop.f32.mrf.mxu1 }
 0x2aa   : > { %v2509_v24 = vadd.f32 %v2463_v52, %v2276_v6  ;;  %v2043_v59 = vadd.f32 %v1999_v14, %v4446_v1 }
 0x2ab   : > { %v2699_v4 = vpop.f32.mrf.mxu0 }
 0x2ac   : > { %v2742_v12 = vadd.f32 %v2696_v25, %v2509_v24 }
 0x2ae   : > { %v3606_v34 = vpack.c.bf16 %v2742_v12, %v2741_v18  ;;  %v2837_v19 = vadd.f32 %v2836_v8, %v2742_v12  ;;  %v2875_v11 = vmul.f32 %v2742_v12, %v2742_v12 }
 0x2af   : > { %v2233_v32 = vpop.f32.mrf.mxu2 }
 0x2b0   : > { %3653 = vst [vmem:[%s4482_s16 + $0x58] sm:$0xff] %v3606_v34   ;;  %v2906_v46 = vadd.f32 %v2905_v29, %v2875_v11  ;;  %v2277_v30 = vadd.f32 %v2233_v32, %v2043_v59  ;;  %v2466_v27 = vpop.f32.mrf.mxu3 }
 0x2b1   : > { %v2001_v35 = vpop.f32.mrf.mxu1 }
 0x2b2   : > { %v2510_v42 = vadd.f32 %v2466_v27, %v2277_v30  ;;  %v2044_v10 = vadd.f32 %v2001_v35, %v4449_v61 }
 0x2b3   : > { %v2701_v60 = vpop.f32.mrf.mxu0 }
 0x2b4   : > { %v2743_v20 = vadd.f32 %v2699_v4, %v2510_v42 }
 0x2b6   : > { %v2838_v5 = vadd.f32 %v2837_v19, %v2743_v20  ;;  %v2876_v36 = vmul.f32 %v2743_v20, %v2743_v20 }
 0x2b7   : > { %v2235_v41 = vpop.f32.mrf.mxu2 }
 0x2b8   : > { %v2907_v62 = vadd.f32 %v2906_v46, %v2876_v36  ;;  %v2278_v54 = vadd.f32 %v2235_v41, %v2044_v10  ;;  %v2468_v22 = vpop.f32.mrf.mxu3 }
 0x2b9   : > { %v2004_v33 = vpop.f32.mrf.mxu1 }
 0x2ba   : > { %v2511_v1 = vadd.f32 %v2468_v22, %v2278_v54  ;;  %v2045_v56 = vadd.f32 %v2004_v33, %v4453_v39 }
 0x2bb   : > { %v2704_v15 = vpop.f32.mrf.mxu0 }
 0x2bc   : > { %v2744_v40 = vadd.f32 %v2701_v60, %v2511_v1 }
 0x2be   : > { %v3611_v38 = vpack.c.bf16 %v2744_v40, %v2743_v20  ;;  %v2839_v37 = vadd.f32 %v2838_v5, %v2744_v40  ;;  %v2877_v50 = vmul.f32 %v2744_v40, %v2744_v40 }
 0x2bf   : > { %v2238_v58 = vpop.f32.mrf.mxu2 }
 0x2c0   : > { %3654 = vst [vmem:[%s4482_s16 + $0x60] sm:$0xff] %v3611_v38   ;;  %v2908_v0 = vadd.f32 %v2907_v62, %v2877_v50  ;;  %v2279_v26 = vadd.f32 %v2238_v58, %v2045_v56  ;;  %v2471_v31 = vpop.f32.mrf.mxu3 }
 0x2c1   : > { %v2006_v28 = vpop.f32.mrf.mxu1 }
 0x2c2   : > { %v2512_v61 = vadd.f32 %v2471_v31, %v2279_v26  ;;  %v2046_v44 = vadd.f32 %v2006_v28, %v4456_v49 }
 0x2c3   : > { %v2706_v53 = vpop.f32.mrf.mxu0 }
 0x2c4   : > { %v2745_v45 = vadd.f32 %v2704_v15, %v2512_v61 }
 0x2c6   : > { %v2840_v16 = vadd.f32 %v2839_v37, %v2745_v45  ;;  %v2878_v13 = vmul.f32 %v2745_v45, %v2745_v45 }
 0x2c7   : > { %v2240_v51 = vpop.f32.mrf.mxu2 }
 0x2c8   : > { %v2909_v7 = vadd.f32 %v2908_v0, %v2878_v13  ;;  %v2280_v48 = vadd.f32 %v2240_v51, %v2046_v44  ;;  %v2473_v2 = vpop.f32.mrf.mxu3 }
 0x2c9   : > { %v2009_v9 = vpop.f32.mrf.mxu1 }
 0x2ca   : > { %v2513_v39 = vadd.f32 %v2473_v2, %v2280_v48  ;;  %v2047_v63 = vadd.f32 %v2009_v9, %v4460_v57 }
 0x2cb   : > { %v2709_v3 = vpop.f32.mrf.mxu0 }
 0x2cc   : > { %v2746_v23 = vadd.f32 %v2706_v53, %v2513_v39 }
 0x2ce   : > { %v3616_v25 = vpack.c.bf16 %v2746_v23, %v2745_v45  ;;  %v2841_v18 = vadd.f32 %v2840_v16, %v2746_v23  ;;  %v2879_v8 = vmul.f32 %v2746_v23, %v2746_v23 }
 0x2cf   : > { %v2243_v21 = vpop.f32.mrf.mxu2 }
 0x2d0   : > { %3655 = vst [vmem:[%s4482_s16 + $0x68] sm:$0xff] %v3616_v25   ;;  %v2910_v47 = vadd.f32 %v2909_v7, %v2879_v8  ;;  %v2281_v29 = vadd.f32 %v2243_v21, %v2047_v63  ;;  %v2476_v6 = vpop.f32.mrf.mxu3 }
 0x2d1   : > { %v2011_v52 = vpop.f32.mrf.mxu1 }
 0x2d2   : > { %v2514_v49 = vadd.f32 %v2476_v6, %v2281_v29  ;;  %v2048_v12 = vadd.f32 %v2011_v52, %v4463_v55 }
 0x2d3   : > { %v2711_v34 = vpop.f32.mrf.mxu0 }
 0x2d4   : > { %v2747_v14 = vadd.f32 %v2709_v3, %v2514_v49 }
 0x2d6   : > { %v2842_v24 = vadd.f32 %v2841_v18, %v2747_v14  ;;  %v2880_v4 = vmul.f32 %v2747_v14, %v2747_v14 }
 0x2d7   : > { %v2245_v19 = vpop.f32.mrf.mxu2 }
 0x2d8   : > { %v2911_v11 = vadd.f32 %v2910_v47, %v2880_v4  ;;  %v2282_v59 = vadd.f32 %v2245_v19, %v2048_v12  ;;  %v2478_v32 = vpop.f32.mrf.mxu3 }
 0x2d9   : > { %v2014_v46 = vpop.f32.mrf.mxu1 }
 0x2da   : > { %v2515_v57 = vadd.f32 %v2478_v32, %v2282_v59  ;;  %v2049_v60 = vadd.f32 %v2014_v46, %v4467_v17 }
 0x2db   : > { %v2714_v41 = vpop.f32.mrf.mxu0 }
 0x2dc   : > { %v2748_v30 = vadd.f32 %v2711_v34, %v2515_v57 }
 0x2de   : > { %v3621_v27 = vpack.c.bf16 %v2748_v30, %v2747_v14  ;;  %v2843_v35 = vadd.f32 %v2842_v24, %v2748_v30  ;;  %v2881_v42 = vmul.f32 %v2748_v30, %v2748_v30 }
 0x2df   : > { %v2248_v20 = vpop.f32.mrf.mxu2 }
 0x2e0   : > { %3656 = vst [vmem:[%s4482_s16 + $0x70] sm:$0xff] %v3621_v27   ;;  %v2912_v5 = vadd.f32 %v2911_v11, %v2881_v42  ;;  %v2283_v36 = vadd.f32 %v2248_v20, %v2049_v60  ;;  %v2481_v10 = vpop.f32.mrf.mxu3 }
 0x2e1   : > { %v2016_v62 = vpop.f32.mrf.mxu1 }
 0x2e2   : > { %v2516_v55 = vadd.f32 %v2481_v10, %v2283_v36  ;;  %v2050_v1 = vadd.f32 %v2016_v62, %v4472_v43 }
 0x2e3   : > { %v2716_v17 = vpop.f32.mrf.mxu0 }
 0x2e4   : > { %v2749_v54 = vadd.f32 %v2714_v41, %v2516_v55 }
 0x2e6   : > { %v2844_v22 = vadd.f32 %v2843_v35, %v2749_v54  ;;  %v2882_v33 = vmul.f32 %v2749_v54, %v2749_v54 }
 0x2e7   : > { %v2250_v15 = vpop.f32.mrf.mxu2 }
 0x2e8   : > { %v2913_v40 = vadd.f32 %v2912_v5, %v2882_v33  ;;  %v2284_v38 = vadd.f32 %v2250_v15, %v2050_v1  ;;  %v2483_v37 = vpop.f32.mrf.mxu3 }
 0x2ea   : > { %v2517_v50 = vadd.f32 %v2483_v37, %v2284_v38 }
 0x2ec   : > { %v2750_v56 = vadd.f32 %v2716_v17, %v2517_v50 }
 0x2ee   : > { %v3626_v58 = vpack.c.bf16 %v2750_v56, %v2749_v54  ;;  %v2845_v0 = vadd.f32 %v2844_v22, %v2750_v56  ;;  %v2883_v26 = vmul.f32 %v2750_v56, %v2750_v56 }
 0x2f0   : > { %3657 = vst [vmem:[%s4482_s16 + $0x78] sm:$0xff] %v3626_v58   ;;  %v2846_v31 = vrot.slane %v2845_v0, 4  ;;  %v2914_v28 = vadd.f32 %v2913_v40, %v2883_v26 }
 0x2f2   : > { %v2847_v61 = vadd.f32 %v2846_v31, %v2845_v0  ;;  %v2915_v53 = vrot.slane %v2914_v28, 4 }
 0x2f4   : > { %v2848_v45 = vrot.slane %v2847_v61, 2  ;;  %v2916_v16 = vadd.f32 %v2915_v53, %v2914_v28 }
 0x2f6   : > { %v2849_v13 = vadd.f32 %v2848_v45, %v2847_v61  ;;  %v2917_v43 = vrot.slane %v2916_v16, 2 }
 0x2f8   : > { %v2850_v44 = vrot.slane %v2849_v13, 1  ;;  %v2918_v51 = vadd.f32 %v2917_v43, %v2916_v16 }
 0x2fa   : > { %v2919_v7 = vrot.slane %v2918_v51, 1  ;;  %v2851_v48 = vadd.f32 %v2850_v44, %v2849_v13 }
 0x2fc   : > { %v2920_v2 = vadd.f32 %v2919_v7, %v2918_v51 }
 0x2fe   : > { %v2922_v9 = vsel %vm2921_vm0, %v2851_v48, %v2920_v2 }
 0x2ff   : > { %2923 = vst [vmem:[%s438_s19] sm:$0x3] %v2922_v9 }
 0x300 PF: > { %s17_s22 = sadd.s32 1, %s3734_s22   ;;  %s4574_s21 = smov %s3730_s0 }
 0x301   : > { %p14_p5 = scmp.ge.s32.totalorder %s17_s22, 4   ;;  %s4575_s0 = smov %s4577_s2 }
 0x303   :  { %16 = sbr.rel (!%p14_p5) target bundleno = 2 (0x2), region = 108 }

</bundles_post_ra>
